<compile_context>
chip_gen: v7x
topology: tpu7x:2x2x1
jax: 0.10.0
libtpu: 0.0.40
codegen_flags: <defaults>
</compile_context>

<pallas_src>
import functools
import math

import jax
import jax.numpy as jnp
from jax import lax
from jax.experimental import pallas as pl
from jax.experimental.pallas import tpu as pltpu
from jax.scipy.special import gammaln, digamma

f32 = jnp.float32
bf16 = jnp.bfloat16


def _round_up(x, m):
    return ((x + m - 1) // m) * m


def _vmem_limit_bytes():
    cap = 128 * 1024 * 1024
    try:
        cap = int(pltpu.get_tpu_info().vmem_capacity_bytes)
    except Exception:
        pass
    # ~96 MiB on v5e/v6e (128 MiB physical), ~48 MiB on v7x (64 MiB physical).
    return int(min(cap * 3 // 4, 96 * 1024 * 1024))


# ----------------------------------------------------------------------------
# Kernel A1: online logsumexp over V chunks for the topic|word softmax rows
#            (batch independent), plus softmax(depend / temperature).
# ----------------------------------------------------------------------------
def beta_lse_kernel(topic_ref, wv_ref, dep_scaled_ref, lse_ref, dep_ref,
                    m_sc, l_sc, *, v_orig, vc):
    k = pl.program_id(0)

    @pl.when(k == 0)
    def _():
        m_sc[...] = jnp.full_like(m_sc, -jnp.inf)
        l_sc[...] = jnp.zeros_like(l_sc)

    s = jnp.dot(topic_ref[...], wv_ref[...], preferred_element_type=f32)
    col = k * vc + lax.broadcasted_iota(jnp.int32, s.shape, 1)
    s = jnp.where(col < v_orig, s, -jnp.inf)          # mask padded vocab tail

    m_new = jnp.maximum(m_sc[...], jnp.max(s, axis=-1, keepdims=True))
    l_sc[...] = (l_sc[...] * jnp.exp(m_sc[...] - m_new)
                 + jnp.sum(jnp.exp(s - m_new), axis=-1, keepdims=True))
    m_sc[...] = m_new

    @pl.when(k == pl.num_programs(0) - 1)
    def _():
        lse_ref[...] = m_sc[...] + jnp.log(l_sc[...])
        d = dep_scaled_ref[...]
        d = d - jnp.max(d, axis=-1, keepdims=True)
        e = jnp.exp(d)
        dep_ref[...] = e / jnp.sum(e, axis=-1, keepdims=True)


# ----------------------------------------------------------------------------
# Kernel A2: write beta_all chunk-by-chunk (exp(scores - lse)); the (T_all, V)
#            scores never coexist with word_vec_t and the output at full V.
# ----------------------------------------------------------------------------
def beta_write_kernel(topic_ref, wv_ref, lse_ref, beta_ref, *, v_orig, vc):
    k = pl.program_id(0)
    s = jnp.dot(topic_ref[...], wv_ref[...], preferred_element_type=f32)
    col = k * vc + lax.broadcasted_iota(jnp.int32, s.shape, 1)
    s = jnp.where(col < v_orig, s, -jnp.inf)
    beta_ref[...] = jnp.exp(s - lse_ref[...])         # full-width lane-dense store


# ----------------------------------------------------------------------------
# Kernel B1: encoder matmul streamed over V chunks; decoder at the last chunk.
#            All per-row results packed into one (BT, PACK=128) slab.
# ----------------------------------------------------------------------------
def encdec_kernel(x_ref, mlpw_ref, eps0_ref, eps_ref,
                  mlp_b, heads_w, heads_b, eta1_w, eta1_b, eta2_w, eta2_b,
                  dep_ref, tri_ref, o_ref, enc_acc, *, H, T, T2):
    k = pl.program_id(1)

    @pl.when(k == 0)
    def _():
        enc_acc[...] = jnp.zeros_like(enc_acc)

    # bf16 x bf16 -> f32 accumulate on the MXU
    enc_acc[...] += jnp.dot(x_ref[...], mlpw_ref[...], preferred_element_type=f32)

    @pl.when(k == pl.num_programs(1) - 1)
    def _():
        T_all = T + T2 + 1
        enc = jnp.tanh(enc_acc[...] + mlp_b[...])

        # fused heads: [mean | logsigm | a | b]
        heads = jnp.dot(enc, heads_w[...], preferred_element_type=f32) + heads_b[...]
        mean = heads[:, 0:H]
        logsigm = heads[:, H:2 * H]
        a = jax.nn.softplus(heads[:, 2 * H:2 * H + T])
        b = jax.nn.softplus(heads[:, 2 * H + T:2 * H + 2 * T])

        kld_gauss = -0.5 * jnp.sum(
            1.0 - mean * mean + 2.0 * logsigm - jnp.exp(2.0 * logsigm),
            axis=1, keepdims=True)

        # reparameterisation + eta MLP + softmax (exact divide, 3-wide)
        doc_vec = jnp.exp(logsigm) * eps0_ref[...] + mean
        eta_h = jnp.tanh(jnp.dot(doc_vec, eta1_w[...], preferred_element_type=f32)
                         + eta1_b[...])
        eta_l = jnp.tanh(jnp.dot(eta_h, eta2_w[...], preferred_element_type=f32)
                         + eta2_b[...])
        eta_l = eta_l - jnp.max(eta_l, axis=-1, keepdims=True)
        eta_e = jnp.exp(eta_l)
        eta = eta_e / jnp.sum(eta_e, axis=-1, keepdims=True)

        # Kumaraswamy sample: v = (1 - eps**(1/b))**(1/a); exact divides for the
        # exponents (approx reciprocal error would be amplified through the pow).
        eps = eps_ref[...]
        v = (1.0 - eps ** (1.0 / b)) ** (1.0 / a)

        # stick breaking: theta_k = v_k * prod_{j<k}(1 - v_j)
        # (log-space exclusive prefix product via a precomputed strict-upper mask)
        logp = jnp.log(jnp.maximum(1.0 - v, 1e-37))
        theta = v * jnp.exp(jnp.dot(logp, tri_ref[...], preferred_element_type=f32))

        theta2 = jnp.dot(theta, dep_ref[...], preferred_element_type=f32)
        # softmax over the size-1 depend2 axis is identically 1 -> row sum
        theta3 = jnp.sum(theta2, axis=1, keepdims=True)

        # ---- packed (BT, 128) slab; ts = mixture LHS occupies lanes [0, T_all)
        # so kernel B2 can read it as one contiguous slice.  These few narrow
        # stores are negligible next to the V-streamed traffic; the V-sized
        # outputs (beta chunks) are written with full-width unmasked stores.
        o_ref[:, 0:T] = eta[:, 0:1] * theta
        o_ref[:, T:T + T2] = eta[:, 1:2] * theta2
        o_ref[:, T + T2:T_all] = eta[:, 2:3] * theta3
        off = T_all
        o_ref[:, off:off + T] = a
        o_ref[:, off + T:off + 2 * T] = b
        o_ref[:, off + 2 * T:off + 3 * T] = theta
        o_ref[:, off + 3 * T:off + 3 * T + T2] = theta2
        o_ref[:, off + 3 * T + T2:off + 3 * T + T2 + 1] = theta3
        o_ref[:, off + 3 * T + T2 + 1:off + 3 * T + T2 + 2] = kld_gauss
        total = off + 3 * T + T2 + 2
        if o_ref.shape[1] > total:
            o_ref[:, total:] = jnp.zeros(
                (x_ref.shape[0], o_ref.shape[1] - total), f32)


# ----------------------------------------------------------------------------
# Kernel B2: mixture + reconstruction loss, streamed over V chunks.
# ----------------------------------------------------------------------------
def recon_kernel(packed_ref, beta_ref, x_ref, o_ref, *, T_all):
    k = pl.program_id(1)

    @pl.when(k == 0)
    def _():
        o_ref[...] = jnp.zeros_like(o_ref)

    ts = packed_ref[:, 0:T_all].astype(bf16)          # [eta0*theta|eta1*theta2|eta2*theta3]
    mix = jnp.dot(ts, beta_ref[...], preferred_element_type=f32)
    logmix = jnp.log(jnp.maximum(mix, 1e-30))         # clamp: avoid -inf * 0 = NaN
    o_ref[...] += -jnp.sum(logmix * x_ref[...].astype(f32), axis=1, keepdims=True)


# ----------------------------------------------------------------------------
# JAX glue
# ----------------------------------------------------------------------------
def Beta_fn(a, b):
    return jnp.exp(gammaln(a) + gammaln(b) - gammaln(a + b))


@functools.partial(jax.jit, static_argnames=("prior_alpha", "prior_beta"))
def ntsntm_forward(x, eps0, eps, prep, decay, prior_alpha, prior_beta):
    B, V = x.shape
    H = prep["mlp_b"].shape[1]
    T = prep["tri"].shape[0]
    T2 = prep["depend"].shape[1]
    T_all = T + T2 + 1
    HD = 2 * H + 2 * T

    vmem = _vmem_limit_bytes()

    # ---------------- tiling ----------------
    VC = min(1024, _round_up(V, 128))                 # vocab chunk (streamed)
    Vp = _round_up(V, VC)
    nvc = Vp // VC
    # >=16 sublanes (bf16 tiles) and >=2 batch tiles whenever B > 16 (megacore)
    BT = min(128, max(16, _round_up(pl.cdiv(B, 2), 16)))
    Bp = _round_up(B, BT)
    nbt = Bp // BT

    # ---------------- padding (V tail is masked in kernels A1/A2) -----------
    wv_t = prep["word_vec_t"]                         # (H, V) bf16
    mlp_w = prep["mlp_w_bf16"]                        # (V, H) bf16
    x_bf = x.astype(bf16)
    if Vp != V:
        x_bf = jnp.pad(x_bf, ((0, 0), (0, Vp - V)))
        wv_t = jnp.pad(wv_t, ((0, 0), (0, Vp - V)))
        mlp_w = jnp.pad(mlp_w, ((0, Vp - V), (0, 0)))
    if Bp != B:
        pad = Bp - B
        x_bf = jnp.pad(x_bf, ((0, pad), (0, 0)))
        eps0 = jnp.pad(eps0, ((0, pad), (0, 0)))
        eps = jnp.pad(eps, ((0, pad), (0, 0)), constant_values=0.5)

    # temperature = 0.05 / (decay + 1e-5); depend is divided by temperature
    depend_scaled = prep["depend"] * ((decay + 1e-5) / 0.05)

    # ---------------- kernel A1: logsumexp over V + depend softmax ----------
    lse, dep = pl.pallas_call(
        functools.partial(beta_lse_kernel, v_orig=V, vc=VC),
        out_shape=(jax.ShapeDtypeStruct((T_all, 1), f32),
                   jax.ShapeDtypeStruct((T, T2), f32)),
        grid=(nvc,),
        in_specs=[pl.BlockSpec((T_all, H), lambda k: (0, 0)),
                  pl.BlockSpec((H, VC), lambda k: (0, k)),
                  pl.BlockSpec((T, T2), lambda k: (0, 0))],
        out_specs=(pl.BlockSpec((T_all, 1), lambda k: (0, 0)),
                   pl.BlockSpec((T, T2), lambda k: (0, 0))),
        scratch_shapes=[pltpu.VMEM((T_all, 1), f32),
                        pltpu.VMEM((T_all, 1), f32)],
        compiler_params=pltpu.CompilerParams(
            dimension_semantics=("arbitrary",), vmem_limit_bytes=vmem),
    )(prep["topic_all"], wv_t, depend_scaled)

    # ---------------- kernel A2: write beta_all chunk by chunk --------------
    beta_all = pl.pallas_call(
        functools.partial(beta_write_kernel, v_orig=V, vc=VC),
        out_shape=jax.ShapeDtypeStruct((T_all, Vp), f32),
        grid=(nvc,),
        in_specs=[pl.BlockSpec((T_all, H), lambda k: (0, 0)),
                  pl.BlockSpec((H, VC), lambda k: (0, k)),
                  pl.BlockSpec((T_all, 1), lambda k: (0, 0))],
        out_specs=pl.BlockSpec((T_all, VC), lambda k: (0, k)),
        compiler_params=pltpu.CompilerParams(
            dimension_semantics=("parallel",), vmem_limit_bytes=vmem),
    )(prep["topic_all"], wv_t, lse)

    # ---------------- kernel B1: encoder (V-streamed) + decoder -------------
    total = T_all + 3 * T + T2 + 2                    # ts|a|b|theta|theta2|theta3|kld
    PACK = _round_up(total, 128)

    packed = pl.pallas_call(
        functools.partial(encdec_kernel, H=H, T=T, T2=T2),
        out_shape=jax.ShapeDtypeStruct((Bp, PACK), f32),
        grid=(nbt, nvc),
        in_specs=[
            pl.BlockSpec((BT, VC), lambda i, k: (i, k)),      # x (bf16)
            pl.BlockSpec((VC, H), lambda i, k: (k, 0)),       # mlp_w (bf16)
            pl.BlockSpec((BT, H), lambda i, k: (i, 0)),       # eps0
            pl.BlockSpec((BT, T), lambda i, k: (i, 0)),       # eps
            pl.BlockSpec((1, H), lambda i, k: (0, 0)),        # mlp_b
            pl.BlockSpec((H, HD), lambda i, k: (0, 0)),       # heads_w (mean|logsigm|a|b)
            pl.BlockSpec((1, HD), lambda i, k: (0, 0)),       # heads_b
            pl.BlockSpec((H, H), lambda i, k: (0, 0)),        # eta1_w
            pl.BlockSpec((1, H), lambda i, k: (0, 0)),        # eta1_b
            pl.BlockSpec((H, 3), lambda i, k: (0, 0)),        # eta2_w
            pl.BlockSpec((1, 3), lambda i, k: (0, 0)),        # eta2_b
            pl.BlockSpec((T, T2), lambda i, k: (0, 0)),       # dep = softmax(depend/temp)
            pl.BlockSpec((T, T), lambda i, k: (0, 0)),        # strict-upper mask
        ],
        out_specs=pl.BlockSpec((BT, PACK), lambda i, k: (i, 0)),
        scratch_shapes=[pltpu.VMEM((BT, H), f32)],
        compiler_params=pltpu.CompilerParams(
            dimension_semantics=("parallel", "arbitrary"),
            vmem_limit_bytes=vmem),
    )(x_bf, mlp_w, eps0, eps,
      prep["mlp_b"], prep["heads_w"], prep["heads_b"],
      prep["eta1_w"], prep["eta1_b"], prep["eta2_w"], prep["eta2_b"],
      dep, prep["tri"])

    # ---------------- kernel B2: mixture + reconstruction (V-streamed) ------
    recons = pl.pallas_call(
        functools.partial(recon_kernel, T_all=T_all),
        out_shape=jax.ShapeDtypeStruct((Bp, 1), f32),
        grid=(nbt, nvc),
        in_specs=[
            pl.BlockSpec((BT, PACK), lambda i, k: (i, 0)),    # packed slab
            pl.BlockSpec((T_all, VC), lambda i, k: (0, k)),   # beta_all (bf16)
            pl.BlockSpec((BT, VC), lambda i, k: (i, k)),      # x (bf16)
        ],
        out_specs=pl.BlockSpec((BT, 1), lambda i, k: (i, 0)),
        compiler_params=pltpu.CompilerParams(
            dimension_semantics=("parallel", "arbitrary"),
            vmem_limit_bytes=vmem),
    )(packed, beta_all.astype(bf16), x_bf)

    # ---------------- unpack ----------------
    off = T_all
    a = packed[:B, off:off + T]
    b = packed[:B, off + T:off + 2 * T]
    theta = packed[:B, off + 2 * T:off + 3 * T]
    theta2 = packed[:B, off + 3 * T:off + 3 * T + T2]
    theta3 = packed[:B, off + 3 * T + T2:off + 3 * T + T2 + 1]
    kld_gauss = packed[:B, off + 3 * T + T2 + 1]
    recons_loss = recons[:B, 0]

    beta = beta_all[0:T, :V]
    beta2 = beta_all[T:T + T2, :V]
    beta3 = beta_all[T + T2:T_all, :V]

    # ---- Kumaraswamy-Beta KL (lgamma/digamma: no Mosaic lowering -> plain JAX) ----
    kl = jnp.zeros_like(a)
    for m in range(1, 11):
        kl = kl + 1.0 / (m + a * b) * Beta_fn(m / a, b)
    kl = kl * (prior_beta - 1.0) * b
    psi_b = digamma(b)
    kl = kl + (a - prior_alpha) / a * (-0.57721 - psi_b - 1.0 / b)
    kl = kl + jnp.log(a * b) + jnp.log(
        jnp.exp(gammaln(jnp.float32(prior_alpha)) + gammaln(jnp.float32(prior_beta))
                - gammaln(jnp.float32(prior_alpha + prior_beta))))
    kl = kl + -(b - 1.0) / b
    kld = jnp.sum(kl, axis=1) + kld_gauss

    return (recons_loss, kld, [theta, theta2, theta3],
            prep["depend"], prep["depend2"], beta, beta2, beta3)


# ----------------------------------------------------------------------------
# Parameter construction (mirrors the module's __init__) + one-time prep
# ----------------------------------------------------------------------------
def init_params(key, V, H, T, T2, T3=1):
    ks = jax.random.split(key, 20)

    def linear(kw, kb, fan_in, fan_out):
        lim = 1.0 / math.sqrt(fan_in)
        w = jax.random.uniform(kw, (fan_in, fan_out), f32, -lim, lim)  # (in, out)
        b = jax.random.uniform(kb, (1, fan_out), f32, -lim, lim)
        return w, b

    p = {}
    p["mlp_w"], p["mlp_b"] = linear(ks[0], ks[1], V, H)
    p["a_w"], p["a_b"] = linear(ks[2], ks[3], H, T)
    p["b_w"], p["b_b"] = linear(ks[4], ks[5], H, T)
    p["mean_w"], p["mean_b"] = linear(ks[6], ks[7], H, H)
    p["logsigm_w"], p["logsigm_b"] = linear(ks[8], ks[9], H, H)
    p["eta1_w"], p["eta1_b"] = linear(ks[10], ks[11], H, H)
    p["eta2_w"], p["eta2_b"] = linear(ks[12], ks[13], H, 3)

    def uni(k, shape, fan_sum):
        lim = math.sqrt(6.0 / fan_sum)
        return jax.random.uniform(k, shape, f32, -lim, lim)

    p["word_vec"] = uni(ks[14], (V, H), V + H)
    p["topic_vec"] = uni(ks[15], (T, H), T + H)
    p["depend"] = uni(ks[16], (T, T2), T + T2)
    p["topic_vec2"] = uni(ks[17], (T2, H), T2 + H)
    p["depend2"] = uni(ks[18], (T2, T3), T2 + T3)
    p["topic_vec3"] = uni(ks[19], (T3, H), T3 + H)
    return p


def prepare_params(p):
    """One-time fusion / transposition / bf16 casts so the per-step forward
    does no re-layout."""
    prep = dict(p)
    prep["heads_w"] = jnp.concatenate(
        [p["mean_w"], p["logsigm_w"], p["a_w"], p["b_w"]], axis=1)       # (H, 2H+2T)
    prep["heads_b"] = jnp.concatenate(
        [p["mean_b"], p["logsigm_b"], p["a_b"], p["b_b"]], axis=1)       # (1, 2H+2T)
    prep["word_vec_t"] = jnp.transpose(p["word_vec"]).astype(bf16)       # (H, V) bf16
    prep["topic_all"] = jnp.concatenate(
        [p["topic_vec"], p["topic_vec2"], p["topic_vec3"]],
        axis=0).astype(bf16)                                             # (T+T2+1, H) bf16
    prep["mlp_w_bf16"] = p["mlp_w"].astype(bf16)                         # (V, H) bf16
    T = p["topic_vec"].shape[0]
    row = jnp.arange(T)[:, None]
    col = jnp.arange(T)[None, :]
    prep["tri"] = (row < col).astype(f32)                                # strict upper (T,T)
    return prep


if __name__ == "__main__":
    B, V, H, T, T2 = 32, 2048, 64, 16, 8
    prior_alpha, prior_beta = 1.0, 5.0
    decay = 1.0

    key = jax.random.PRNGKey(0)
    k_param, k_x, k_eps0, k_eps = jax.random.split(key, 4)

    params = init_params(k_param, V, H, T, T2)
    prep = prepare_params(params)

    # bag-of-words style input counts (exactly representable in bf16)
    x = jnp.floor(jax.random.uniform(k_x, (B, V), f32, 0.0, 4.0))
    eps0 = jax.random.normal(k_eps0, (B, H), f32)
    eps = jax.random.uniform(k_eps, (B, T), f32, 0.01, 0.99)

    out = ntsntm_forward(x, eps0, eps, prep, decay, prior_alpha, prior_beta)
    out = jax.block_until_ready(out)

    recons_loss, kld, thetas, depend, depend2, beta1, beta2, beta3 = out
    assert recons_loss.shape == (B,)
    assert kld.shape == (B,)
    assert thetas[0].shape == (B, T) and thetas[1].shape == (B, T2) and thetas[2].shape == (B, 1)
    assert beta1.shape == (T, V) and beta2.shape == (T2, V) and beta3.shape == (1, V)
    assert bool(jnp.all(jnp.isfinite(recons_loss))) and bool(jnp.all(jnp.isfinite(kld)))
    assert bool(jnp.all(jnp.isfinite(thetas[0]))) and bool(jnp.all(jnp.isfinite(beta1)))
    # beta rows are softmax rows -> should sum to ~1
    assert bool(jnp.all(jnp.abs(jnp.sum(beta1, axis=1) - 1.0) < 1e-2))
    print("KERNEL_OK")
</pallas_src>

<mosaic_0001>
module attributes {stable_mosaic.version = 11 : i64} {
  func.func @beta_lse_kernel(%arg0: i32, %arg1: memref<25x64xbf16, #tpu.memory_space<vmem>>, %arg2: memref<64x1024xbf16, #tpu.memory_space<vmem>>, %arg3: memref<16x8xf32, #tpu.memory_space<vmem>>, %arg4: memref<25x1xf32, #tpu.memory_space<vmem>>, %arg5: memref<16x8xf32, #tpu.memory_space<vmem>>, %arg6: memref<25x1xf32, #tpu.memory_space<vmem>>, %arg7: memref<25x1xf32, #tpu.memory_space<vmem>>) attributes {dimension_semantics = [#tpu.dimension_semantics<arbitrary>], iteration_bounds = array<i64: 2>, scalar_prefetch = 0 : i64, scratch_operands = 2 : i64, tpu.core_type = #tpu.core_type<tc>, window_params = [{pipeline_mode = #tpu.pipeline_mode<synchronous>, transform_indices = @transform_0, window_bounds = array<i64: 25, 64>}, {transform_indices = @transform_1, window_bounds = array<i64: 64, 1024>}, {pipeline_mode = #tpu.pipeline_mode<synchronous>, transform_indices = @transform_2, window_bounds = array<i64: 16, 8>}, {pipeline_mode = #tpu.pipeline_mode<synchronous>, transform_indices = @transform_3, window_bounds = array<i64: 25, 1>}, {pipeline_mode = #tpu.pipeline_mode<synchronous>, transform_indices = @transform_4, window_bounds = array<i64: 16, 8>}]} {
    %c0_i32 = arith.constant 0 : i32
    %0 = arith.cmpi eq, %arg0, %c0_i32 : i32
    %1 = arith.extui %0 : i1 to i32
    %c0_i32_0 = arith.constant 0 : i32
    %2 = arith.cmpi ne, %1, %c0_i32_0 : i32
    scf.if %2 {
      %cst_18 = arith.constant 0xFF800000 : f32
      %34 = vector.broadcast %cst_18 : f32 to vector<25x1xf32>
      %c0_19 = arith.constant 0 : index
      %c0_20 = arith.constant 0 : index
      %35 = vector.load %arg6[%c0_19, %c0_20] : memref<25x1xf32, #tpu.memory_space<vmem>>, vector<25x1xf32>
      tpu.vector_store %arg6[%c0_19, %c0_20], %34 {strides = array<i32>} : memref<25x1xf32, #tpu.memory_space<vmem>>, vector<25x1xf32>,
      %cst_21 = arith.constant 0.000000e+00 : f32
      %36 = vector.broadcast %cst_21 : f32 to vector<25x1xf32>
      %c0_22 = arith.constant 0 : index
      %c0_23 = arith.constant 0 : index
      %37 = vector.load %arg7[%c0_22, %c0_23] : memref<25x1xf32, #tpu.memory_space<vmem>>, vector<25x1xf32>
      tpu.vector_store %arg7[%c0_22, %c0_23], %36 {strides = array<i32>} : memref<25x1xf32, #tpu.memory_space<vmem>>, vector<25x1xf32>,
    } else {
    }
    %c0 = arith.constant 0 : index
    %c0_1 = arith.constant 0 : index
    %3 = vector.load %arg1[%c0, %c0_1] : memref<25x64xbf16, #tpu.memory_space<vmem>>, vector<25x64xbf16>
    %c0_2 = arith.constant 0 : index
    %c0_3 = arith.constant 0 : index
    %4 = vector.load %arg2[%c0_2, %c0_3] : memref<64x1024xbf16, #tpu.memory_space<vmem>>, vector<64x1024xbf16>
    %cst = arith.constant dense<0.000000e+00> : vector<25x1024xf32>
    %5 = tpu.matmul %3, %4, %cst {dimension_numbers = #tpu.dot_dimension_numbers<[1], [0], [0], [1], [0, 0, 1, 1], [], []>} : vector<25x64xbf16>, vector<64x1024xbf16>, vector<25x1024xf32> -> vector<25x1024xf32>
    %c1024_i32 = arith.constant 1024 : i32
    %6 = arith.muli %arg0, %c1024_i32 : i32
    %7 = tpu.iota {dimensions = array<i32: 1>} : vector<25x1024xi32>
    %8 = vector.broadcast %6 : i32 to vector<25x1024xi32>
    %9 = arith.addi %8, %7 : vector<25x1024xi32>
    %c2048_i32 = arith.constant 2048 : i32
    %10 = vector.broadcast %c2048_i32 : i32 to vector<25x1024xi32>
    %11 = arith.cmpi slt, %9, %10 : vector<25x1024xi32>
    %cst_4 = arith.constant 0xFF800000 : f32
    %12 = vector.broadcast %cst_4 : f32 to vector<25x1024xf32>
    %13 = arith.select %11, %5, %12 : vector<25x1024xi1>, vector<25x1024xf32>
    %c0_5 = arith.constant 0 : index
    %c0_6 = arith.constant 0 : index
    %14 = vector.load %arg6[%c0_5, %c0_6] : memref<25x1xf32, #tpu.memory_space<vmem>>, vector<25x1xf32>
    %cst_7 = arith.constant dense<0xFF800000> : vector<25xf32>
    %15 = vector.multi_reduction <maximumf>, %13, %cst_7 [1] : vector<25x1024xf32> to vector<25xf32>
    %16 = vector.shape_cast %15 : vector<25xf32> to vector<25x1xf32>
    %17 = arith.maximumf %14, %16 : vector<25x1xf32>
    %c0_8 = arith.constant 0 : index
    %c0_9 = arith.constant 0 : index
    %18 = vector.load %arg7[%c0_8, %c0_9] : memref<25x1xf32, #tpu.memory_space<vmem>>, vector<25x1xf32>
    %c0_10 = arith.constant 0 : index
    %c0_11 = arith.constant 0 : index
    %19 = vector.load %arg6[%c0_10, %c0_11] : memref<25x1xf32, #tpu.memory_space<vmem>>, vector<25x1xf32>
    %20 = arith.subf %19, %17 : vector<25x1xf32>
    %21 = math.exp %20 : vector<25x1xf32>
    %22 = arith.mulf %18, %21 : vector<25x1xf32>
    %23 = vector.broadcast %17 : vector<25x1xf32> to vector<25x1024xf32>
    %24 = arith.subf %13, %23 : vector<25x1024xf32>
    %25 = math.exp %24 : vector<25x1024xf32>
    %cst_12 = arith.constant dense<0.000000e+00> : vector<25xf32>
    %26 = vector.multi_reduction <add>, %25, %cst_12 [1] : vector<25x1024xf32> to vector<25xf32>
    %27 = vector.shape_cast %26 : vector<25xf32> to vector<25x1xf32>
    %28 = arith.addf %22, %27 : vector<25x1xf32>
    %c0_13 = arith.constant 0 : index
    %c0_14 = arith.constant 0 : index
    %29 = vector.load %arg7[%c0_13, %c0_14] : memref<25x1xf32, #tpu.memory_space<vmem>>, vector<25x1xf32>
    tpu.vector_store %arg7[%c0_13, %c0_14], %28 {strides = array<i32>} : memref<25x1xf32, #tpu.memory_space<vmem>>, vector<25x1xf32>,
    %c0_15 = arith.constant 0 : index
    %c0_16 = arith.constant 0 : index
    %30 = vector.load %arg6[%c0_15, %c0_16] : memref<25x1xf32, #tpu.memory_space<vmem>>, vector<25x1xf32>
    tpu.vector_store %arg6[%c0_15, %c0_16], %17 {strides = array<i32>} : memref<25x1xf32, #tpu.memory_space<vmem>>, vector<25x1xf32>,
    %c1_i32 = arith.constant 1 : i32
    %31 = arith.cmpi eq, %arg0, %c1_i32 : i32
    %32 = arith.extui %31 : i1 to i32
    %c0_i32_17 = arith.constant 0 : i32
    %33 = arith.cmpi ne, %32, %c0_i32_17 : i32
    scf.if %33 {
      %c0_18 = arith.constant 0 : index
      %c0_19 = arith.constant 0 : index
      %34 = vector.load %arg6[%c0_18, %c0_19] : memref<25x1xf32, #tpu.memory_space<vmem>>, vector<25x1xf32>
      %c0_20 = arith.constant 0 : index
      %c0_21 = arith.constant 0 : index
      %35 = vector.load %arg7[%c0_20, %c0_21] : memref<25x1xf32, #tpu.memory_space<vmem>>, vector<25x1xf32>
      %36 = math.log %35 : vector<25x1xf32>
      %37 = arith.addf %34, %36 : vector<25x1xf32>
      %c0_22 = arith.constant 0 : index
      %c0_23 = arith.constant 0 : index
      %38 = vector.load %arg4[%c0_22, %c0_23] : memref<25x1xf32, #tpu.memory_space<vmem>>, vector<25x1xf32>
      tpu.vector_store %arg4[%c0_22, %c0_23], %37 {strides = array<i32>} : memref<25x1xf32, #tpu.memory_space<vmem>>, vector<25x1xf32>,
      %c0_24 = arith.constant 0 : index
      %c0_25 = arith.constant 0 : index
      %39 = vector.load %arg3[%c0_24, %c0_25] : memref<16x8xf32, #tpu.memory_space<vmem>>, vector<16x8xf32>
      %cst_26 = arith.constant dense<0xFF800000> : vector<16xf32>
      %40 = vector.multi_reduction <maximumf>, %39, %cst_26 [1] : vector<16x8xf32> to vector<16xf32>
      %41 = vector.shape_cast %40 : vector<16xf32> to vector<16x1xf32>
      %42 = vector.broadcast %41 : vector<16x1xf32> to vector<16x8xf32>
      %43 = arith.subf %39, %42 : vector<16x8xf32>
      %44 = math.exp %43 : vector<16x8xf32>
      %cst_27 = arith.constant dense<0.000000e+00> : vector<16xf32>
      %45 = vector.multi_reduction <add>, %44, %cst_27 [1] : vector<16x8xf32> to vector<16xf32>
      %46 = vector.shape_cast %45 : vector<16xf32> to vector<16x1xf32>
      %47 = vector.broadcast %46 : vector<16x1xf32> to vector<16x8xf32>
      %48 = arith.divf %44, %47 : vector<16x8xf32>
      %c0_28 = arith.constant 0 : index
      %c0_29 = arith.constant 0 : index
      %49 = vector.load %arg5[%c0_28, %c0_29] : memref<16x8xf32, #tpu.memory_space<vmem>>, vector<16x8xf32>
      tpu.vector_store %arg5[%c0_28, %c0_29], %48 {strides = array<i32>} : memref<16x8xf32, #tpu.memory_space<vmem>>, vector<16x8xf32>,
    } else {
    }
    return
  }
  func.func @transform_0(%arg0: i32) -> (i32, i32) {
    %c0_i32 = arith.constant 0 : i32
    %c0_i32_0 = arith.constant 0 : i32
    %c0_i32_1 = arith.constant 0 : i32
    return %c0_i32, %c0_i32_0 : i32, i32
  }
  func.func @transform_1(%arg0: i32) -> (i32, i32) {
    %c0_i32 = arith.constant 0 : i32
    %c0_i32_0 = arith.constant 0 : i32
    return %c0_i32, %arg0 : i32, i32
  }
  func.func @transform_2(%arg0: i32) -> (i32, i32) {
    %c0_i32 = arith.constant 0 : i32
    %c0_i32_0 = arith.constant 0 : i32
    %c0_i32_1 = arith.constant 0 : i32
    return %c0_i32, %c0_i32_0 : i32, i32
  }
  func.func @transform_3(%arg0: i32) -> (i32, i32) {
    %c0_i32 = arith.constant 0 : i32
    %c0_i32_0 = arith.constant 0 : i32
    %c0_i32_1 = arith.constant 0 : i32
    return %c0_i32, %c0_i32_0 : i32, i32
  }
  func.func @transform_4(%arg0: i32) -> (i32, i32) {
    %c0_i32 = arith.constant 0 : i32
    %c0_i32_0 = arith.constant 0 : i32
    %c0_i32_1 = arith.constant 0 : i32
    return %c0_i32, %c0_i32_0 : i32, i32
  }
}

module attributes {stable_mosaic.version = 11 : i64} {
  func.func @encdec_kernel(%arg0: i32, %arg1: i32, %arg2: memref<16x1024xbf16, #tpu.memory_space<vmem>>, %arg3: memref<1024x64xbf16, #tpu.memory_space<vmem>>, %arg4: memref<16x64xf32, #tpu.memory_space<vmem>>, %arg5: memref<16x16xf32, #tpu.memory_space<vmem>>, %arg6: memref<1x64xf32, #tpu.memory_space<vmem>>, %arg7: memref<64x160xf32, #tpu.memory_space<vmem>>, %arg8: memref<1x160xf32, #tpu.memory_space<vmem>>, %arg9: memref<64x64xf32, #tpu.memory_space<vmem>>, %arg10: memref<1x64xf32, #tpu.memory_space<vmem>>, %arg11: memref<64x3xf32, #tpu.memory_space<vmem>>, %arg12: memref<1x3xf32, #tpu.memory_space<vmem>>, %arg13: memref<16x8xf32, #tpu.memory_space<vmem>>, %arg14: memref<16x16xf32, #tpu.memory_space<vmem>>, %arg15: memref<16x128xf32, #tpu.memory_space<vmem>>, %arg16: memref<16x64xf32, #tpu.memory_space<vmem>>) attributes {dimension_semantics = [#tpu.dimension_semantics<parallel>, #tpu.dimension_semantics<arbitrary>], iteration_bounds = array<i64: 2, 2>, scalar_prefetch = 0 : i64, scratch_operands = 1 : i64, tpu.core_type = #tpu.core_type<tc>, window_params = [{transform_indices = @transform_0, window_bounds = array<i64: 16, 1024>}, {transform_indices = @transform_1, window_bounds = array<i64: 1024, 64>}, {transform_indices = @transform_2, window_bounds = array<i64: 16, 64>}, {transform_indices = @transform_3, window_bounds = array<i64: 16, 16>}, {pipeline_mode = #tpu.pipeline_mode<synchronous>, transform_indices = @transform_4, window_bounds = array<i64: 1, 64>}, {pipeline_mode = #tpu.pipeline_mode<synchronous>, transform_indices = @transform_5, window_bounds = array<i64: 64, 160>}, {pipeline_mode = #tpu.pipeline_mode<synchronous>, transform_indices = @transform_6, window_bounds = array<i64: 1, 160>}, {pipeline_mode = #tpu.pipeline_mode<synchronous>, transform_indices = @transform_7, window_bounds = array<i64: 64, 64>}, {pipeline_mode = #tpu.pipeline_mode<synchronous>, transform_indices = @transform_8, window_bounds = array<i64: 1, 64>}, {pipeline_mode = #tpu.pipeline_mode<synchronous>, transform_indices = @transform_9, window_bounds = array<i64: 64, 3>}, {pipeline_mode = #tpu.pipeline_mode<synchronous>, transform_indices = @transform_10, window_bounds = array<i64: 1, 3>}, {pipeline_mode = #tpu.pipeline_mode<synchronous>, transform_indices = @transform_11, window_bounds = array<i64: 16, 8>}, {pipeline_mode = #tpu.pipeline_mode<synchronous>, transform_indices = @transform_12, window_bounds = array<i64: 16, 16>}, {transform_indices = @transform_13, window_bounds = array<i64: 16, 128>}]} {
    %c0_i32 = arith.constant 0 : i32
    %0 = arith.cmpi eq, %arg1, %c0_i32 : i32
    %1 = arith.extui %0 : i1 to i32
    %c0_i32_0 = arith.constant 0 : i32
    %2 = arith.cmpi ne, %1, %c0_i32_0 : i32
    scf.if %2 {
      %cst_9 = arith.constant 0.000000e+00 : f32
      %12 = vector.broadcast %cst_9 : f32 to vector<16x64xf32>
      %c0_10 = arith.constant 0 : index
      %c0_11 = arith.constant 0 : index
      %13 = vector.load %arg16[%c0_10, %c0_11] : memref<16x64xf32, #tpu.memory_space<vmem>>, vector<16x64xf32>
      tpu.vector_store %arg16[%c0_10, %c0_11], %12 {strides = array<i32>} : memref<16x64xf32, #tpu.memory_space<vmem>>, vector<16x64xf32>,
    } else {
    }
    %c0 = arith.constant 0 : index
    %c0_1 = arith.constant 0 : index
    %3 = vector.load %arg16[%c0, %c0_1] : memref<16x64xf32, #tpu.memory_space<vmem>>, vector<16x64xf32>
    %c0_2 = arith.constant 0 : index
    %c0_3 = arith.constant 0 : index
    %4 = vector.load %arg2[%c0_2, %c0_3] : memref<16x1024xbf16, #tpu.memory_space<vmem>>, vector<16x1024xbf16>
    %c0_4 = arith.constant 0 : index
    %c0_5 = arith.constant 0 : index
    %5 = vector.load %arg3[%c0_4, %c0_5] : memref<1024x64xbf16, #tpu.memory_space<vmem>>, vector<1024x64xbf16>
    %cst = arith.constant dense<0.000000e+00> : vector<16x64xf32>
    %6 = tpu.matmul %4, %5, %cst {dimension_numbers = #tpu.dot_dimension_numbers<[1], [0], [0], [1], [0, 0, 1, 1], [], []>} : vector<16x1024xbf16>, vector<1024x64xbf16>, vector<16x64xf32> -> vector<16x64xf32>
    %7 = arith.addf %3, %6 : vector<16x64xf32>
    %c0_6 = arith.constant 0 : index
    %c0_7 = arith.constant 0 : index
    %8 = vector.load %arg16[%c0_6, %c0_7] : memref<16x64xf32, #tpu.memory_space<vmem>>, vector<16x64xf32>
    tpu.vector_store %arg16[%c0_6, %c0_7], %7 {strides = array<i32>} : memref<16x64xf32, #tpu.memory_space<vmem>>, vector<16x64xf32>,
    %c1_i32 = arith.constant 1 : i32
    %9 = arith.cmpi eq, %arg1, %c1_i32 : i32
    %10 = arith.extui %9 : i1 to i32
    %c0_i32_8 = arith.constant 0 : i32
    %11 = arith.cmpi ne, %10, %c0_i32_8 : i32
    scf.if %11 {
      %c0_9 = arith.constant 0 : index
      %c0_10 = arith.constant 0 : index
      %12 = vector.load %arg16[%c0_9, %c0_10] : memref<16x64xf32, #tpu.memory_space<vmem>>, vector<16x64xf32>
      %c0_11 = arith.constant 0 : index
      %c0_12 = arith.constant 0 : index
      %13 = vector.load %arg6[%c0_11, %c0_12] : memref<1x64xf32, #tpu.memory_space<vmem>>, vector<1x64xf32>
      %14 = vector.broadcast %13 : vector<1x64xf32> to vector<16x64xf32>
      %15 = arith.addf %12, %14 : vector<16x64xf32>
      %16 = math.tanh %15 : vector<16x64xf32>
      %c0_13 = arith.constant 0 : index
      %c0_14 = arith.constant 0 : index
      %17 = vector.load %arg7[%c0_13, %c0_14] : memref<64x160xf32, #tpu.memory_space<vmem>>, vector<64x160xf32>
      %cst_15 = arith.constant dense<0.000000e+00> : vector<16x160xf32>
      %18 = tpu.matmul %16, %17, %cst_15 {dimension_numbers = #tpu.dot_dimension_numbers<[1], [0], [0], [1], [0, 0, 1, 1], [], []>} : vector<16x64xf32>, vector<64x160xf32>, vector<16x160xf32> -> vector<16x160xf32>
      %c0_16 = arith.constant 0 : index
      %c0_17 = arith.constant 0 : index
      %19 = vector.load %arg8[%c0_16, %c0_17] : memref<1x160xf32, #tpu.memory_space<vmem>>, vector<1x160xf32>
      %20 = vector.broadcast %19 : vector<1x160xf32> to vector<16x160xf32>
      %21 = arith.addf %18, %20 : vector<16x160xf32>
      %22 = vector.extract_strided_slice %21 {offsets = [0, 0], sizes = [16, 64], strides = [1, 1]} : vector<16x160xf32> to vector<16x64xf32>
      %23 = vector.extract_strided_slice %21 {offsets = [0, 64], sizes = [16, 64], strides = [1, 1]} : vector<16x160xf32> to vector<16x64xf32>
      %24 = vector.extract_strided_slice %21 {offsets = [0, 128], sizes = [16, 16], strides = [1, 1]} : vector<16x160xf32> to vector<16x16xf32>
      %cst_18 = arith.constant 0.000000e+00 : f32
      %25 = vector.broadcast %cst_18 : f32 to vector<16x16xf32>
      %26 = arith.maximumf %24, %25 : vector<16x16xf32>
      %27 = vector.broadcast %cst_18 : f32 to vector<16x16xf32>
      %28 = arith.subf %24, %27 : vector<16x16xf32>
      %29 = arith.cmpf one, %28, %28 : vector<16x16xf32>
      %30 = vector.broadcast %cst_18 : f32 to vector<16x16xf32>
      %31 = arith.addf %24, %30 : vector<16x16xf32>
      %32 = math.absf %28 : vector<16x16xf32>
      %cst_19 = arith.constant 0.000000e+00 : f32
      %33 = vector.broadcast %cst_19 : f32 to vector<16x16xf32>
      %34 = arith.subf %33, %32 : vector<16x16xf32>
      %35 = math.exp %34 : vector<16x16xf32>
      %36 = math.log1p %35 : vector<16x16xf32>
      %37 = arith.addf %26, %36 : vector<16x16xf32>
      %38 = arith.select %29, %31, %37 : vector<16x16xi1>, vector<16x16xf32>
      %39 = vector.extract_strided_slice %21 {offsets = [0, 144], sizes = [16, 16], strides = [1, 1]} : vector<16x160xf32> to vector<16x16xf32>
      %cst_20 = arith.constant 0.000000e+00 : f32
      %40 = vector.broadcast %cst_20 : f32 to vector<16x16xf32>
      %41 = arith.maximumf %39, %40 : vector<16x16xf32>
      %42 = vector.broadcast %cst_20 : f32 to vector<16x16xf32>
      %43 = arith.subf %39, %42 : vector<16x16xf32>
      %44 = arith.cmpf one, %43, %43 : vector<16x16xf32>
      %45 = vector.broadcast %cst_20 : f32 to vector<16x16xf32>
      %46 = arith.addf %39, %45 : vector<16x16xf32>
      %47 = math.absf %43 : vector<16x16xf32>
      %cst_21 = arith.constant 0.000000e+00 : f32
      %48 = vector.broadcast %cst_21 : f32 to vector<16x16xf32>
      %49 = arith.subf %48, %47 : vector<16x16xf32>
      %50 = math.exp %49 : vector<16x16xf32>
      %51 = math.log1p %50 : vector<16x16xf32>
      %52 = arith.addf %41, %51 : vector<16x16xf32>
      %53 = arith.select %44, %46, %52 : vector<16x16xi1>, vector<16x16xf32>
      %54 = arith.mulf %22, %22 : vector<16x64xf32>
      %cst_22 = arith.constant 1.000000e+00 : f32
      %55 = vector.broadcast %cst_22 : f32 to vector<16x64xf32>
      %56 = arith.subf %55, %54 : vector<16x64xf32>
      %cst_23 = arith.constant 2.000000e+00 : f32
      %57 = vector.broadcast %cst_23 : f32 to vector<16x64xf32>
      %58 = arith.mulf %57, %23 : vector<16x64xf32>
      %59 = arith.addf %56, %58 : vector<16x64xf32>
      %cst_24 = arith.constant 2.000000e+00 : f32
      %60 = vector.broadcast %cst_24 : f32 to vector<16x64xf32>
      %61 = arith.mulf %60, %23 : vector<16x64xf32>
      %62 = math.exp %61 : vector<16x64xf32>
      %63 = arith.subf %59, %62 : vector<16x64xf32>
      %cst_25 = arith.constant dense<0.000000e+00> : vector<16xf32>
      %64 = vector.multi_reduction <add>, %63, %cst_25 [1] : vector<16x64xf32> to vector<16xf32>
      %65 = vector.shape_cast %64 : vector<16xf32> to vector<16x1xf32>
      %cst_26 = arith.constant -5.000000e-01 : f32
      %66 = vector.broadcast %cst_26 : f32 to vector<16x1xf32>
      %67 = arith.mulf %66, %65 : vector<16x1xf32>
      %68 = math.exp %23 : vector<16x64xf32>
      %c0_27 = arith.constant 0 : index
      %c0_28 = arith.constant 0 : index
      %69 = vector.load %arg4[%c0_27, %c0_28] : memref<16x64xf32, #tpu.memory_space<vmem>>, vector<16x64xf32>
      %70 = arith.mulf %68, %69 : vector<16x64xf32>
      %71 = arith.addf %70, %22 : vector<16x64xf32>
      %c0_29 = arith.constant 0 : index
      %c0_30 = arith.constant 0 : index
      %72 = vector.load %arg9[%c0_29, %c0_30] : memref<64x64xf32, #tpu.memory_space<vmem>>, vector<64x64xf32>
      %cst_31 = arith.constant dense<0.000000e+00> : vector<16x64xf32>
      %73 = tpu.matmul %71, %72, %cst_31 {dimension_numbers = #tpu.dot_dimension_numbers<[1], [0], [0], [1], [0, 0, 1, 1], [], []>} : vector<16x64xf32>, vector<64x64xf32>, vector<16x64xf32> -> vector<16x64xf32>
      %c0_32 = arith.constant 0 : index
      %c0_33 = arith.constant 0 : index
      %74 = vector.load %arg10[%c0_32, %c0_33] : memref<1x64xf32, #tpu.memory_space<vmem>>, vector<1x64xf32>
      %75 = vector.broadcast %74 : vector<1x64xf32> to vector<16x64xf32>
      %76 = arith.addf %73, %75 : vector<16x64xf32>
      %77 = math.tanh %76 : vector<16x64xf32>
      %c0_34 = arith.constant 0 : index
      %c0_35 = arith.constant 0 : index
      %78 = vector.load %arg11[%c0_34, %c0_35] : memref<64x3xf32, #tpu.memory_space<vmem>>, vector<64x3xf32>
      %cst_36 = arith.constant dense<0.000000e+00> : vector<16x3xf32>
      %79 = tpu.matmul %77, %78, %cst_36 {dimension_numbers = #tpu.dot_dimension_numbers<[1], [0], [0], [1], [0, 0, 1, 1], [], []>} : vector<16x64xf32>, vector<64x3xf32>, vector<16x3xf32> -> vector<16x3xf32>
      %c0_37 = arith.constant 0 : index
      %c0_38 = arith.constant 0 : index
      %80 = vector.load %arg12[%c0_37, %c0_38] : memref<1x3xf32, #tpu.memory_space<vmem>>, vector<1x3xf32>
      %81 = vector.broadcast %80 : vector<1x3xf32> to vector<16x3xf32>
      %82 = arith.addf %79, %81 : vector<16x3xf32>
      %83 = math.tanh %82 : vector<16x3xf32>
      %cst_39 = arith.constant dense<0xFF800000> : vector<16xf32>
      %84 = vector.multi_reduction <maximumf>, %83, %cst_39 [1] : vector<16x3xf32> to vector<16xf32>
      %85 = vector.shape_cast %84 : vector<16xf32> to vector<16x1xf32>
      %86 = vector.broadcast %85 : vector<16x1xf32> to vector<16x3xf32>
      %87 = arith.subf %83, %86 : vector<16x3xf32>
      %88 = math.exp %87 : vector<16x3xf32>
      %cst_40 = arith.constant dense<0.000000e+00> : vector<16xf32>
      %89 = vector.multi_reduction <add>, %88, %cst_40 [1] : vector<16x3xf32> to vector<16xf32>
      %90 = vector.shape_cast %89 : vector<16xf32> to vector<16x1xf32>
      %91 = vector.broadcast %90 : vector<16x1xf32> to vector<16x3xf32>
      %92 = arith.divf %88, %91 : vector<16x3xf32>
      %c0_41 = arith.constant 0 : index
      %c0_42 = arith.constant 0 : index
      %93 = vector.load %arg5[%c0_41, %c0_42] : memref<16x16xf32, #tpu.memory_space<vmem>>, vector<16x16xf32>
      %cst_43 = arith.constant 1.000000e+00 : f32
      %94 = vector.broadcast %cst_43 : f32 to vector<16x16xf32>
      %95 = arith.divf %94, %53 : vector<16x16xf32>
      %96 = math.powf %93, %95 : vector<16x16xf32>
      %cst_44 = arith.constant 1.000000e+00 : f32
      %97 = vector.broadcast %cst_44 : f32 to vector<16x16xf32>
      %98 = arith.subf %97, %96 : vector<16x16xf32>
      %cst_45 = arith.constant 1.000000e+00 : f32
      %99 = vector.broadcast %cst_45 : f32 to vector<16x16xf32>
      %100 = arith.divf %99, %38 : vector<16x16xf32>
      %101 = math.powf %98, %100 : vector<16x16xf32>
      %cst_46 = arith.constant 1.000000e+00 : f32
      %102 = vector.broadcast %cst_46 : f32 to vector<16x16xf32>
      %103 = arith.subf %102, %101 : vector<16x16xf32>
      %cst_47 = arith.constant 9.99999991E-38 : f32
      %104 = vector.broadcast %cst_47 : f32 to vector<16x16xf32>
      %105 = arith.maximumf %103, %104 : vector<16x16xf32>
      %106 = math.log %105 : vector<16x16xf32>
      %c0_48 = arith.constant 0 : index
      %c0_49 = arith.constant 0 : index
      %107 = vector.load %arg14[%c0_48, %c0_49] : memref<16x16xf32, #tpu.memory_space<vmem>>, vector<16x16xf32>
      %cst_50 = arith.constant dense<0.000000e+00> : vector<16x16xf32>
      %108 = tpu.matmul %106, %107, %cst_50 {dimension_numbers = #tpu.dot_dimension_numbers<[1], [0], [0], [1], [0, 0, 1, 1], [], []>} : vector<16x16xf32>, vector<16x16xf32>, vector<16x16xf32> -> vector<16x16xf32>
      %109 = math.exp %108 : vector<16x16xf32>
      %110 = arith.mulf %101, %109 : vector<16x16xf32>
      %c0_51 = arith.constant 0 : index
      %c0_52 = arith.constant 0 : index
      %111 = vector.load %arg13[%c0_51, %c0_52] : memref<16x8xf32, #tpu.memory_space<vmem>>, vector<16x8xf32>
      %cst_53 = arith.constant dense<0.000000e+00> : vector<16x8xf32>
      %112 = tpu.matmul %110, %111, %cst_53 {dimension_numbers = #tpu.dot_dimension_numbers<[1], [0], [0], [1], [0, 0, 1, 1], [], []>} : vector<16x16xf32>, vector<16x8xf32>, vector<16x8xf32> -> vector<16x8xf32>
      %cst_54 = arith.constant dense<0.000000e+00> : vector<16xf32>
      %113 = vector.multi_reduction <add>, %112, %cst_54 [1] : vector<16x8xf32> to vector<16xf32>
      %114 = vector.shape_cast %113 : vector<16xf32> to vector<16x1xf32>
      %115 = vector.extract_strided_slice %92 {offsets = [0, 0], sizes = [16, 1], strides = [1, 1]} : vector<16x3xf32> to vector<16x1xf32>
      %116 = vector.broadcast %115 : vector<16x1xf32> to vector<16x16xf32>
      %117 = arith.mulf %116, %110 : vector<16x16xf32>
      %c0_55 = arith.constant 0 : index
      %c0_56 = arith.constant 0 : index
      %118 = vector.load %arg15[%c0_55, %c0_56] : memref<16x128xf32, #tpu.memory_space<vmem>>, vector<16x16xf32>
      tpu.vector_store %arg15[%c0_55, %c0_56], %117 {strides = array<i32>} : memref<16x128xf32, #tpu.memory_space<vmem>>, vector<16x16xf32>,
      %119 = vector.extract_strided_slice %92 {offsets = [0, 1], sizes = [16, 1], strides = [1, 1]} : vector<16x3xf32> to vector<16x1xf32>
      %120 = vector.broadcast %119 : vector<16x1xf32> to vector<16x8xf32>
      %121 = arith.mulf %120, %112 : vector<16x8xf32>
      %c0_57 = arith.constant 0 : index
      %c16 = arith.constant 16 : index
      %122 = vector.load %arg15[%c0_57, %c16] : memref<16x128xf32, #tpu.memory_space<vmem>>, vector<16x8xf32>
      tpu.vector_store %arg15[%c0_57, %c16], %121 {strides = array<i32>} : memref<16x128xf32, #tpu.memory_space<vmem>>, vector<16x8xf32>,
      %123 = vector.extract_strided_slice %92 {offsets = [0, 2], sizes = [16, 1], strides = [1, 1]} : vector<16x3xf32> to vector<16x1xf32>
      %124 = arith.mulf %123, %114 : vector<16x1xf32>
      %c0_58 = arith.constant 0 : index
      %c24 = arith.constant 24 : index
      %125 = vector.load %arg15[%c0_58, %c24] : memref<16x128xf32, #tpu.memory_space<vmem>>, vector<16x1xf32>
      tpu.vector_store %arg15[%c0_58, %c24], %124 {strides = array<i32>} : memref<16x128xf32, #tpu.memory_space<vmem>>, vector<16x1xf32>,
      %c0_59 = arith.constant 0 : index
      %c25 = arith.constant 25 : index
      %126 = vector.load %arg15[%c0_59, %c25] : memref<16x128xf32, #tpu.memory_space<vmem>>, vector<16x16xf32>
      tpu.vector_store %arg15[%c0_59, %c25], %38 {strides = array<i32>} : memref<16x128xf32, #tpu.memory_space<vmem>>, vector<16x16xf32>,
      %c0_60 = arith.constant 0 : index
      %c41 = arith.constant 41 : index
      %127 = vector.load %arg15[%c0_60, %c41] : memref<16x128xf32, #tpu.memory_space<vmem>>, vector<16x16xf32>
      tpu.vector_store %arg15[%c0_60, %c41], %53 {strides = array<i32>} : memref<16x128xf32, #tpu.memory_space<vmem>>, vector<16x16xf32>,
      %c0_61 = arith.constant 0 : index
      %c57 = arith.constant 57 : index
      %128 = vector.load %arg15[%c0_61, %c57] : memref<16x128xf32, #tpu.memory_space<vmem>>, vector<16x16xf32>
      tpu.vector_store %arg15[%c0_61, %c57], %110 {strides = array<i32>} : memref<16x128xf32, #tpu.memory_space<vmem>>, vector<16x16xf32>,
      %c0_62 = arith.constant 0 : index
      %c73 = arith.constant 73 : index
      %129 = vector.load %arg15[%c0_62, %c73] : memref<16x128xf32, #tpu.memory_space<vmem>>, vector<16x8xf32>
      tpu.vector_store %arg15[%c0_62, %c73], %112 {strides = array<i32>} : memref<16x128xf32, #tpu.memory_space<vmem>>, vector<16x8xf32>,
      %c0_63 = arith.constant 0 : index
      %c81 = arith.constant 81 : index
      %130 = vector.load %arg15[%c0_63, %c81] : memref<16x128xf32, #tpu.memory_space<vmem>>, vector<16x1xf32>
      tpu.vector_store %arg15[%c0_63, %c81], %114 {strides = array<i32>} : memref<16x128xf32, #tpu.memory_space<vmem>>, vector<16x1xf32>,
      %c0_64 = arith.constant 0 : index
      %c82 = arith.constant 82 : index
      %131 = vector.load %arg15[%c0_64, %c82] : memref<16x128xf32, #tpu.memory_space<vmem>>, vector<16x1xf32>
      tpu.vector_store %arg15[%c0_64, %c82], %67 {strides = array<i32>} : memref<16x128xf32, #tpu.memory_space<vmem>>, vector<16x1xf32>,
      %cst_65 = arith.constant 0.000000e+00 : f32
      %132 = vector.broadcast %cst_65 : f32 to vector<16x45xf32>
      %c0_66 = arith.constant 0 : index
      %c83 = arith.constant 83 : index
      %133 = vector.load %arg15[%c0_66, %c83] : memref<16x128xf32, #tpu.memory_space<vmem>>, vector<16x45xf32>
      tpu.vector_store %arg15[%c0_66, %c83], %132 {strides = array<i32>} : memref<16x128xf32, #tpu.memory_space<vmem>>, vector<16x45xf32>,
    } else {
    }
    return
  }
  func.func @transform_0(%arg0: i32, %arg1: i32) -> (i32, i32) {
    %c0_i32 = arith.constant 0 : i32
    return %arg0, %arg1 : i32, i32
  }
  func.func @transform_1(%arg0: i32, %arg1: i32) -> (i32, i32) {
    %c0_i32 = arith.constant 0 : i32
    %c0_i32_0 = arith.constant 0 : i32
    return %arg1, %c0_i32 : i32, i32
  }
  func.func @transform_2(%arg0: i32, %arg1: i32) -> (i32, i32) {
    %c0_i32 = arith.constant 0 : i32
    %c0_i32_0 = arith.constant 0 : i32
    return %arg0, %c0_i32 : i32, i32
  }
  func.func @transform_3(%arg0: i32, %arg1: i32) -> (i32, i32) {
    %c0_i32 = arith.constant 0 : i32
    %c0_i32_0 = arith.constant 0 : i32
    return %arg0, %c0_i32 : i32, i32
  }
  func.func @transform_4(%arg0: i32, %arg1: i32) -> (i32, i32) {
    %c0_i32 = arith.constant 0 : i32
    %c0_i32_0 = arith.constant 0 : i32
    %c0_i32_1 = arith.constant 0 : i32
    return %c0_i32, %c0_i32_0 : i32, i32
  }
  func.func @transform_5(%arg0: i32, %arg1: i32) -> (i32, i32) {
    %c0_i32 = arith.constant 0 : i32
    %c0_i32_0 = arith.constant 0 : i32
    %c0_i32_1 = arith.constant 0 : i32
    return %c0_i32, %c0_i32_0 : i32, i32
  }
  func.func @transform_6(%arg0: i32, %arg1: i32) -> (i32, i32) {
    %c0_i32 = arith.constant 0 : i32
    %c0_i32_0 = arith.constant 0 : i32
    %c0_i32_1 = arith.constant 0 : i32
    return %c0_i32, %c0_i32_0 : i32, i32
  }
  func.func @transform_7(%arg0: i32, %arg1: i32) -> (i32, i32) {
    %c0_i32 = arith.constant 0 : i32
    %c0_i32_0 = arith.constant 0 : i32
    %c0_i32_1 = arith.constant 0 : i32
    return %c0_i32, %c0_i32_0 : i32, i32
  }
  func.func @transform_8(%arg0: i32, %arg1: i32) -> (i32, i32) {
    %c0_i32 = arith.constant 0 : i32
    %c0_i32_0 = arith.constant 0 : i32
    %c0_i32_1 = arith.constant 0 : i32
    return %c0_i32, %c0_i32_0 : i32, i32
  }
  func.func @transform_9(%arg0: i32, %arg1: i32) -> (i32, i32) {
    %c0_i32 = arith.constant 0 : i32
    %c0_i32_0 = arith.constant 0 : i32
    %c0_i32_1 = arith.constant 0 : i32
    return %c0_i32, %c0_i32_0 : i32, i32
  }
  func.func @transform_10(%arg0: i32, %arg1: i32) -> (i32, i32) {
    %c0_i32 = arith.constant 0 : i32
    %c0_i32_0 = arith.constant 0 : i32
    %c0_i32_1 = arith.constant 0 : i32
    return %c0_i32, %c0_i32_0 : i32, i32
  }
  func.func @transform_11(%arg0: i32, %arg1: i32) -> (i32, i32) {
    %c0_i32 = arith.constant 0 : i32
    %c0_i32_0 = arith.constant 0 : i32
    %c0_i32_1 = arith.constant 0 : i32
    return %c0_i32, %c0_i32_0 : i32, i32
  }
  func.func @transform_12(%arg0: i32, %arg1: i32) -> (i32, i32) {
    %c0_i32 = arith.constant 0 : i32
    %c0_i32_0 = arith.constant 0 : i32
    %c0_i32_1 = arith.constant 0 : i32
    return %c0_i32, %c0_i32_0 : i32, i32
  }
  func.func @transform_13(%arg0: i32, %arg1: i32) -> (i32, i32) {
    %c0_i32 = arith.constant 0 : i32
    %c0_i32_0 = arith.constant 0 : i32
    return %arg0, %c0_i32 : i32, i32
  }
}

module attributes {stable_mosaic.version = 11 : i64} {
  func.func @beta_write_kernel(%arg0: i32, %arg1: memref<25x64xbf16, #tpu.memory_space<vmem>>, %arg2: memref<64x1024xbf16, #tpu.memory_space<vmem>>, %arg3: memref<25x1xf32, #tpu.memory_space<vmem>>, %arg4: memref<25x1024xf32, #tpu.memory_space<vmem>>) attributes {dimension_semantics = [#tpu.dimension_semantics<parallel>], iteration_bounds = array<i64: 2>, scalar_prefetch = 0 : i64, scratch_operands = 0 : i64, tpu.core_type = #tpu.core_type<tc>, window_params = [{pipeline_mode = #tpu.pipeline_mode<synchronous>, transform_indices = @transform_0, window_bounds = array<i64: 25, 64>}, {transform_indices = @transform_1, window_bounds = array<i64: 64, 1024>}, {pipeline_mode = #tpu.pipeline_mode<synchronous>, transform_indices = @transform_2, window_bounds = array<i64: 25, 1>}, {transform_indices = @transform_3, window_bounds = array<i64: 25, 1024>}]} {
    %c0 = arith.constant 0 : index
    %c0_0 = arith.constant 0 : index
    %0 = vector.load %arg1[%c0, %c0_0] : memref<25x64xbf16, #tpu.memory_space<vmem>>, vector<25x64xbf16>
    %c0_1 = arith.constant 0 : index
    %c0_2 = arith.constant 0 : index
    %1 = vector.load %arg2[%c0_1, %c0_2] : memref<64x1024xbf16, #tpu.memory_space<vmem>>, vector<64x1024xbf16>
    %cst = arith.constant dense<0.000000e+00> : vector<25x1024xf32>
    %2 = tpu.matmul %0, %1, %cst {dimension_numbers = #tpu.dot_dimension_numbers<[1], [0], [0], [1], [0, 0, 1, 1], [], []>} : vector<25x64xbf16>, vector<64x1024xbf16>, vector<25x1024xf32> -> vector<25x1024xf32>
    %c1024_i32 = arith.constant 1024 : i32
    %3 = arith.muli %arg0, %c1024_i32 : i32
    %4 = tpu.iota {dimensions = array<i32: 1>} : vector<25x1024xi32>
    %5 = vector.broadcast %3 : i32 to vector<25x1024xi32>
    %6 = arith.addi %5, %4 : vector<25x1024xi32>
    %c2048_i32 = arith.constant 2048 : i32
    %7 = vector.broadcast %c2048_i32 : i32 to vector<25x1024xi32>
    %8 = arith.cmpi slt, %6, %7 : vector<25x1024xi32>
    %cst_3 = arith.constant 0xFF800000 : f32
    %9 = vector.broadcast %cst_3 : f32 to vector<25x1024xf32>
    %10 = arith.select %8, %2, %9 : vector<25x1024xi1>, vector<25x1024xf32>
    %c0_4 = arith.constant 0 : index
    %c0_5 = arith.constant 0 : index
    %11 = vector.load %arg3[%c0_4, %c0_5] : memref<25x1xf32, #tpu.memory_space<vmem>>, vector<25x1xf32>
    %12 = vector.broadcast %11 : vector<25x1xf32> to vector<25x1024xf32>
    %13 = arith.subf %10, %12 : vector<25x1024xf32>
    %14 = math.exp %13 : vector<25x1024xf32>
    %c0_6 = arith.constant 0 : index
    %c0_7 = arith.constant 0 : index
    %15 = vector.load %arg4[%c0_6, %c0_7] : memref<25x1024xf32, #tpu.memory_space<vmem>>, vector<25x1024xf32>
    tpu.vector_store %arg4[%c0_6, %c0_7], %14 {strides = array<i32>} : memref<25x1024xf32, #tpu.memory_space<vmem>>, vector<25x1024xf32>,
    return
  }
  func.func @transform_0(%arg0: i32) -> (i32, i32) {
    %c0_i32 = arith.constant 0 : i32
    %c0_i32_0 = arith.constant 0 : i32
    %c0_i32_1 = arith.constant 0 : i32
    return %c0_i32, %c0_i32_0 : i32, i32
  }
  func.func @transform_1(%arg0: i32) -> (i32, i32) {
    %c0_i32 = arith.constant 0 : i32
    %c0_i32_0 = arith.constant 0 : i32
    return %c0_i32, %arg0 : i32, i32
  }
  func.func @transform_2(%arg0: i32) -> (i32, i32) {
    %c0_i32 = arith.constant 0 : i32
    %c0_i32_0 = arith.constant 0 : i32
    %c0_i32_1 = arith.constant 0 : i32
    return %c0_i32, %c0_i32_0 : i32, i32
  }
  func.func @transform_3(%arg0: i32) -> (i32, i32) {
    %c0_i32 = arith.constant 0 : i32
    %c0_i32_0 = arith.constant 0 : i32
    return %c0_i32, %arg0 : i32, i32
  }
}

module attributes {stable_mosaic.version = 11 : i64} {
  func.func @recon_kernel(%arg0: i32, %arg1: i32, %arg2: memref<16x128xf32, #tpu.memory_space<vmem>>, %arg3: memref<25x1024xbf16, #tpu.memory_space<vmem>>, %arg4: memref<16x1024xbf16, #tpu.memory_space<vmem>>, %arg5: memref<16x1xf32, #tpu.memory_space<vmem>>) attributes {dimension_semantics = [#tpu.dimension_semantics<parallel>, #tpu.dimension_semantics<arbitrary>], iteration_bounds = array<i64: 2, 2>, scalar_prefetch = 0 : i64, scratch_operands = 0 : i64, tpu.core_type = #tpu.core_type<tc>, window_params = [{transform_indices = @transform_0, window_bounds = array<i64: 16, 128>}, {transform_indices = @transform_1, window_bounds = array<i64: 25, 1024>}, {transform_indices = @transform_2, window_bounds = array<i64: 16, 1024>}, {transform_indices = @transform_3, window_bounds = array<i64: 16, 1>}]} {
    %c0_i32 = arith.constant 0 : i32
    %0 = arith.cmpi eq, %arg1, %c0_i32 : i32
    %1 = arith.extui %0 : i1 to i32
    %c0_i32_0 = arith.constant 0 : i32
    %2 = arith.cmpi ne, %1, %c0_i32_0 : i32
    scf.if %2 {
      %cst_13 = arith.constant 0.000000e+00 : f32
      %20 = vector.broadcast %cst_13 : f32 to vector<16x1xf32>
      %c0_14 = arith.constant 0 : index
      %c0_15 = arith.constant 0 : index
      %21 = vector.load %arg5[%c0_14, %c0_15] : memref<16x1xf32, #tpu.memory_space<vmem>>, vector<16x1xf32>
      tpu.vector_store %arg5[%c0_14, %c0_15], %20 {strides = array<i32>} : memref<16x1xf32, #tpu.memory_space<vmem>>, vector<16x1xf32>,
    } else {
    }
    %c0 = arith.constant 0 : index
    %c0_1 = arith.constant 0 : index
    %3 = vector.load %arg2[%c0, %c0_1] : memref<16x128xf32, #tpu.memory_space<vmem>>, vector<16x25xf32>
    %4 = arith.truncf %3 : vector<16x25xf32> to vector<16x25xbf16>
    %c0_2 = arith.constant 0 : index
    %c0_3 = arith.constant 0 : index
    %5 = vector.load %arg3[%c0_2, %c0_3] : memref<25x1024xbf16, #tpu.memory_space<vmem>>, vector<25x1024xbf16>
    %cst = arith.constant dense<0.000000e+00> : vector<16x1024xf32>
    %6 = tpu.matmul %4, %5, %cst {dimension_numbers = #tpu.dot_dimension_numbers<[1], [0], [0], [1], [0, 0, 1, 1], [], []>} : vector<16x25xbf16>, vector<25x1024xbf16>, vector<16x1024xf32> -> vector<16x1024xf32>
    %cst_4 = arith.constant 1.000000e-30 : f32
    %7 = vector.broadcast %cst_4 : f32 to vector<16x1024xf32>
    %8 = arith.maximumf %6, %7 : vector<16x1024xf32>
    %9 = math.log %8 : vector<16x1024xf32>
    %c0_5 = arith.constant 0 : index
    %c0_6 = arith.constant 0 : index
    %10 = vector.load %arg5[%c0_5, %c0_6] : memref<16x1xf32, #tpu.memory_space<vmem>>, vector<16x1xf32>
    %c0_7 = arith.constant 0 : index
    %c0_8 = arith.constant 0 : index
    %11 = vector.load %arg4[%c0_7, %c0_8] : memref<16x1024xbf16, #tpu.memory_space<vmem>>, vector<16x1024xbf16>
    %12 = arith.extf %11 : vector<16x1024xbf16> to vector<16x1024xf32>
    %13 = arith.mulf %9, %12 : vector<16x1024xf32>
    %cst_9 = arith.constant dense<0.000000e+00> : vector<16xf32>
    %14 = vector.multi_reduction <add>, %13, %cst_9 [1] : vector<16x1024xf32> to vector<16xf32>
    %15 = vector.shape_cast %14 : vector<16xf32> to vector<16x1xf32>
    %cst_10 = arith.constant 0.000000e+00 : f32
    %16 = vector.broadcast %cst_10 : f32 to vector<16x1xf32>
    %17 = arith.subf %16, %15 : vector<16x1xf32>
    %18 = arith.addf %10, %17 : vector<16x1xf32>
    %c0_11 = arith.constant 0 : index
    %c0_12 = arith.constant 0 : index
    %19 = vector.load %arg5[%c0_11, %c0_12] : memref<16x1xf32, #tpu.memory_space<vmem>>, vector<16x1xf32>
    tpu.vector_store %arg5[%c0_11, %c0_12], %18 {strides = array<i32>} : memref<16x1xf32, #tpu.memory_space<vmem>>, vector<16x1xf32>,
    return
  }
  func.func @transform_0(%arg0: i32, %arg1: i32) -> (i32, i32) {
    %c0_i32 = arith.constant 0 : i32
    %c0_i32_0 = arith.constant 0 : i32
    return %arg0, %c0_i32 : i32, i32
  }
  func.func @transform_1(%arg0: i32, %arg1: i32) -> (i32, i32) {
    %c0_i32 = arith.constant 0 : i32
    %c0_i32_0 = arith.constant 0 : i32
    return %c0_i32, %arg1 : i32, i32
  }
  func.func @transform_2(%arg0: i32, %arg1: i32) -> (i32, i32) {
    %c0_i32 = arith.constant 0 : i32
    return %arg0, %arg1 : i32, i32
  }
  func.func @transform_3(%arg0: i32, %arg1: i32) -> (i32, i32) {
    %c0_i32 = arith.constant 0 : i32
    %c0_i32_0 = arith.constant 0 : i32
    return %arg0, %c0_i32 : i32, i32
  }
}

</mosaic_0001>

<bundles_post_ra>
// kernel: ntsntm_forward.4
= control target key start
LH: loop header
LB: loop body
LE: loop exit
PB: predicated region body
PF: predicated region fallthrough
CT: control target
= control target key end

     0   :  { %10 = vsyncpa [#allocation5], 0  ;;  %s2200_s0 = inlined_call_operand.hbm [shape: bf16[25,64], index: 0, kind: input, shape index: {}]   ;;  %s2201_s1 = inlined_call_operand.hbm [shape: bf16[64,2048], index: 1, kind: input, shape index: {}]   ;;  %s2202_s2 = inlined_call_operand.hbm [shape: f32[16,8], index: 2, kind: input, shape index: {}]   ;;  %s2203_s3 = inlined_call_operand.hbm [shape: f32[25,1], index: 3, kind: output, shape index: {0}]   ;;  %s2204_s4 = inlined_call_operand.hbm [shape: f32[16,8], index: 4, kind: output, shape index: {1}]  }
   0x1   :  { %11 = vsyncpa [#allocation8], 0 }
   0x2   :  { %13 = vsyncpa [#allocation8 + $0x1], 0 }
   0x3   :  { %14 = vsyncpa [#allocation6], 0 }
   0x4   :  { %15 = vsyncpa [#allocation12], 0  ;;  %s1612_s15 = smov 0   ;;  %s1614_s16 = smov 0  }
   0x5   :  { %s1616_s17 = smov 0   ;;  %s1618_s18 = smov 0  }
   0x6 LB: > { %s1631_s19 = sadd.s32 4294967295, %s1568_s18   ;;  %s1634_s20 = sadd.s32 1, %s1568_s18   ;;  %s1568_s18 = sphi %s1618_s18, %s2225_s18   ;;  %s1564_s17 = sphi %s1616_s17, %s2224_s17   ;;  %s1560_s16 = sphi %s1614_s16, %s2223_s16   ;;  %s1556_s15 = sphi %s1612_s15, %s2222_s15  }
   0x7   : > { %s46_s21 = ssub.s32 %s1568_s18, %s1634_s20  ;;  %s49_s22 = sadd.s32 1, %s1564_s17 }
   0x8   : > { %p47_p0 = scmp.eq.s32.totalorder %s46_s21, 0  ;;  %p56_p1 = scmp.ne.s32.totalorder %s1564_s17, %s1560_s16 }
   0x9   : > { %p57_p2 = scmp.eq.s32.totalorder %s1568_s18, 0  ;;  %p62_p3 = scmp.ne.s32.totalorder %s1560_s16, %s1556_s15 }
   0xa   : > { %s1644_s23 = scalar_select %p47_p0, %s1564_s17, %s49_s22  }
   0xb   : > { %p1646_p4 = por %p57_p2, %p56_p1  ;;  %p2205_p5 = scmp.eq.s32.totalorder %s1631_s19, 0 }
   0xc   : > { %p1139_p6 = scmp.ge.s32.totalorder %s1568_s18, 1  ;;  %p136_p7 = scmp.lt.s32.totalorder %s1568_s18, 3 }
   0xd   : > { %p1655_p8 = por %p2205_p5, %p62_p3  ;;  %s1570_s27 = smov [#allocation9]  }
   0xe   : > { %p1660_p10 = pnand %p1139_p6, %p136_p7  ;;  %s161_s28 = sshll.u32 %s1570_s27, 4  ;;  %s162_s28 = int_to_ptr.vmem [resolvable:$true] %s161_s28 }
   0xf   : > { %s2210_s25 = scalar_select %p1655_p8, 1, 0 }
  0x10   : > { %s2211_s26 = scalar_select %p1660_p10, 1, 0 }
  0x11   : > { %p1220_p11 = pneg %p1660_p10  ;;  %p1233_p13 = scmp.lt.s32.totalorder %s1568_s18, 2 }
  0x12   : > { %s1380_s7 = scalar_lea.hbm %s2202_s2, 256 }
  0x13   : > { %p1668_p12 = pnand %p1220_p11, %p2205_p5  ;;  %p1675_p0 = pnand %p1233_p13, %p1646_p4 }
  0x14   : > { %p1381_p1 = scmp.ne.s32.totalorder %s2202_s2, %s1380_s7  ;;  %p1387_p4 = scmp.lt.u32.totalorder %s1380_s7, %s2202_s2 }
  0x15   : > { %s2213_s30 = scalar_select %p1675_p0, 1, 0 }
  0x16   : > { %p1382_p2 = pneg %p1668_p12 }
  0x18   : > { %p1383_p3 = pnand %p1382_p2, %p1381_p1 }
  0x1a   : > { %p1384_p6 = pneg %p1383_p3 }
  0x1c   : > { %p1389_p7 = pnand %p1387_p4, %p1384_p6 }
  0x1e   : > { %1392 = shalt.err (!%p1389_p7)
}
  0x1f   : > { %s1393_s12 = scalar_lea.vmem %s162_s28, 256  ;;  %p1401_p5 = scmp.lt.s32.totalorder %s162_s28, %s162_s28 }
  0x20   : > { %p1394_p11 = scmp.ne.s32.totalorder %s162_s28, %s1393_s12  ;;  %p1402_p8 = scmp.lt.s32.totalorder %s1393_s12, %s1393_s12 }
  0x22   : > { %p1396_p13 = pnand %p1394_p11, %p1382_p2  ;;  %p1403_p10 = por %p1402_p8, %p1401_p5 }
  0x24   : > { %p1397_p9 = pneg %p1396_p13 }
  0x26   : > { %p1404_p0 = pnand %p1403_p10, %p1397_p9 }
  0x28   : > { %1407 = shalt.err (!%p1404_p0)
}
  0x29   : > { %s1571_s13 = smov 128   ;;  %s1572_s14 = smov 8  }
  0x2a   : > { %1226 = dma.hbm_to_vmem [thread:$0]  (!%p1668_p12), %s2202_s2, 256, %s162_s28, [#allocation8], %s1571_s13, %s1571_s13, %s1572_s14  }
  0x2b   : > { %s1573_s22 = smov [#allocation4]   ;;  %s1408_s6 = scalar_lea.hbm %s2200_s0, 256 }
  0x2c   : > { %s148_s24 = sshll.u32 %s1573_s22, 4  ;;  %p1409_p5 = scmp.ne.s32.totalorder %s2200_s0, %s1408_s6  ;;  %s149_s24 = int_to_ptr.vmem [resolvable:$true] %s148_s24 }
  0x2d   : > { %p1415_p10 = scmp.lt.u32.totalorder %s1408_s6, %s2200_s0 }
  0x2e   : > { %p1411_p8 = pnand %p1409_p5, %p1382_p2 }
  0x30   : > { %p1412_p9 = pneg %p1411_p8 }
  0x32   : > { %p1417_p0 = pnand %p1415_p10, %p1412_p9 }
  0x34   : > { %1420 = shalt.err (!%p1417_p0)
}
  0x35   : > { %s1421_s28 = scalar_lea.vmem %s149_s24, 256  ;;  %p1429_p4 = scmp.lt.s32.totalorder %s149_s24, %s149_s24 }
  0x36   : > { %p1422_p1 = scmp.ne.s32.totalorder %s149_s24, %s1421_s28  ;;  %p1430_p7 = scmp.lt.s32.totalorder %s1421_s28, %s1421_s28 }
  0x38   : > { %p1424_p3 = pnand %p1422_p1, %p1382_p2  ;;  %p1431_p11 = por %p1430_p7, %p1429_p4 }
  0x3a   : > { %p1425_p6 = pneg %p1424_p3 }
  0x3c   : > { %p1432_p13 = pnand %p1431_p11, %p1425_p6 }
  0x3e   : > { %1435 = shalt.err (!%p1432_p13)
}
  0x3f   : > { %s1574_s11 = smov 64   ;;  %s1575_s12 = smov 4  }
  0x40   : > { %1223 = dma.hbm_to_vmem [thread:$0]  (!%p1668_p12), %s2200_s0, 256, %s149_s24, [#allocation5], %s1574_s11, %s1574_s11, %s1575_s12  }
  0x41   : > { %s175_s15 = sand.u32 1, %s1568_s18   ;;  %s177_s21 = sand.u32 1, %s1564_s17  }
  0x42   : > { %s1143_s22 = sshll.u32 %s177_s21, 8  ;;  %s1201_s27 = sshll.u32 %s1568_s18, 9 }
  0x43   : > { %s1727_s7 = scalar_lea.hbm %s2201_s1, %s1201_s27  ;;  %s179_s8 = scalar_lea.vmem [#allocation7], %s1143_s22 }
  0x44   : > { %s186_s9 = sshll.u32 %s179_s8, 4  ;;  %s1731_s29 = scalar_lea.sflag [#allocation8], %s175_s15  ;;  %s1729_s9 = int_to_ptr.vmem [resolvable:$true] %s186_s9 }
  0x45   : > { %s1436_s24 = scalar_lea.hbm %s1727_s7, 4096  ;;  %p2214_p2 = scmp.ne.s32.totalorder %s2213_s30, 0 }
  0x46   : > { %p1437_p12 = scmp.ne.s32.totalorder %s1727_s7, %s1436_s24  ;;  %s1441_s28 = scalar_lea.hbm %s2201_s1, 8192 }
  0x47   : > { %p1438_p5 = pneg %p2214_p2  ;;  %p1442_p10 = scmp.lt.u32.totalorder %s1727_s7, %s2201_s1 }
  0x48   : > { %p1443_p0 = scmp.lt.u32.totalorder %s1441_s28, %s1436_s24  ;;  %p1445_p3 = scmp.lt.u32.totalorder %s1436_s24, %s1727_s7 }
  0x49   : > { %p1439_p8 = pnand %p1438_p5, %p1437_p12 }
  0x4a   : > { %p1444_p1 = por %p1443_p0, %p1442_p10 }
  0x4b   : > { %p1440_p9 = pneg %p1439_p8 }
  0x4c   : > { %p1446_p6 = por %p1445_p3, %p1444_p1 }
  0x4e   : > { %p1447_p4 = pnand %p1446_p6, %p1440_p9 }
  0x50   : > { %1450 = shalt.err (!%p1447_p4)
}
  0x51   : > { %s1451_s13 = scalar_lea.vmem %s1729_s9, 4096  ;;  %s1576_s14 = smov [#allocation7]  }
  0x52   : > { %p1452_p7 = scmp.ne.s32.totalorder %s1729_s9, %s1451_s13  ;;  %s1456_s15 = sshll.u32 %s1576_s14, 4  ;;  %s1457_s15 = int_to_ptr.vmem [resolvable:$false] %s1456_s15 }
  0x53   : > { %s1458_s21 = scalar_lea.vmem %s1457_s15, 8192  ;;  %p1459_p12 = scmp.lt.s32.totalorder %s1729_s9, %s1457_s15 }
  0x54   : > { %p1454_p11 = pnand %p1452_p7, %p1438_p5  ;;  %p1460_p8 = scmp.lt.s32.totalorder %s1458_s21, %s1451_s13 }
  0x56   : > { %p1455_p13 = pneg %p1454_p11  ;;  %p1461_p10 = por %p1460_p8, %p1459_p12 }
  0x58   : > { %p1462_p0 = pnand %p1461_p10, %p1455_p13 }
  0x5a   : > { %1465 = shalt.err (!%p1462_p0)
}
  0x5b   : > { %s1577_s22 = smov 1024   ;;  %s1578_s27 = smov 512  }
  0x5c   : > { %s1579_s5 = smov 32   ;;  %p2215_p5 = scmp.ne.s32.totalorder %s2211_s26, 0 }
  0x5d   : > { %1230 = dma.hbm_to_vmem [thread:$0]  (!%p2214_p2), %s1727_s7, 4096, %s1729_s9, %s1731_s29, %s1577_s22, %s1578_s27, %s1579_s5  }
  0x5e   : > { %198 = sbr.rel (%p2215_p5) target bundleno = 1075 (0x433), region = 32  ;;  %p2216_p9 = scmp.eq.s32.totalorder (!%p2215_p5), %s1631_s19, 0 }
  0x65   : > { %1535 = dma.done.wait (%p2216_p9), [#allocation5], 256   ;;  %p2217_p1 = pmov %p2216_p9 }
  0x66   : > { %s204_s6 = sand.u32 1, %s1631_s19   ;;  %s206_s8 = sand.u32 1, %s1560_s16  }
  0x67   : > { %1537 = vsyncadd (%p2217_p1), [#allocation5], 4294967040  ;;  %s1148_s24 = sshll.u32 %s206_s8, 8  ;;  %s205_s18 = scalar_lea.sflag [#allocation8], %s204_s6 }
  0x68   : > { %s1767_s10 = scalar_lea.vmem [#allocation7], %s1148_s24  ;;  %p2218_p3 = scmp.ne.s32.totalorder %s2210_s25, 0 }
  0x6a   : > { %1539 = dma.done.wait (%p2218_p3), %s205_s18, 4096  }
  0x6b   : > { %1541 = vsyncadd (%p2218_p3), %s205_s18, 4294963200  ;;  %p2219_p2 = pmov %p2217_p1 }
  0x6c   : > { %p2220_p6 = pmov %p2217_p1 }
  0x6d   : > { %1543 = dma.done.wait (%p2219_p2), [#allocation8], 256  }
  0x6e   : > { %1545 = vsyncadd (%p2220_p6), [#allocation8], 4294967040  ;;  %p2221_p4 = scmp.ne.s32.totalorder %s1631_s19, 0 }
  0x6f   : > { %vm238_vm0 = vcmask (!%p2221_p4), 7168   ;;  %vm242_vm1 = vcmask (!%p2221_p4), 0   ;;  %v1580_v0 = vmov (!%p2221_p4), -inf   ;;  %v1581_v1 = vmov (!%p2221_p4), 0.0  }
  0x70   : > { %237 = sbr.rel (%p2221_p4) target bundleno = 119 (0x77), region = 48  ;;  %239 = vst.msk [vmem:[#allocation2] sm:$0xff] (!%p2221_p4), %vm238_vm0, %v1580_v0  ;;  %240 = vst.msk [vmem:[#allocation2 + $0x8] sm:$0xff] (!%p2221_p4), %vm238_vm0, %v1580_v0 }
  0x71   : > { %241 = vst.msk [vmem:[#allocation2 + $0x10] sm:$0xff] (!%p2221_p4), %vm238_vm0, %v1580_v0  ;;  %244 = vst.msk [vmem:[#allocation3] sm:$0xff] (!%p2221_p4), %vm238_vm0, %v1581_v1 }
  0x72   : > { %243 = vst.msk [vmem:[#allocation2 + $0x18] sm:$0x1] (!%p2221_p4), %vm242_vm1, %v1580_v0  ;;  %247 = vst.msk [vmem:[#allocation3 + $0x18] sm:$0x1] (!%p2221_p4), %vm242_vm1, %v1581_v1 }
  0x73   : > { %245 = vst.msk [vmem:[#allocation3 + $0x8] sm:$0xff] (!%p2221_p4), %vm238_vm0, %v1581_v1  ;;  %246 = vst.msk [vmem:[#allocation3 + $0x10] sm:$0xff] (!%p2221_p4), %vm238_vm0, %v1581_v1 }
  0x77 PF: > { %v252_v2 = vld [vmem:[%s1767_s10] sm:$0xff]  ;;  %v253_v4 = vld [vmem:[%s1767_s10 + $0x8] sm:$0xff]  ;;  %v1582_v10 = vmov 0   ;;  %v254_v33 = vld [vmem:[%s1767_s10 + $0x10] sm:$0xff]  ;;  %vm454_vm2 = vcmask 523264   ;;  %s1193_s25 = sshll.u32 %s1631_s19, 10 }
  0x78   : > { %v256_v3 = vld [vmem:[%s1767_s10 + $0x20] sm:$0xff]  ;;  %v257_v7 = vld [vmem:[%s1767_s10 + $0x28] sm:$0xff]  ;;  %493 = vmatprep.mubr.bf16.mxu0 %v1582_v10  ;;  %546 = vmatprep.mubr.bf16.mxu1 %v1582_v10  ;;  %v258_v34 = vld [vmem:[%s1767_s10 + $0x30] sm:$0xff]  ;;  %vm763_vm7 = vcmask 1040384   ;;  %vm969_vm12 = vcmask 7168   ;;  %vm973_vm13 = vcmask 0  }
  0x79   : > { %v1154_v5 = vcombine.high %v252_v2, %v256_v3  ;;  %v1153_v6 = vcombine.low %v252_v2, %v256_v3  ;;  %v260_v8 = vld [vmem:[%s1767_s10 + $0x40] sm:$0xff]  ;;  %v1156_v11 = vcombine.high %v253_v4, %v257_v7  ;;  %v1155_v12 = vcombine.low %v253_v4, %v257_v7  ;;  %v261_v14 = vld [vmem:[%s1767_s10 + $0x48] sm:$0xff]  ;;  %1288 = vset.pattern.permute.xlu0 %v1582_v10  ;;  %v255_v35 = vld [vmem:[%s1767_s10 + $0x18] sm:$0xff]  ;;  %p1194_p7 = scmp.ne.s32.totalorder %s1631_s19, 1 }
  0x7a   : > { %v264_v9 = vld [vmem:[%s1767_s10 + $0x60] sm:$0xff]  ;;  %v265_v15 = vld [vmem:[%s1767_s10 + $0x68] sm:$0xff]  ;;  %1289 = vset.pattern.permute.xlu1 %v1582_v10  ;;  %v259_v36 = vld [vmem:[%s1767_s10 + $0x38] sm:$0xff]  ;;  %v1158_v39 = vcombine.high %v254_v33, %v258_v34  ;;  %v1157_v46 = vcombine.low %v254_v33, %v258_v34  ;;  %vm1009_vm14 = vcmask (!%p1194_p7), 64512  }
  0x7b   : > { %v1162_v13 = vcombine.high %v260_v8, %v264_v9  ;;  %v268_v16 = vld [vmem:[%s1767_s10 + $0x80] sm:$0xff]  ;;  %461 = vmatprep.subr.bf16.mxu0 %v1154_v5  ;;  %v1164_v17 = vcombine.high %v261_v14, %v265_v15  ;;  %v269_v19 = vld [vmem:[%s1767_s10 + $0x88] sm:$0xff]  ;;  %514 = vmatprep.subr.bf16.mxu1 %v1156_v11  ;;  %v1161_v21 = vcombine.low %v260_v8, %v264_v9  ;;  %v262_v41 = vld [vmem:[%s1767_s10 + $0x50] sm:$0xff]  ;;  %v674_v5 = vlaneseq }
  0x7c   : > { %v272_v18 = vld [vmem:[%s1767_s10 + $0xa0] sm:$0xff]  ;;  %v273_v20 = vld [vmem:[%s1767_s10 + $0xa8] sm:$0xff]  ;;  %462 = vmatpush1.bf16.msra.mxu0 %v1153_v6  ;;  %515 = vmatpush1.bf16.msra.mxu1 %v1155_v12  ;;  %v1163_v22 = vcombine.low %v261_v14, %v265_v15  ;;  %v1160_v40 = vcombine.high %v255_v35, %v259_v36  ;;  %v266_v42 = vld [vmem:[%s1767_s10 + $0x70] sm:$0xff]  ;;  %v1159_v47 = vcombine.low %v255_v35, %v259_v36  ;;  %v683_v8 = vstv %s1193_s25 }
  0x7d   : > { %463 = vmatprep.subr.bf16.mxu0 %v1162_v13  ;;  %v1170_v23 = vcombine.high %v268_v16, %v272_v18  ;;  %516 = vmatprep.subr.bf16.mxu1 %v1164_v17  ;;  %v1172_v24 = vcombine.high %v269_v19, %v273_v20  ;;  %v276_v25 = vld [vmem:[%s1767_s10 + $0xc0] sm:$0xff]  ;;  %v277_v27 = vld [vmem:[%s1767_s10 + $0xc8] sm:$0xff]  ;;  %v1169_v29 = vcombine.low %v268_v16, %v272_v18  ;;  %v1290_v43 = vld [vmem:[#allocation4] sm:$0xff]   ;;  %v675_v6 = vand.u32 127, %v674_v5 }
  0x7e   : > { %v280_v26 = vld [vmem:[%s1767_s10 + $0xe0] sm:$0xff]  ;;  %v281_v28 = vld [vmem:[%s1767_s10 + $0xe8] sm:$0xff]  ;;  %v1171_v30 = vcombine.low %v269_v19, %v273_v20  ;;  %v263_v44 = vld [vmem:[%s1767_s10 + $0x58] sm:$0xff]  ;;  %v1166_v48 = vcombine.high %v262_v41, %v266_v42  ;;  %v1165_v54 = vcombine.low %v262_v41, %v266_v42 }
  0x7f   : > { %v1178_v31 = vcombine.high %v276_v25, %v280_v26  ;;  %v1180_v32 = vcombine.high %v277_v27, %v281_v28  ;;  %v1177_v37 = vcombine.low %v276_v25, %v280_v26  ;;  %v1179_v38 = vcombine.low %v277_v27, %v281_v28  ;;  %v267_v45 = vld [vmem:[%s1767_s10 + $0x78] sm:$0xff]  ;;  %v270_v50 = vld [vmem:[%s1767_s10 + $0x90] sm:$0xff] }
  0x80   : > { %464 = vmatpush1.bf16.msra.mxu0 %v1161_v21  ;;  %517 = vmatpush1.bf16.msra.mxu1 %v1163_v22  ;;  %v1168_v49 = vcombine.high %v263_v44, %v267_v45  ;;  %v274_v51 = vld [vmem:[%s1767_s10 + $0xb0] sm:$0xff]  ;;  %v271_v52 = vld [vmem:[%s1767_s10 + $0x98] sm:$0xff]  ;;  %v1167_v55 = vcombine.low %v263_v44, %v267_v45  ;;  %v676_v7 = vadd.s32 128, %v675_v6  ;;  %v677_v11 = vadd.s32 256, %v675_v6 }
  0x81   : > { %465 = vmatprep.subr.bf16.mxu0 %v1170_v23  ;;  %518 = vmatprep.subr.bf16.mxu1 %v1172_v24  ;;  %v275_v53 = vld [vmem:[%s1767_s10 + $0xb8] sm:$0xff]  ;;  %v1174_v56 = vcombine.high %v270_v50, %v274_v51  ;;  %v278_v58 = vld [vmem:[%s1767_s10 + $0xd0] sm:$0xff]  ;;  %v1173_v63 = vcombine.low %v270_v50, %v274_v51  ;;  %v684_v14 = vadd.s32 %v683_v8, %v675_v6  ;;  %v678_v20 = vadd.s32 384, %v675_v6 }
  0x82   : > { %v1176_v57 = vcombine.high %v271_v52, %v275_v53  ;;  %v282_v59 = vld [vmem:[%s1767_s10 + $0xf0] sm:$0xff]  ;;  %v1291_v60 = vld [vmem:[#allocation4 + $0x8] sm:$0x1f]   ;;  %v1175_v0 = vcombine.low %v271_v52, %v275_v53  ;;  %v685_v15 = vadd.s32 %v683_v8, %v676_v7  ;;  %v686_v19 = vadd.s32 %v683_v8, %v677_v11 }
  0x83   : > { %v279_v61 = vld [vmem:[%s1767_s10 + $0xd8] sm:$0xff]  ;;  %v1182_v1 = vcombine.high %v278_v58, %v282_v59  ;;  %v1181_v3 = vcombine.low %v278_v58, %v282_v59  ;;  %vm692_vm3 = vcmp.lt.s32.totalorder %v684_v14, 2048  ;;  %v687_v24 = vadd.s32 %v683_v8, %v678_v20 }
  0x84   : > { %466 = vmatpush1.bf16.msra.mxu0 %v1169_v29  ;;  %519 = vmatpush1.bf16.msra.mxu1 %v1171_v30  ;;  %v283_v62 = vld [vmem:[%s1767_s10 + $0xf8] sm:$0xff]  ;;  %vm693_vm4 = vcmp.lt.s32.totalorder %v685_v15, 2048  ;;  %vm694_vm5 = vcmp.lt.s32.totalorder %v686_v19, 2048  ;;  %v679_v26 = vadd.s32 512, %v675_v6  ;;  %v680_v35 = vadd.s32 640, %v675_v6 }
  0x85   : > { %467 = vmatprep.subr.bf16.mxu0 %v1178_v31  ;;  %520 = vmatprep.subr.bf16.mxu1 %v1180_v32  ;;  %v1184_v2 = vcombine.high %v279_v61, %v283_v62  ;;  %v1183_v4 = vcombine.low %v279_v61, %v283_v62  ;;  %v681_v36 = vadd.s32 768, %v675_v6  ;;  %vm695_vm6 = vcmp.lt.s32.totalorder %v687_v24, 2048 }
  0x88   : > { %468 = vmatpush1.bf16.msra.mxu0 %v1177_v37  ;;  %521 = vmatpush1.bf16.msra.mxu1 %v1179_v38  ;;  %v1843_v38 = vadd.s32 %v683_v8, %v679_v26 }
  0x89   : > { %567 = vmatprep.subr.bf16.mxu0 %v1158_v39  ;;  %620 = vmatprep.subr.bf16.mxu1 %v1160_v40 }
  0x8a   : > { %vm696_vm8 = vcmp.lt.s32.totalorder %v1843_v38, 2048 }
  0x8b   : > { %1185 = vmatmul.mubr.msk.bf16.vlgmr.msra.gmra.mrb[0].mxu0 %vm454_vm2, %v1290_v43  ;;  %1187 = vmatmul.mubr.msk.bf16.vlgmr.msra.gmra.mrb[0].mxu1 %vm454_vm2, %v1290_v43 }
  0x8c   : > { %568 = vmatpush1.bf16.msra.mxu0 %v1157_v46  ;;  %621 = vmatpush1.bf16.msra.mxu1 %v1159_v47  ;;  %v682_v46 = vadd.s32 896, %v675_v6  ;;  %v689_v47 = vadd.s32 %v683_v8, %v680_v35 }
  0x8d   : > { %569 = vmatprep.subr.bf16.mxu0 %v1166_v48  ;;  %622 = vmatprep.subr.bf16.mxu1 %v1168_v49  ;;  %v1864_v48 = vadd.s32 %v683_v8, %v681_v36 }
  0x8e   : > { %503 = vmatprep.mubr.bf16.mxu0 %v1582_v10  ;;  %556 = vmatprep.mubr.bf16.mxu1 %v1582_v10  ;;  %vm697_vm9 = vcmp.lt.s32.totalorder %v689_v47, 2048 }
  0x8f   : > { %vm698_vm10 = vcmp.lt.s32.totalorder %v1864_v48, 2048 }
  0x90   : > { %570 = vmatpush1.bf16.msra.mxu0 %v1165_v54  ;;  %623 = vmatpush1.bf16.msra.mxu1 %v1167_v55 }
  0x91   : > { %571 = vmatprep.subr.bf16.mxu0 %v1174_v56  ;;  %624 = vmatprep.subr.bf16.mxu1 %v1176_v57 }
  0x93   : > { %1186 = vmatmul.mubr.msk.bf16.gmra.mrb[4].mxu0 %vm454_vm2, %v1291_v60  ;;  %1188 = vmatmul.mubr.msk.bf16.gmra.mrb[4].mxu1 %vm454_vm2, %v1291_v60 }
  0x94   : > { %572 = vmatpush1.bf16.msra.mxu0 %v1173_v63  ;;  %625 = vmatpush1.bf16.msra.mxu1 %v1175_v0  ;;  %v1890_v63 = vadd.s32 %v683_v8, %v682_v46 }
  0x95   : > { %573 = vmatprep.subr.bf16.mxu0 %v1182_v1  ;;  %626 = vmatprep.subr.bf16.mxu1 %v1184_v2 }
  0x96   : > { %599 = vmatprep.mubr.bf16.mxu0 %v1582_v10  ;;  %652 = vmatprep.mubr.bf16.mxu1 %v1582_v10  ;;  %vm699_vm11 = vcmp.lt.s32.totalorder %v1890_v63, 2048 }
  0x98   : > { %574 = vmatpush1.bf16.msra.mxu0 %v1181_v3  ;;  %627 = vmatpush1.bf16.msra.mxu1 %v1183_v4 }
  0x9b   : > { %1189 = vmatmul.mubr.msk.bf16.vlgmr.msra.gmra.mrb[8].mxu0 %vm454_vm2, %v1290_v43  ;;  %1191 = vmatmul.mubr.msk.bf16.vlgmr.msra.gmra.mrb[8].mxu1 %vm454_vm2, %v1290_v43 }
  0x9c   : > { %609 = vmatprep.mubr.bf16.mxu0 %v1582_v10  ;;  %662 = vmatprep.mubr.bf16.mxu1 %v1582_v10 }
  0xa3   : > { %1190 = vmatmul.mubr.msk.bf16.gmra.mrb[12].mxu0 %vm454_vm2, %v1291_v60  ;;  %1192 = vmatmul.mubr.msk.bf16.gmra.mrb[12].mxu1 %vm454_vm2, %v1291_v60 }
 0x15e   : > { %v495_v9 = vpop.f32.mrb[0].mxu0  ;;  %v548_v13 = vpop.f32.mrb[0].mxu1 }
 0x15f   : > { %v497_v12 = vpop.f32.mrb[1].mxu0  ;;  %v1830_v17 = vpop.f32.mrb[1].mxu1  ;;  %v1858_v43 = vsel %vm692_vm3, %v495_v9, -inf  ;;  %v1884_v59 = vsel %vm694_vm5, %v548_v13, -inf }
 0x160   : > { %v499_v16 = vpop.f32.mrb[2].mxu0  ;;  %v552_v10 = vpop.f32.mrb[2].mxu1  ;;  %v1861_v44 = vsel %vm693_vm4, %v497_v12, -inf  ;;  %v1910_v12 = vsel %vm695_vm6, %v1830_v17, -inf }
 0x161   : > { %v501_v18 = vpop.f32.mrb[3].mxu0  ;;  %v554_v21 = vpop.f32.mrb[3].mxu1  ;;  %v1833_v22 = vsel %vm692_vm3, %v499_v16, -inf  ;;  %v1841_v32 = vsel %vm694_vm5, %v552_v10, -inf  ;;  %v736_v53 = vmax.f32 %v1858_v43, %v1861_v44 }
 0x162   : > { %v1836_v23 = vsel %vm693_vm4, %v501_v18, -inf  ;;  %v1875_v54 = vsel %vm695_vm6, %v554_v21, -inf }
 0x163   : > { %v745_v29 = vmax.f32 %v1833_v22, %v1836_v23  ;;  %v737_v9 = vmax.f32 %v736_v53, %v1884_v59 }
 0x165   : > { %v746_v45 = vmax.f32 %v745_v29, %v1841_v32  ;;  %v738_v20 = vmax.f32 %v737_v9, %v1910_v12 }
 0x166   : > { %v505_v25 = vpop.f32.mrb[4].mxu0  ;;  %v558_v28 = vpop.f32.mrb[4].mxu1 }
 0x167   : > { %v507_v27 = vpop.f32.mrb[5].mxu0  ;;  %v560_v31 = vpop.f32.mrb[5].mxu1  ;;  %v1846_v39 = vsel %vm692_vm3, %v505_v25, -inf  ;;  %v1878_v55 = vsel %vm694_vm5, %v558_v28, -inf  ;;  %v747_v60 = vmax.f32 %v746_v45, %v1875_v54 }
 0x168   : > { %v509_v30 = vpop.f32.mrb[6].mxu0  ;;  %v562_v34 = vpop.f32.mrb[6].mxu1  ;;  %v1849_v40 = vsel %vm693_vm4, %v507_v27, -inf  ;;  %v1906_v11 = vsel %vm695_vm6, %v560_v31, -inf }
 0x169   : > { %v511_v33 = vpop.f32.mrb[7].mxu0  ;;  %v564_v37 = vpop.f32.mrb[7].mxu1  ;;  %v1852_v41 = vsel %vm692_vm3, %v509_v30, -inf  ;;  %v754_v49 = vmax.f32 %v1846_v39, %v1849_v40  ;;  %v1881_v56 = vsel %vm694_vm5, %v562_v34, -inf }
 0x16a   : > { %v1855_v42 = vsel %vm693_vm4, %v511_v33, -inf  ;;  %v764_v50 = vsel %vm763_vm7, %v1852_v41, -inf  ;;  %v767_v5 = vsel %vm763_vm7, %v1881_v56, -inf  ;;  %v1915_v15 = vsel %vm695_vm6, %v564_v37, -inf }
 0x16b   : > { %v765_v51 = vsel %vm763_vm7, %v1855_v42, -inf  ;;  %v755_v4 = vmax.f32 %v754_v49, %v1878_v55  ;;  %v769_v27 = vsel %vm763_vm7, %v1915_v15, -inf }
 0x16c   : > { %v766_v0 = vmax.f32 %v764_v50, %v765_v51 }
 0x16d   : > { %v756_v18 = vmax.f32 %v755_v4, %v1906_v11 }
 0x16e   : > { %v601_v52 = vpop.f32.mrb[8].mxu0  ;;  %v654_v58 = vpop.f32.mrb[8].mxu1  ;;  %v768_v14 = vmax.f32 %v766_v0, %v767_v5 }
 0x16f   : > { %v603_v57 = vpop.f32.mrb[9].mxu0  ;;  %v1888_v62 = vpop.f32.mrb[9].mxu1  ;;  %v1924_v10 = vsel %vm696_vm8, %v601_v52, -inf  ;;  %v1979_v4 = vsel %vm698_vm10, %v654_v58, -inf }
 0x170   : > { %v605_v61 = vpop.f32.mrb[10].mxu0  ;;  %v658_v3 = vpop.f32.mrb[10].mxu1  ;;  %v770_v34 = vmax.f32 %v768_v14, %v769_v27  ;;  %v739_v35 = vmax.f32 %v738_v20, %v1924_v10  ;;  %v1953_v49 = vsel %vm697_vm9, %v603_v57, -inf  ;;  %v1990_v48 = vsel %vm699_vm11, %v1888_v62, -inf }
 0x171   : > { %v1894_v1 = vsel %vm696_vm8, %v605_v61, -inf  ;;  %v607_v2 = vpop.f32.mrb[11].mxu0  ;;  %v660_v8 = vpop.f32.mrb[11].mxu1  ;;  %v1919_v16 = vsel %vm698_vm10, %v658_v3, -inf }
 0x172   : > { %v748_v6 = vmax.f32 %v747_v60, %v1894_v1  ;;  %v1902_v7 = vsel %vm697_vm9, %v607_v2, -inf  ;;  %v1930_v21 = vsel %vm699_vm11, %v660_v8, -inf  ;;  %v740_v0 = vmax.f32 %v739_v35, %v1953_v49 }
 0x174   : > { %v749_v13 = vmax.f32 %v748_v6, %v1902_v7 }
 0x176   : > { %v750_v17 = vmax.f32 %v749_v13, %v1919_v16  ;;  %v611_v19 = vpop.f32.mrb[12].mxu0  ;;  %v664_v26 = vpop.f32.mrb[12].mxu1  ;;  %v741_v13 = vmax.f32 %v740_v0, %v1979_v4 }
 0x177   : > { %v1934_v24 = vsel %vm696_vm8, %v611_v19, -inf  ;;  %v613_v25 = vpop.f32.mrb[13].mxu0  ;;  %v666_v31 = vpop.f32.mrb[13].mxu1  ;;  %v1950_v37 = vsel %vm698_vm10, %v664_v26, -inf  ;;  %v2007_v26 = vld [vmem:[#allocation2 + $0x18] sm:$0x1] }
 0x178   : > { %v757_v28 = vmax.f32 %v756_v18, %v1934_v24  ;;  %v1940_v29 = vsel %vm697_vm9, %v613_v25, -inf  ;;  %v615_v30 = vpop.f32.mrb[14].mxu0  ;;  %v751_v33 = vmax.f32 %v750_v17, %v1930_v21  ;;  %v668_v46 = vpop.f32.mrb[14].mxu1  ;;  %v1971_v47 = vsel %vm699_vm11, %v666_v31, -inf  ;;  %v1993_v18 = vld [vmem:[#allocation2 + $0x8] sm:$0xff]  ;;  %v2002_v25 = vld [vmem:[#allocation2 + $0x10] sm:$0xff] }
 0x179   : > { %v1946_v36 = vsel %vm696_vm8, %v615_v30, -inf  ;;  %v617_v45 = vpop.f32.mrb[15].mxu0  ;;  %v670_v38 = vpop.f32.mrb[15].mxu1  ;;  %v1965_v61 = vsel %vm698_vm10, %v668_v46, -inf  ;;  %v742_v58 = vmax.f32 %v741_v13, %v1990_v48  ;;  %v2016_v31 = vld [vmem:[#allocation2] sm:$0xff] }
 0x17a   : > { %v758_v50 = vmax.f32 %v757_v28, %v1940_v29  ;;  %v771_v51 = vsel %vm763_vm7, %v1946_v36, -inf  ;;  %v1959_v52 = vsel %vm697_vm9, %v617_v45, -inf  ;;  %752 = vmax.xlane.f32.xlu1 %v751_v33  ;;  %v1975_v3 = vsel %vm699_vm11, %v670_v38, -inf }
 0x17b   : > { %v772_v53 = vmax.f32 %v770_v34, %v771_v51  ;;  %v773_v60 = vsel %vm763_vm7, %v1959_v52, -inf  ;;  %v775_v5 = vsel %vm763_vm7, %v1965_v61, -inf  ;;  %v777_v9 = vsel %vm763_vm7, %v1975_v3, -inf }
 0x17c   : > { %v759_v57 = vmax.f32 %v758_v50, %v1950_v37 }
 0x17d   : > { %v774_v2 = vmax.f32 %v772_v53, %v773_v60 }
 0x17e   : > { %v760_v6 = vmax.f32 %v759_v57, %v1971_v47 }
 0x17f   : > { %v776_v8 = vmax.f32 %v774_v2, %v775_v5 }
 0x180   : > { %761 = vmax.xlane.f32.xlu1 %v760_v6 }
 0x181   : > { %v778_v14 = vmax.f32 %v776_v8, %v777_v9 }
 0x183   : > { %779 = vmax.xlane.f32.xlu0 %v778_v14 }
 0x187   : > { %743 = vmax.xlane.f32.xlu0 %v742_v58 }
 0x207   : > { %v753_v17 = vpop.xlane.xlu1 %752 }
 0x208   : > { %v1996_v19 = vmax.f32 %v1993_v18, %v753_v17 }
 0x20a   : > { %v790_v20 = vsub.f32 %v1993_v18, %v1996_v19  ;;  %976 = vst.msk [vmem:[#allocation2 + $0x8] sm:$0xff] %vm969_vm12, %v1996_v19  ;;  %v786_v18 = vld [vmem:[#allocation3 + $0x8] sm:$0xff] }
 0x20d   : > { %v762_v62 = vpop.xlane.xlu1 %761 }
 0x20e   : > { %v2005_v63 = vmax.f32 %v2002_v25, %v762_v62 }
 0x210   : > { %v791_v27 = vsub.f32 %v2002_v25, %v2005_v63  ;;  %977 = vst.msk [vmem:[#allocation2 + $0x10] sm:$0xff] %vm969_vm12, %v2005_v63  ;;  %v780_v28 = vpop.xlane.xlu0 %779 }
 0x211   : > { %v2014_v30 = vmax.f32 %v2007_v26, %v780_v28 }
 0x213   : > { %v792_v33 = vsub.f32 %v2007_v26, %v2014_v30  ;;  %978 = vst.msk [vmem:[#allocation2 + $0x18] sm:$0x1] %vm973_vm13, %v2014_v30  ;;  %822 = vperm.xlu0 %1288, %v2014_v30   ;;  %v788_v26 = vld [vmem:[#allocation3 + $0x18] sm:$0x1] }
 0x214   : > { %v744_v34 = vpop.xlane.xlu0 %743 }
 0x215   : > { %v2024_v35 = vmax.f32 %v2016_v31, %v744_v34 }
 0x217   : > { %v789_v45 = vsub.f32 %v2016_v31, %v2024_v35  ;;  %975 = vst.msk [vmem:[#allocation2] sm:$0xff] %vm969_vm12, %v2024_v35  ;;  %807 = vperm.xlu1 %1289, %v2024_v35  }
 0x21b   : > { %812 = vperm.xlu1 %1289, %v1996_v19  }
 0x21f   : > { %817 = vperm.xlu1 %1289, %v2005_v63   ;;  %v787_v63 = vld [vmem:[#allocation3 + $0x10] sm:$0xff] }
 0x292   : > { %v2033_v46 = vpop.permute.xlu0 %822 }
 0x293   : > { %v849_v50 = vsub.f32 %v1852_v41, %v2033_v46  ;;  %v850_v51 = vsub.f32 %v1855_v42, %v2033_v46  ;;  %v851_v38 = vsub.f32 %v1881_v56, %v2033_v46  ;;  %v852_v53 = vsub.f32 %v1915_v15, %v2033_v46 }
 0x295   : > { %v905_v60 = vmul.f32 1.442695, %v849_v50  ;;  %v907_v57 = vmul.f32 1.442695, %v850_v51  ;;  %v909_v0 = vmul.f32 1.442695, %v851_v38 }
 0x296   : > { %v911_v2 = vmul.f32 1.442695, %v852_v53  ;;  %v808_v5 = vpop.permute.xlu1 %807 }
 0x297   : > { %1292 = vpow2.f32 %v905_v60  ;;  %v825_v6 = vsub.f32 %v1858_v43, %v808_v5  ;;  %v826_v8 = vsub.f32 %v1861_v44, %v808_v5  ;;  %v827_v41 = vsub.f32 %v1884_v59, %v808_v5 }
 0x298   : > { %1294 = vpow2.f32 %v907_v57  ;;  %v828_v42 = vsub.f32 %v1910_v12, %v808_v5  ;;  %v829_v58 = vsub.f32 %v1924_v10, %v808_v5  ;;  %v830_v28 = vsub.f32 %v1953_v49, %v808_v5 }
 0x299   : > { %1296 = vpow2.f32 %v909_v0  ;;  %v857_v56 = vmul.f32 1.442695, %v825_v6  ;;  %v859_v9 = vmul.f32 1.442695, %v826_v8  ;;  %v861_v13 = vmul.f32 1.442695, %v827_v41 }
 0x29a   : > { %1298 = vpow2.f32 %v911_v2  ;;  %v863_v15 = vmul.f32 1.442695, %v828_v42  ;;  %v2047_v14 = vpop.permute.xlu1 %812  ;;  %v865_v10 = vmul.f32 1.442695, %v829_v58 }
 0x29b   : > { %1300 = vpow2.f32 %v857_v56  ;;  %v833_v43 = vsub.f32 %v1833_v22, %v2047_v14  ;;  %v834_v44 = vsub.f32 %v1836_v23, %v2047_v14  ;;  %v835_v59 = vsub.f32 %v1841_v32, %v2047_v14 }
 0x29c   : > { %1302 = vpow2.f32 %v859_v9  ;;  %v831_v32 = vsub.f32 %v1979_v4, %v808_v5  ;;  %v836_v49 = vsub.f32 %v1875_v54, %v2047_v14  ;;  %v837_v4 = vsub.f32 %v1894_v1, %v2047_v14 }
 0x29d   : > { %1304 = vpow2.f32 %v861_v13  ;;  %v873_v12 = vmul.f32 1.442695, %v833_v43  ;;  %v875_v17 = vmul.f32 1.442695, %v834_v44  ;;  %v877_v51 = vmul.f32 1.442695, %v835_v59 }
 0x29e   : > { %v2056_v62 = vpop.permute.xlu1 %817  ;;  %1306 = vpow2.f32 %v863_v15  ;;  %v869_v54 = vmul.f32 1.442695, %v831_v32  ;;  %v838_v2 = vsub.f32 %v1902_v7, %v2047_v14  ;;  %v879_v8 = vmul.f32 1.442695, %v836_v49 }
 0x29f   : > { %1308 = vpow2.f32 %v873_v12  ;;  %v841_v22 = vsub.f32 %v1846_v39, %v2056_v62  ;;  %v842_v23 = vsub.f32 %v1849_v40, %v2056_v62  ;;  %v843_v34 = vsub.f32 %v1878_v55, %v2056_v62 }
 0x2a0   : > { %1310 = vpow2.f32 %v875_v17  ;;  %v832_v39 = vsub.f32 %v1990_v48, %v808_v5  ;;  %v867_v40 = vmul.f32 1.442695, %v830_v28  ;;  %v839_v48 = vsub.f32 %v1919_v16, %v2047_v14 }
 0x2a1   : > { %v2066_v50 = vpop.eup %1292  ;;  %v889_v38 = vmul.f32 1.442695, %v841_v22  ;;  %v891_v53 = vmul.f32 1.442695, %v842_v23  ;;  %1312 = vpow2.f32 %v865_v10  ;;  %v893_v55 = vmul.f32 1.442695, %v843_v34 }
 0x2a2   : > { %v2070_v60 = vpop.eup %1294  ;;  %v844_v41 = vsub.f32 %v1906_v11, %v2056_v62  ;;  %v871_v42 = vmul.f32 1.442695, %v832_v39  ;;  %v840_v9 = vsub.f32 %v1930_v21, %v2047_v14  ;;  %v881_v13 = vmul.f32 1.442695, %v837_v4 }
 0x2a3   : > { %v2073_v57 = vpop.eup %1296  ;;  %1314 = vpow2.f32 %v889_v38  ;;  %v883_v15 = vmul.f32 1.442695, %v838_v2  ;;  %v845_v58 = vsub.f32 %v1934_v24, %v2056_v62  ;;  %v885_v44 = vmul.f32 1.442695, %v839_v48 }
 0x2a4   : > { %v2077_v0 = vpop.eup %1298  ;;  %1316 = vpow2.f32 %v891_v53  ;;  %v846_v11 = vsub.f32 %v1940_v29, %v2056_v62  ;;  %v853_v12 = vsub.f32 %v1946_v36, %v2033_v46  ;;  %v895_v17 = vmul.f32 1.442695, %v844_v41 }
 0x2a5   : > { %v1301_v6 = vpop.eup %1300  ;;  %1318 = vpow2.f32 %v877_v51  ;;  %v847_v21 = vsub.f32 %v1950_v37, %v2056_v62  ;;  %v887_v28 = vmul.f32 1.442695, %v840_v9  ;;  %v854_v24 = vsub.f32 %v1959_v52, %v2033_v46 }
 0x2a6   : > { %v1303_v5 = vpop.eup %1302  ;;  %1320 = vpow2.f32 %v867_v40  ;;  %v897_v23 = vmul.f32 1.442695, %v845_v58  ;;  %v899_v32 = vmul.f32 1.442695, %v846_v11  ;;  %v855_v36 = vsub.f32 %v1965_v61, %v2033_v46 }
 0x2a7   : > { %v1305_v1 = vpop.eup %1304  ;;  %1322 = vpow2.f32 %v893_v55  ;;  %v921_v56 = vadd.f32 %v1303_v5, %v1301_v6  ;;  %v848_v37 = vsub.f32 %v1971_v47, %v2056_v62  ;;  %v901_v51 = vmul.f32 1.442695, %v847_v21 }
 0x2a8   : > { %v1307_v7 = vpop.eup %1306  ;;  %1324 = vpow2.f32 %v869_v54  ;;  %v856_v52 = vsub.f32 %v1975_v3, %v2033_v46  ;;  %v913_v53 = vmul.f32 1.442695, %v853_v12  ;;  %v915_v39 = vmul.f32 1.442695, %v854_v24 }
 0x2a9   : > { %v1309_v16 = vpop.eup %1308  ;;  %v922_v43 = vadd.f32 %v1305_v1, %v921_v56  ;;  %1326 = vpow2.f32 %v879_v8  ;;  %v948_v4 = vsel %vm763_vm7, %v2066_v50, 0.0  ;;  %v949_v61 = vsel %vm763_vm7, %v2070_v60, 0.0 }
 0x2aa   : > { %v1311_v59 = vpop.eup %1310  ;;  %1328 = vpow2.f32 %v871_v42  ;;  %v917_v2 = vmul.f32 1.442695, %v855_v36  ;;  %v903_v8 = vmul.f32 1.442695, %v848_v37  ;;  %v919_v48 = vmul.f32 1.442695, %v856_v52 }
 0x2ab   : > { %v923_v14 = vadd.f32 %v1307_v7, %v922_v43  ;;  %1330 = vpow2.f32 %v881_v13  ;;  %v1313_v10 = vpop.eup %1312  ;;  %v930_v22 = vadd.f32 %v1311_v59, %v1309_v16  ;;  %v950_v5 = vadd.f32 %v949_v61, %v948_v4 }
 0x2ac   : > { %1332 = vpow2.f32 %v883_v15  ;;  %v951_v13 = vsel %vm763_vm7, %v2073_v57, 0.0  ;;  %v953_v12 = vsel %vm763_vm7, %v2077_v0, 0.0  ;;  %v797_v4 = vmul.f32 1.442695, %v791_v27 }
 0x2ad   : > { %v1315_v29 = vpop.eup %1314  ;;  %v924_v34 = vadd.f32 %v1313_v10, %v923_v14  ;;  %1334 = vpow2.f32 %v885_v44  ;;  %v952_v15 = vadd.f32 %v951_v13, %v950_v5  ;;  %v1008_v5 = vld [vmem:[#allocation9 + $0x8] sm:$0xff] (!%p1194_p7) }
 0x2ae   : > { %v1317_v49 = vpop.eup %1316  ;;  %1336 = vpow2.f32 %v895_v17 }
 0x2af   : > { %v1319_v38 = vpop.eup %1318  ;;  %1338 = vpow2.f32 %v887_v28  ;;  %v939_v62 = vadd.f32 %v1317_v49, %v1315_v29  ;;  %v954_v14 = vadd.f32 %v953_v12, %v952_v15 }
 0x2b0   : > { %v1321_v40 = vpop.eup %1320  ;;  %v931_v55 = vadd.f32 %v1319_v38, %v930_v22  ;;  %1340 = vpow2.f32 %v897_v23 }
 0x2b1   : > { %v1323_v54 = vpop.eup %1322  ;;  %v925_v47 = vadd.f32 %v1321_v40, %v924_v34  ;;  %1342 = vpow2.f32 %v899_v32  ;;  %v793_v40 = vmul.f32 1.442695, %v789_v45 }
 0x2b2   : > { %v1325_v6 = vpop.eup %1324  ;;  %1344 = vpow2.f32 %v901_v51  ;;  %v940_v56 = vadd.f32 %v1323_v54, %v939_v62  ;;  %v785_v54 = vld [vmem:[#allocation3] sm:$0xff] }
 0x2b3   : > { %v1327_v3 = vpop.eup %1326  ;;  %v926_v46 = vadd.f32 %v1325_v6, %v925_v47  ;;  %1346 = vpow2.f32 %v913_v53  ;;  %v799_v47 = vmul.f32 1.442695, %v792_v33 }
 0x2b4   : > { %v1329_v41 = vpop.eup %1328  ;;  %v932_v42 = vadd.f32 %v1327_v3, %v931_v55  ;;  %1348 = vpow2.f32 %v915_v39  ;;  %v795_v55 = vmul.f32 1.442695, %v790_v20 }
 0x2b5   : > { %v1331_v50 = vpop.eup %1330  ;;  %v927_v1 = vadd.f32 %v1329_v41, %v926_v46  ;;  %1350 = vpow2.f32 %v917_v2 }
 0x2b6   : > { %v1333_v60 = vpop.eup %1332  ;;  %v933_v9 = vadd.f32 %v1331_v50, %v932_v42  ;;  %1352 = vpow2.f32 %v903_v8  ;;  %v1013_v42 = vsel (!%p1194_p7), %vm1009_vm14, %v1008_v5, -inf }
 0x2b7   : > { %v1335_v7 = vpop.eup %1334  ;;  %928 = vadd.xlane.f32.xlu1 %v927_v1  ;;  %1354 = vpow2.f32 %v919_v48  ;;  %v1007_v48 = vld [vmem:[#allocation9] sm:$0xff] (!%p1194_p7) }
 0x2b8   : > { %v1337_v58 = vpop.eup %1336  ;;  %v934_v16 = vadd.f32 %v1333_v60, %v933_v9  ;;  %1356 = vpow2.f32 %v793_v40  ;;  %v1010_v41 = vsel (!%p1194_p7), %vm1009_vm14, %v1007_v48, -inf }
 0x2b9   : > { %v1339_v43 = vpop.eup %1338  ;;  %v941_v44 = vadd.f32 %v1337_v58, %v940_v56  ;;  %1358 = vpow2.f32 %v795_v55 }
 0x2ba   : > { %v1341_v11 = vpop.eup %1340  ;;  %v935_v59 = vadd.f32 %v1335_v7, %v934_v16  ;;  %1360 = vpow2.f32 %v797_v4 }
 0x2bb   : > { %v1343_v17 = vpop.eup %1342  ;;  %v942_v21 = vadd.f32 %v1341_v11, %v941_v44  ;;  %1362 = vpow2.f32 %v799_v47 }
 0x2bc   : > { %v1345_v28 = vpop.eup %1344  ;;  %v936_v24 = vadd.f32 %v1339_v43, %v935_v59 }
 0x2bd   : > { %v1347_v10 = vpop.eup %1346  ;;  %v943_v57 = vadd.f32 %v1343_v17, %v942_v21 }
 0x2be   : > { %v1349_v22 = vpop.eup %1348  ;;  %937 = vadd.xlane.f32.xlu0 %v936_v24  ;;  %v955_v23 = vsel %vm763_vm7, %v1347_v10, 0.0  ;;  %v984_v24 = vld [vmem:[#allocation2 + $0x8] sm:$0xff] (!%p1194_p7)  ;;  %v985_v10 = vld [vmem:[#allocation2 + $0x10] sm:$0xff] (!%p1194_p7) }
 0x2bf   : > { %v1351_v29 = vpop.eup %1350  ;;  %v944_v34 = vadd.f32 %v1345_v28, %v943_v57  ;;  %v956_v32 = vadd.f32 %v955_v23, %v954_v14  ;;  %v957_v49 = vsel %vm763_vm7, %v1349_v22, 0.0  ;;  %v983_v28 = vld [vmem:[#allocation2] sm:$0xff] (!%p1194_p7)  ;;  %v986_v23 = vld [vmem:[#allocation2 + $0x18] sm:$0x1] (!%p1194_p7) }
 0x2c0   : > { %v1353_v36 = vpop.eup %1352  ;;  %v959_v38 = vsel %vm763_vm7, %v1351_v29, 0.0 }
 0x2c1   : > { %v1355_v37 = vpop.eup %1354  ;;  %v945_v51 = vadd.f32 %v1353_v36, %v944_v34  ;;  %v958_v0 = vadd.f32 %v957_v49, %v956_v32 }
 0x2c2   : > { %v961_v53 = vsel %vm763_vm7, %v1355_v37, 0.0  ;;  %v1357_v61 = vpop.eup %1356  ;;  %1011 = vmax.xlane.f32.xlu0 (!%p1194_p7), %v1010_v41 }
 0x2c3   : > { %946 = vadd.xlane.f32.xlu1 %v945_v51  ;;  %v960_v52 = vadd.f32 %v959_v38, %v958_v0  ;;  %v801_v62 = vmul.f32 %v1357_v61, %v785_v54  ;;  %v1359_v45 = vpop.eup %1358 }
 0x2c4   : > { %v802_v19 = vmul.f32 %v1359_v45, %v786_v18  ;;  %v1361_v2 = vpop.eup %1360 }
 0x2c5   : > { %v962_v39 = vadd.f32 %v961_v53, %v960_v52  ;;  %v803_v27 = vmul.f32 %v1361_v2, %v787_v63  ;;  %v1363_v6 = vpop.eup %1362 }
 0x2c6   : > { %v804_v33 = vmul.f32 %v1363_v6, %v788_v26  ;;  %1014 = vmax.xlane.f32.xlu0 (!%p1194_p7), %v1013_v42 }
 0x2c7   : > { %963 = vadd.xlane.f32.xlu1 %v962_v39 }
 0x344   : > { %v929_v31 = vpop.xlane.xlu1 %928 }
 0x345   : > { %v965_v35 = vadd.f32 %v929_v31, %v801_v62 }
 0x347   : > { %970 = vst.msk [vmem:[#allocation3] sm:$0xff] %vm969_vm12, %v965_v35 }
 0x34b   : > { %v938_v20 = vpop.xlane.xlu0 %937 }
 0x34c   : > { %v966_v25 = vadd.f32 %v938_v20, %v802_v19 }
 0x34e   : > { %971 = vst.msk [vmem:[#allocation3 + $0x8] sm:$0xff] %vm969_vm12, %v966_v25  ;;  %v987_v43 = vld [vmem:[#allocation3] sm:$0xff] (!%p1194_p7) }
 0x34f   : > { %v1012_v50 = vpop.xlane.xlu0 (!%p1194_p7), %1011 }
 0x350   : > { %v947_v8 = vpop.xlane.xlu1 %946  ;;  %v1016_v1 = vsub.f32 (!%p1194_p7), %v1007_v48, %v1012_v50 }
 0x351   : > { %v967_v30 = vadd.f32 %v947_v8, %v803_v27  ;;  %982 = sbr.rel (%p1194_p7) target bundleno = 1024 (0x400), region = 52 }
 0x352   : > { %v1018_v56 = vmul.f32 (!%p1194_p7), 1.442695, %v1016_v1 }
 0x353   : > { %972 = vst.msk [vmem:[#allocation3 + $0x10] sm:$0xff] %vm969_vm12, %v967_v30  ;;  %v1015_v60 = vpop.xlane.xlu0 (!%p1194_p7), %1014 }
 0x354   : > { %v964_v3 = vpop.xlane.xlu1 %963  ;;  %1364 = vpow2.f32 (!%p1194_p7), %v1018_v56  ;;  %v1017_v9 = vsub.f32 (!%p1194_p7), %v1008_v5, %v1015_v60 }
 0x355   : > { %v968_v46 = vadd.f32 %v964_v3, %v804_v33  ;;  %v988_v44 = vld [vmem:[#allocation3 + $0x8] sm:$0xff] (!%p1194_p7) }
 0x356   : > { %v1020_v13 = vmul.f32 (!%p1194_p7), 1.442695, %v1017_v9 }
 0x357   : > { %974 = vst.msk [vmem:[#allocation3 + $0x18] sm:$0x1] %vm973_vm13, %v968_v46 }
 0x358   : > { %1366 = vpow2.f32 %v1020_v13 }
 0x359   : > { %1368 = vlog2.f32 %v987_v43 }
 0x35a   : > { %v989_v11 = vld [vmem:[#allocation3 + $0x10] sm:$0xff]  ;;  %1370 = vlog2.f32 %v988_v44 }
 0x35b   : > { %1372 = vlog2.f32 %v989_v11 }
 0x35e   : > { %v1365_v7 = vpop.eup %1364  ;;  %v990_v59 = vld [vmem:[#allocation3 + $0x18] sm:$0x1] }
 0x35f   : > { %v1022_v15 = vsel %vm1009_vm14, %v1365_v7, 0.0  ;;  %1374 = vlog2.f32 %v990_v59 }
 0x360   : > { %1023 = vadd.xlane.f32.xlu1 %v1022_v15 }
 0x362   : > { %v1367_v58 = vpop.eup %1366 }
 0x363   : > { %v1025_v16 = vsel %vm1009_vm14, %v1367_v58, 0.0  ;;  %v1369_v12 = vpop.eup %1368 }
 0x364   : > { %1026 = vadd.xlane.f32.xlu1 %v1025_v16  ;;  %v1371_v17 = vpop.eup %1370  ;;  %v992_v21 = vmul.f32 0.6931472, %v1369_v12 }
 0x365   : > { %v1373_v14 = vpop.eup %1372  ;;  %v994_v57 = vmul.f32 0.6931472, %v1371_v17 }
 0x366   : > { %v996_v29 = vmul.f32 0.6931472, %v1373_v14  ;;  %v999_v34 = vadd.f32 %v992_v21, %v983_v28 }
 0x367   : > { %v1000_v36 = vadd.f32 %v994_v57, %v984_v24 }
 0x368   : > { %v1001_v49 = vadd.f32 %v996_v29, %v985_v10  ;;  %1003 = vst.msk [vmem:[#allocation10] sm:$0xff] %vm969_vm12, %v999_v34 }
 0x369   : > { %v1375_v22 = vpop.eup %1374  ;;  %1004 = vst.msk [vmem:[#allocation10 + $0x8] sm:$0xff] %vm969_vm12, %v1000_v36 }
 0x36a   : > { %v998_v32 = vmul.f32 0.6931472, %v1375_v22  ;;  %1005 = vst.msk [vmem:[#allocation10 + $0x10] sm:$0xff] %vm969_vm12, %v1001_v49 }
 0x36c   : > { %v1002_v37 = vadd.f32 %v998_v32, %v986_v23 }
 0x36e   : > { %1006 = vst.msk [vmem:[#allocation10 + $0x18] sm:$0x1] %vm973_vm13, %v1002_v37 }
 0x3ed   : > { %v1024_v51 = vpop.xlane.xlu1 %1023 }
 0x3ee   : > { %1376 = vrcp.f32 %v1024_v51 }
 0x3f1   : > { %v1027_v0 = vpop.xlane.xlu1 %1026 }
 0x3f2   : > { %1378 = vrcp.f32 %v1027_v0 }
 0x3f8   : > { %v1377_v38 = vpop.eup %1376 }
 0x3f9   : > { %v1029_v52 = vmul.f32 %v1377_v38, %v1365_v7 }
 0x3fb   : > { %1032 = vst.msk [vmem:[#allocation11] sm:$0xff] %vm1009_vm14, %v1029_v52 }
 0x3fc   : > { %v1379_v53 = vpop.eup %1378 }
 0x3fd   : > { %v1031_v39 = vmul.f32 %v1379_v53, %v1367_v58 }
 0x3ff   : > { %1033 = vst.msk [vmem:[#allocation11 + $0x8] sm:$0xff] %vm1009_vm14, %v1031_v39 }
 0x400 PF: > { %p1236_p11 = scmp.eq.s32.totalorder %s1631_s19, 1  ;;  %s1583_s26 = smov [#allocation10]  }
 0x401   : > { %s1040_s30 = sshll.u32 %s1583_s26, 4  ;;  %s1041_s30 = int_to_ptr.vmem [resolvable:$true] %s1040_s30 }
 0x402   : > { %s1466_s7 = scalar_lea.vmem %s1041_s30, 512  ;;  %p1473_p10 = scmp.lt.s32.totalorder %s1041_s30, %s1041_s30 }
 0x403   : > { %p1467_p13 = scmp.ne.s32.totalorder %s1041_s30, %s1466_s7  ;;  %p1474_p0 = scmp.lt.s32.totalorder %s1466_s7, %s1466_s7 }
 0x405   : > { %p1468_p12 = pnand %p1467_p13, %p1236_p11  ;;  %p1475_p5 = por %p1474_p0, %p1473_p10 }
 0x407   : > { %p1469_p8 = pneg %p1468_p12 }
 0x409   : > { %p1476_p9 = pnand %p1475_p5, %p1469_p8 }
 0x40b   : > { %1479 = shalt.err (!%p1476_p9)
}
 0x40c   : > { %s1480_s28 = scalar_lea.hbm %s2203_s3, 512 }
 0x40d   : > { %p1481_p1 = scmp.ne.s32.totalorder %s2203_s3, %s1480_s28  ;;  %p1486_p6 = scmp.lt.u32.totalorder %s1480_s28, %s2203_s3 }
 0x40f   : > { %p1482_p3 = pnand %p1481_p1, %p1236_p11 }
 0x411   : > { %p1483_p2 = pneg %p1482_p3 }
 0x413   : > { %p1488_p4 = pnand %p1486_p6, %p1483_p2 }
 0x415   : > { %1491 = shalt.err (!%p1488_p4)
}
 0x416   : > { %s1584_s15 = smov 128   ;;  %s1585_s21 = smov 8  }
 0x417   : > { %1213 = dma.vmem_to_hbm [thread:$0]  (%p1236_p11), %s1041_s30, 512, %s2203_s3, [#allocation6], %s1584_s15, %s1584_s15, %s1585_s21  }
 0x418   : > { %s1586_s5 = smov [#allocation11]  }
 0x419   : > { %s1053_s6 = sshll.u32 %s1586_s5, 4  ;;  %s1054_s6 = int_to_ptr.vmem [resolvable:$true] %s1053_s6 }
 0x41a   : > { %s1492_s8 = scalar_lea.vmem %s1054_s6, 256  ;;  %p1499_p8 = scmp.lt.s32.totalorder %s1054_s6, %s1054_s6 }
 0x41b   : > { %p1493_p7 = scmp.ne.s32.totalorder %s1054_s6, %s1492_s8  ;;  %p1500_p10 = scmp.lt.s32.totalorder %s1492_s8, %s1492_s8 }
 0x41d   : > { %p1494_p13 = pnand %p1493_p7, %p1236_p11  ;;  %p1501_p0 = por %p1500_p10, %p1499_p8 }
 0x41f   : > { %p1495_p12 = pneg %p1494_p13 }
 0x421   : > { %p1502_p5 = pnand %p1501_p0, %p1495_p12 }
 0x423   : > { %1505 = shalt.err (!%p1502_p5)
}
 0x424   : > { %s1506_s10 = scalar_lea.hbm %s2204_s4, 256 }
 0x425   : > { %p1507_p9 = scmp.ne.s32.totalorder %s2204_s4, %s1506_s10  ;;  %p1512_p2 = scmp.lt.u32.totalorder %s1506_s10, %s2204_s4 }
 0x427   : > { %p1508_p1 = pnand %p1507_p9, %p1236_p11 }
 0x429   : > { %p1509_p3 = pneg %p1508_p1 }
 0x42b   : > { %p1514_p6 = pnand %p1512_p2, %p1509_p3 }
 0x42d   : > { %1517 = shalt.err (!%p1514_p6)
}
 0x42e   : > { %1215 = dma.vmem_to_hbm [thread:$0]  (%p1236_p11), %s1054_s6, 256, %s2204_s4, [#allocation12], %s1584_s15, %s1584_s15, %s1585_s21  }
 0x42f   : > { %1547 = dma.done.wait (%p1236_p11), [#allocation6], 512  }
 0x430   : > { %1549 = vsyncadd (%p1236_p11), [#allocation6], 4294966784 }
 0x431   : > { %1551 = dma.done.wait (%p1236_p11), [#allocation12], 256  }
 0x432   : > { %1553 = vsyncadd (%p1236_p11), [#allocation12], 4294967040 }
 0x433 PF: > { %p18_p4 = scmp.ge.s32.totalorder %s1634_s20, 4   ;;  %s2222_s15 = smov %s1560_s16 }
 0x434   : > { %s2223_s16 = smov %s1564_s17  ;;  %s2224_s17 = smov %s1644_s23 }
 0x435   : > { %s2225_s18 = smov %s1634_s20  ;;  %20 = sbr.rel (!%p18_p4) target bundleno = 6 (0x6), region = 94 }
 0x43c   :  { %1073 = vsyncpa [#allocation5], 1 }
 0x43d   :  { %1075 = vsyncpa [#allocation5 + $0x1], 1 }
 0x43e   :  { %1076 = vsyncpa [#allocation8], 1 }
 0x43f   :  { %1078 = vsyncpa [#allocation8 + $0x1], 1 }
 0x440   :  { %1079 = vsyncpa [#allocation6], 1 }
 0x441   :  { %1081 = vsyncpa [#allocation6 + $0x1], 1 }
 0x442   :  { %1082 = vsyncpa [#allocation12], 1 }

// kernel: ntsntm_forward.6
= control target key start
LH: loop header
LB: loop body
LE: loop exit
PB: predicated region body
PF: predicated region fallthrough
CT: control target
= control target key end

     0   :  { %s5390_s0 = inlined_call_operand.hbm [shape: bf16[32,2048], index: 0, kind: input, shape index: {}]   ;;  %s5391_s1 = inlined_call_operand.hbm [shape: bf16[2048,64], index: 1, kind: input, shape index: {}]   ;;  %s5392_s2 = inlined_call_operand.hbm [shape: f32[32,64], index: 2, kind: input, shape index: {}]   ;;  %s5393_s3 = inlined_call_operand.hbm [shape: f32[32,16], index: 3, kind: input, shape index: {}]   ;;  %s5394_s4 = inlined_call_operand.hbm [shape: f32[1,64], index: 4, kind: input, shape index: {}]   ;;  %s5395_s5 = inlined_call_operand.hbm [shape: f32[64,160], index: 5, kind: input, shape index: {}]   ;;  %s5396_s6 = inlined_call_operand.hbm [shape: f32[1,160], index: 6, kind: input, shape index: {}]   ;;  %s5397_s7 = inlined_call_operand.hbm [shape: f32[64,64], index: 7, kind: input, shape index: {}]   ;;  %s5398_s8 = inlined_call_operand.hbm [shape: f32[1,64], index: 8, kind: input, shape index: {}]   ;;  %s5399_s9 = inlined_call_operand.hbm [shape: f32[64,3], index: 9, kind: input, shape index: {}]   ;;  %s5400_s10 = inlined_call_operand.hbm [shape: f32[1,3], index: 10, kind: input, shape index: {}]   ;;  %s5401_s11 = inlined_call_operand.hbm [shape: f32[16,8], index: 11, kind: input, shape index: {}]   ;;  %s5402_s12 = inlined_call_operand.hbm [shape: f32[16,16], index: 12, kind: input, shape index: {}]   ;;  %s5403_s13 = inlined_call_operand.hbm [shape: f32[32,128], index: 13, kind: output, shape index: {}]  }
   0x1   :  { %5447 = sst [smem:[#allocation48_spill]] %s5390_s0 }
   0x2   :  { %5448 = sst [smem:[#allocation49_spill]] %s5391_s1 }
   0x3   :  { %5449 = sst [smem:[#allocation50_spill]] %s5392_s2 }
   0x4   :  { %5450 = sst [smem:[#allocation51_spill]] %s5393_s3 }
   0x5   :  { %5451 = sst [smem:[#allocation52_spill]] %s5394_s4 }
   0x6   :  { %5452 = sst [smem:[#allocation53_spill]] %s5395_s5 }
   0x7   :  { %5453 = sst [smem:[#allocation54_spill]] %s5396_s6 }
   0x8   :  { %5454 = sst [smem:[#allocation55_spill]] %s5397_s7 }
   0x9   :  { %5455 = sst [smem:[#allocation56_spill]] %s5398_s8 }
   0xa   :  { %5456 = sst [smem:[#allocation57_spill]] %s5399_s9 }
   0xb   :  { %5457 = sst [smem:[#allocation58_spill]] %s5400_s10 }
   0xc   :  { %5458 = sst [smem:[#allocation59_spill]] %s5401_s11 }
   0xd   :  { %5459 = sst [smem:[#allocation60_spill]] %s5402_s12 }
   0xe   :  { %5460 = sst [smem:[#allocation61_spill]] %s5403_s13 }
   0xf   :  { %18 = vsyncpa [#allocation4], 0 }
  0x10   :  { %20 = vsyncpa [#allocation4 + $0x1], 0 }
  0x11   :  { %21 = vsyncpa [#allocation7], 0 }
  0x12   :  { %23 = vsyncpa [#allocation7 + $0x1], 0 }
  0x13   :  { %24 = vsyncpa [#allocation10], 0 }
  0x14   :  { %26 = vsyncpa [#allocation10 + $0x1], 0 }
  0x15   :  { %27 = vsyncpa [#allocation13], 0 }
  0x16   :  { %28 = vsyncpa [#allocation16], 0 }
  0x17   :  { %29 = vsyncpa [#allocation19], 0 }
  0x18   :  { %30 = vsyncpa [#allocation22], 0 }
  0x19   :  { %31 = vsyncpa [#allocation5], 0 }
  0x1a   :  { %33 = vsyncpa [#allocation5 + $0x1], 0  ;;  %s4079_s25 = smov 0   ;;  %s4081_s26 = smov 0  }
  0x1b   :  { %s4083_s27 = smov 0   ;;  %s4085_s28 = smov 0  }
  0x1c   :  { %s4087_s29 = smov 0   ;;  %s4089_s30 = smov 0  }
  0x1d   :  { %s4091_s14 = smov 0   ;;  %s4093_s15 = smov 0  }
  0x1e   :  { %s4095_s16 = smov 0   ;;  %s4097_s17 = smov 0  }
  0x1f   :  { %s4099_s18 = smov 0   ;;  %s4101_s19 = smov 0  }
  0x20   :  { %s4103_s20 = smov 0   ;;  %s4105_s21 = smov 0  }
  0x21 LB: > { %5461 = sst [smem:[#allocation35_spill]] %s3918_s25  ;;  %s4150_s22 = sadd.s32 4294967295, %s3970_s21   ;;  %s3970_s21 = sphi %s4105_s21, %s39_s21   ;;  %s3966_s20 = sphi %s4103_s20, %s5620_s20   ;;  %s3962_s19 = sphi %s4101_s19, %s5619_s19   ;;  %s3958_s18 = sphi %s4099_s18, %s5618_s18   ;;  %s3954_s17 = sphi %s4097_s17, %s5617_s17   ;;  %s3950_s16 = sphi %s4095_s16, %s5626_s16   ;;  %s3946_s15 = sphi %s4093_s15, %s5625_s15   ;;  %s3942_s14 = sphi %s4091_s14, %s5615_s14   ;;  %s3938_s30 = sphi %s4089_s30, %s5624_s30   ;;  %s3934_s29 = sphi %s4087_s29, %s5623_s29   ;;  %s3930_s28 = sphi %s4085_s28, %s5622_s28   ;;  %s3926_s27 = sphi %s4083_s27, %s4536_s27   ;;  %s3922_s26 = sphi %s4081_s26, %s5614_s26   ;;  %s3918_s25 = sphi %s4079_s25, %s5613_s25  }
  0x22   : > { %5462 = sst [smem:[#allocation36_spill]] %s3922_s26  ;;  %p2464_p0 = scmp.ge.s32.totalorder %s3970_s21, 1 }
  0x23   : > { %5463 = sst [smem:[#allocation37_spill]] %s3926_s27  ;;  %p5412_p1 = scmp.eq.s32.totalorder %s4150_s22, 0 }
  0x24   : > { %5464 = sst [smem:[#allocation38_spill]] %s3942_s14  ;;  %p377_p2 = scmp.lt.s32.totalorder %s3970_s21, 5 }
  0x25   : > { %5465 = sst [smem:[#allocation39_spill]] %s3946_s15  ;;  %s3972_s24 = smov [#allocation11]  }
  0x26   : > { %5466 = sst [smem:[#allocation40_spill]] %s3950_s16  ;;  %p4155_p3 = pnand %p2464_p0, %p377_p2 }
  0x27   : > { %5467 = sst [smem:[#allocation41_spill]] %s3954_s17  ;;  %s390_s13 = sshll.u32 %s3972_s24, 4  ;;  %s391_s13 = int_to_ptr.vmem [resolvable:$true] %s390_s13 }
  0x28   : > { %5468 = sst [smem:[#allocation42_spill]] %s3958_s18  ;;  %p3079_p4 = pneg %p4155_p3 }
  0x29   : > { %5469 = sst [smem:[#allocation43_spill]] %s3962_s19  ;;  %s3973_s18 = smov [#allocation12]  }
  0x2a   : > { %5470 = sst [smem:[#allocation44_spill]] %s3966_s20  ;;  %s400_s17 = sshll.u32 %s3973_s18, 4  ;;  %s4167_s17 = int_to_ptr.vmem [resolvable:$true] %s400_s17 }
  0x2b   : > { %s5471_s23 = scalar_select %p4155_p3, 1, 0 }
  0x2c   : > { %p4163_p5 = pnand %p3079_p4, %p5412_p1  ;;  %s3974_s2 = smov [#allocation15]  }
  0x2d   : > { %5472 = sst [smem:[#allocation45_spill]] %s5471_s23  ;;  %s4169_s25 = sshll.u32 %s3974_s2, 4  ;;  %s425_s25 = int_to_ptr.vmem [resolvable:$true] %s4169_s25 }
  0x2e   : > { %s5473_s3 = scalar_select %p4163_p5, 1, 0 }
  0x2f   : > { %s5474_s4 = sld [smem:[#allocation52_spill]]  ;;  %p4179_p7 = pneg %p4163_p5 }
  0x35   : > { %s3420_s24 = scalar_lea.hbm %s5474_s4, 16 }
  0x36   : > { %p3421_p6 = scmp.ne.s32.totalorder %s5474_s4, %s3420_s24  ;;  %p3427_p10 = scmp.lt.u32.totalorder %s3420_s24, %s5474_s4 }
  0x38   : > { %p3423_p8 = pnand %p4179_p7, %p3421_p6 }
  0x3a   : > { %p3424_p9 = pneg %p3423_p8 }
  0x3c   : > { %p3429_p11 = pnand %p3427_p10, %p3424_p9 }
  0x3e   : > { %3432 = shalt.err (!%p3429_p11)
}
  0x3f   : > { %s3433_s26 = scalar_lea.vmem %s391_s13, 16  ;;  %s3440_s0 = scalar_lea.vmem %s391_s13, 32 }
  0x40   : > { %p3434_p12 = scmp.ne.s32.totalorder %s391_s13, %s3433_s26  ;;  %p3441_p2 = scmp.lt.s32.totalorder %s391_s13, %s391_s13 }
  0x41   : > { %p3442_p4 = scmp.lt.s32.totalorder %s3440_s0, %s3433_s26 }
  0x42   : > { %p3436_p13 = pnand %p3434_p12, %p4179_p7 }
  0x43   : > { %p3443_p1 = por %p3442_p4, %p3441_p2 }
  0x44   : > { %p3437_p0 = pneg %p3436_p13 }
  0x46   : > { %p3444_p3 = pnand %p3443_p1, %p3437_p0 }
  0x48   : > { %3447 = shalt.err (!%p3444_p3)
}
  0x49   : > { %3082 = dma.hbm_to_vmem [thread:$0]  (!%p4163_p5), %s5474_s4, 16, %s391_s13, [#allocation10]  }
  0x4a   : > { %s5476_s5 = sld [smem:[#allocation53_spill]] }
  0x50   : > { %s3448_s2 = scalar_lea.hbm %s5476_s5, 2048 }
  0x51   : > { %p3449_p6 = scmp.ne.s32.totalorder %s5476_s5, %s3448_s2  ;;  %p3455_p1 = scmp.lt.u32.totalorder %s3448_s2, %s5476_s5 }
  0x53   : > { %p3451_p8 = pnand %p3449_p6, %p4179_p7 }
  0x55   : > { %p3452_p9 = pneg %p3451_p8 }
  0x57   : > { %p3457_p3 = pnand %p3455_p1, %p3452_p9 }
  0x59   : > { %3460 = shalt.err (!%p3457_p3)
}
  0x5a   : > { %s3461_s13 = scalar_lea.vmem %s4167_s17, 2048  ;;  %p3469_p13 = scmp.lt.s32.totalorder %s4167_s17, %s4167_s17 }
  0x5b   : > { %p3462_p10 = scmp.ne.s32.totalorder %s4167_s17, %s3461_s13  ;;  %p3470_p0 = scmp.lt.s32.totalorder %s3461_s13, %s3461_s13 }
  0x5d   : > { %p3464_p11 = pnand %p3462_p10, %p4179_p7  ;;  %p3471_p2 = por %p3470_p0, %p3469_p13 }
  0x5f   : > { %p3465_p12 = pneg %p3464_p11 }
  0x61   : > { %p3472_p4 = pnand %p3471_p2, %p3465_p12 }
  0x63   : > { %3475 = shalt.err (!%p3472_p4)
}
  0x64   : > { %s3975_s15 = smov 256   ;;  %s3976_s16 = smov 16  }
  0x65   : > { %3085 = dma.hbm_to_vmem [thread:$0]  (!%p4163_p5), %s5476_s5, 2048, %s4167_s17, [#allocation13], %s3975_s15, %s3975_s15, %s3976_s16  }
  0x66   : > { %s5477_s7 = sld [smem:[#allocation55_spill]] }
  0x6c   : > { %s3476_s2 = scalar_lea.hbm %s5477_s7, 1024 }
  0x6d   : > { %p3477_p6 = scmp.ne.s32.totalorder %s5477_s7, %s3476_s2  ;;  %p3483_p1 = scmp.lt.u32.totalorder %s3476_s2, %s5477_s7 }
  0x6f   : > { %p3479_p8 = pnand %p3477_p6, %p4179_p7 }
  0x71   : > { %p3480_p9 = pneg %p3479_p8 }
  0x73   : > { %p3485_p3 = pnand %p3483_p1, %p3480_p9 }
  0x75   : > { %3488 = shalt.err (!%p3485_p3)
}
  0x76   : > { %s3489_s27 = scalar_lea.vmem %s425_s25, 1024  ;;  %p3497_p13 = scmp.lt.s32.totalorder %s425_s25, %s425_s25 }
  0x77   : > { %p3490_p10 = scmp.ne.s32.totalorder %s425_s25, %s3489_s27  ;;  %p3498_p0 = scmp.lt.s32.totalorder %s3489_s27, %s3489_s27 }
  0x79   : > { %p3492_p11 = pnand %p3490_p10, %p4179_p7  ;;  %p3499_p2 = por %p3498_p0, %p3497_p13 }
  0x7b   : > { %p3493_p12 = pneg %p3492_p11 }
  0x7d   : > { %p3500_p4 = pnand %p3499_p2, %p3493_p12 }
  0x7f   : > { %3503 = shalt.err (!%p3500_p4)
}
  0x80   : > { %s5418_s17 = smov 128   ;;  %s5420_s15 = smov 8  }
  0x81   : > { %3091 = dma.hbm_to_vmem [thread:$0]  (!%p4163_p5), %s5477_s7, 1024, %s425_s25, [#allocation16], %s5418_s17, %s5418_s17, %s5420_s15  }
  0x82   : > { %s3979_s23 = smov [#allocation18]   ;;  %s3980_s24 = smov [#allocation21]  }
  0x83   : > { %s448_s14 = sshll.u32 %s3979_s23, 4  ;;  %s472_s2 = sshll.u32 %s3980_s24, 4  ;;  %s449_s14 = int_to_ptr.vmem [resolvable:$true] %s448_s14  ;;  %s473_s2 = int_to_ptr.vmem [resolvable:$true] %s472_s2 }
  0x84   : > { %s5478_s9 = sld [smem:[#allocation57_spill]] }
  0x8a   : > { %s3504_s13 = scalar_lea.hbm %s5478_s9, 1024 }
  0x8b   : > { %p3505_p6 = scmp.ne.s32.totalorder %s5478_s9, %s3504_s13  ;;  %p3511_p1 = scmp.lt.u32.totalorder %s3504_s13, %s5478_s9 }
  0x8d   : > { %p3507_p8 = pnand %p3505_p6, %p4179_p7 }
  0x8f   : > { %p3508_p9 = pneg %p3507_p8 }
  0x91   : > { %p3513_p3 = pnand %p3511_p1, %p3508_p9 }
  0x93   : > { %3516 = shalt.err (!%p3513_p3)
}
  0x94   : > { %s3517_s25 = scalar_lea.vmem %s449_s14, 1024  ;;  %p3525_p13 = scmp.lt.s32.totalorder %s449_s14, %s449_s14 }
  0x95   : > { %p3518_p10 = scmp.ne.s32.totalorder %s449_s14, %s3517_s25  ;;  %p3526_p0 = scmp.lt.s32.totalorder %s3517_s25, %s3517_s25 }
  0x97   : > { %p3520_p11 = pnand %p3518_p10, %p4179_p7  ;;  %p3527_p2 = por %p3526_p0, %p3525_p13 }
  0x99   : > { %p3521_p12 = pneg %p3520_p11 }
  0x9b   : > { %p3528_p4 = pnand %p3527_p2, %p3521_p12 }
  0x9d   : > { %3531 = shalt.err (!%p3528_p4)
}
  0x9e   : > { %3097 = dma.hbm_to_vmem [thread:$0]  (!%p4163_p5), %s5478_s9, 1024, %s449_s14, [#allocation19], %s5418_s17, %s5418_s17, %s5420_s15  }
  0x9f   : > { %s5479_s11 = sld [smem:[#allocation59_spill]] }
  0xa5   : > { %s3532_s16 = scalar_lea.hbm %s5479_s11, 256 }
  0xa6   : > { %p3533_p6 = scmp.ne.s32.totalorder %s5479_s11, %s3532_s16  ;;  %p3539_p1 = scmp.lt.u32.totalorder %s3532_s16, %s5479_s11 }
  0xa8   : > { %p3535_p8 = pnand %p3533_p6, %p4179_p7 }
  0xaa   : > { %p3536_p9 = pneg %p3535_p8 }
  0xac   : > { %p3541_p3 = pnand %p3539_p1, %p3536_p9 }
  0xae   : > { %3544 = shalt.err (!%p3541_p3)
}
  0xaf   : > { %s3545_s13 = scalar_lea.vmem %s473_s2, 256  ;;  %p3553_p13 = scmp.lt.s32.totalorder %s473_s2, %s473_s2 }
  0xb0   : > { %p3546_p10 = scmp.ne.s32.totalorder %s473_s2, %s3545_s13  ;;  %p3554_p0 = scmp.lt.s32.totalorder %s3545_s13, %s3545_s13 }
  0xb2   : > { %p3548_p11 = pnand %p3546_p10, %p4179_p7  ;;  %p3555_p2 = por %p3554_p0, %p3553_p13 }
  0xb4   : > { %p3549_p12 = pneg %p3548_p11 }
  0xb6   : > { %p3556_p4 = pnand %p3555_p2, %p3549_p12 }
  0xb8   : > { %3559 = shalt.err (!%p3556_p4)
}
  0xb9   : > { %3103 = dma.hbm_to_vmem [thread:$0]  (!%p4163_p5), %s5479_s11, 256, %s473_s2, [#allocation22], %s5418_s17, %s5418_s17, %s5420_s15  }
  0xba   : > { %s48_s25 = sadd.s32 1, %s3962_s19  ;;  %s51_s5 = sadd.s32 1, %s3966_s20 }
  0xbb   : > { %p49_p6 = scmp.ge.s32.totalorder %s48_s25, 2  ;;  %p5423_p8 = scmp.eq.s32.totalorder %s3970_s21, 0 }
  0xbc   : > { %s86_s10 = sadd.s32 1, %s3938_s30  ;;  %p93_p9 = scmp.ne.s32.totalorder %s3938_s30, %s3934_s29 }
  0xbd   : > { %s5628_s25 = smov (%p49_p6, %s48_s25), 0  ;;  %s5630_s5 = smov (!%p49_p6, %s51_s5), %s3966_s20 }
  0xbe   : > { %5480 = sst [smem:[#allocation46_spill]] %s5628_s25  ;;  %s56_s12 = ssub.s32 %s3962_s19, %s5628_s25 }
  0xbf   : > { %p53_p1 = scmp.ge.s32.totalorder %s5630_s5, 2  ;;  %p84_p3 = scmp.eq.s32.totalorder %s56_s12, 0 }
  0xc0   : > { %p4295_p10 = por %p93_p9, %p5423_p8  ;;  %p99_p11 = scmp.ne.s32.totalorder %s3934_s29, %s3930_s28 }
  0xc1   : > { %s5632_s5 = smov (%p53_p1, %s5630_s5), 0  ;;  %p5483_p12 = scmp.eq.s32.totalorder %s4150_s22, 0 }
  0xc2   : > { %5482 = sst [smem:[#allocation47_spill]] %s5632_s5  ;;  %s4308_s16 = ssub.s32 %s3966_s20, %s5632_s5 }
  0xc3   : > { %s4304_s4 = scalar_select %p84_p3, %s3938_s30, %s86_s10  }
  0xc4   : > { %p4312_p13 = por %p99_p11, %p5483_p12  ;;  %s57_s24 = sor.u32 %s56_s12, %s4308_s16 }
  0xc5   : > { %p4318_p2 = scmp.eq.s32.totalorder %s57_s24, 0  ;;  %p5422_p4 = scmp.lt.s32.totalorder %s3970_s21, 4 }
  0xc6   : > { %s5484_s23 = scalar_select %p4312_p13, 1, 0 }
  0xc7   : > { %s5485_s28 = scalar_select %p4318_p2, 1, 0 }
  0xc8   : > { %s5425_s26 = sand.u32 1, %s3970_s21   ;;  %s525_s0 = sand.u32 1, %s3938_s30  }
  0xc9   : > { %s2480_s13 = sshll.u32 %s525_s0, 9  ;;  %s2597_s14 = sshll.u32 %s3962_s19, 13 }
  0xca   : > { %s5486_s1 = sld [smem:[#allocation49_spill]]  ;;  %s527_s12 = scalar_lea.vmem [#allocation6], %s2480_s13 }
  0xcb   : > { %s534_s15 = sshll.u32 %s527_s12, 4  ;;  %p4337_p6 = pnand %p5422_p4, %p4295_p10  ;;  %s4331_s15 = int_to_ptr.vmem [resolvable:$true] %s534_s15 }
  0xcc   : > { %s4343_s0 = scalar_lea.sflag [#allocation7], %s5425_s26 }
  0xcd   : > { %p3562_p1 = pneg %p4337_p6 }
  0xd0   : > { %s4329_s17 = scalar_lea.hbm %s5486_s1, %s2597_s14  ;;  %s3565_s27 = scalar_lea.hbm %s5486_s1, 16384 }
  0xd1   : > { %s3560_s14 = scalar_lea.hbm %s4329_s17, 8192  ;;  %p3566_p10 = scmp.lt.u32.totalorder %s4329_s17, %s5486_s1 }
  0xd2   : > { %p3561_p9 = scmp.ne.s32.totalorder %s4329_s17, %s3560_s14  ;;  %p3567_p12 = scmp.lt.u32.totalorder %s3565_s27, %s3560_s14 }
  0xd3   : > { %p3569_p4 = scmp.lt.u32.totalorder %s3560_s14, %s4329_s17 }
  0xd4   : > { %p3563_p3 = pnand %p3562_p1, %p3561_p9  ;;  %p3568_p0 = por %p3567_p12, %p3566_p10 }
  0xd6   : > { %p3564_p11 = pneg %p3563_p3  ;;  %p3570_p8 = por %p3569_p4, %p3568_p0 }
  0xd8   : > { %p3571_p13 = pnand %p3570_p8, %p3564_p11 }
  0xda   : > { %3574 = shalt.err (!%p3571_p13)
}
  0xdb   : > { %s3575_s26 = scalar_lea.vmem %s4331_s15, 8192  ;;  %s3981_s13 = smov [#allocation6]  }
  0xdc   : > { %p3576_p9 = scmp.ne.s32.totalorder %s4331_s15, %s3575_s26  ;;  %s3580_s2 = sshll.u32 %s3981_s13, 4  ;;  %s3581_s2 = int_to_ptr.vmem [resolvable:$false] %s3580_s2 }
  0xdd   : > { %s3582_s10 = scalar_lea.vmem %s3581_s2, 16384  ;;  %p3583_p5 = scmp.lt.s32.totalorder %s4331_s15, %s3581_s2 }
  0xde   : > { %p3578_p3 = pnand %p3576_p9, %p3562_p1  ;;  %p3584_p10 = scmp.lt.s32.totalorder %s3582_s10, %s3575_s26 }
  0xe0   : > { %p3579_p2 = pneg %p3578_p3  ;;  %p3585_p12 = por %p3584_p10, %p3583_p5 }
  0xe2   : > { %p3586_p0 = pnand %p3585_p12, %p3579_p2 }
  0xe4   : > { %3589 = shalt.err (!%p3586_p0)
}
  0xe5   : > { %s3982_s14 = smov 64   ;;  %s3983_s27 = smov 4  }
  0xe6   : > { %3113 = dma.hbm_to_vmem [thread:$0]  (!%p4337_p6), %s4329_s17, 8192, %s4331_s15, %s4343_s0, %s3982_s14, %s3982_s14, %s3983_s27  }
  0xe7   : > { %s3984_s12 = smov [#allocation14]   ;;  %s3985_s7 = smov [#allocation17]  }
  0xe8   : > { %s414_s1 = sshll.u32 %s3984_s12, 4  ;;  %s438_s13 = sshll.u32 %s3985_s7, 4  ;;  %s415_s1 = int_to_ptr.vmem [resolvable:$true] %s414_s1  ;;  %s4371_s13 = int_to_ptr.vmem [resolvable:$true] %s438_s13 }
  0xe9   : > { %s5488_s6 = sld [smem:[#allocation54_spill]] }
  0xef   : > { %s3590_s10 = scalar_lea.hbm %s5488_s6, 32 }
  0xf0   : > { %p3591_p5 = scmp.ne.s32.totalorder %s5488_s6, %s3590_s10  ;;  %p3597_p2 = scmp.lt.u32.totalorder %s3590_s10, %s5488_s6 }
  0xf2   : > { %p3593_p8 = pnand %p3591_p5, %p4179_p7 }
  0xf4   : > { %p3594_p13 = pneg %p3593_p8 }
  0xf6   : > { %p3599_p4 = pnand %p3597_p2, %p3594_p13 }
  0xf8   : > { %3602 = shalt.err (!%p3599_p4)
}
  0xf9   : > { %s3603_s7 = scalar_lea.vmem %s415_s1, 32  ;;  %p3611_p9 = scmp.lt.s32.totalorder %s415_s1, %s415_s1 }
  0xfa   : > { %p3604_p6 = scmp.ne.s32.totalorder %s415_s1, %s3603_s7  ;;  %p3612_p3 = scmp.lt.s32.totalorder %s3603_s7, %s3603_s7 }
  0xfc   : > { %p3606_p1 = pnand %p3604_p6, %p4179_p7  ;;  %p3613_p10 = por %p3612_p3, %p3611_p9 }
  0xfe   : > { %p3607_p11 = pneg %p3606_p1 }
 0x100   : > { %p3614_p12 = pnand %p3613_p10, %p3607_p11 }
 0x102   : > { %3617 = shalt.err (!%p3614_p12)
}
 0x103   : > { %p5489_p0 = scmp.ne.s32.totalorder %s5473_s3, 0  ;;  %s5490_s8 = sld [smem:[#allocation56_spill]] }
 0x105   : > { %3088 = dma.hbm_to_vmem [thread:$0]  (!%p5489_p0), %s5488_s6, 32, %s415_s1, [#allocation13]  }
 0x109   : > { %s3618_s27 = scalar_lea.hbm %s5490_s8, 16 }
 0x10a   : > { %p3619_p5 = scmp.ne.s32.totalorder %s5490_s8, %s3618_s27  ;;  %p3625_p2 = scmp.lt.u32.totalorder %s3618_s27, %s5490_s8 }
 0x10c   : > { %p3621_p8 = pnand %p3619_p5, %p4179_p7 }
 0x10e   : > { %p3622_p13 = pneg %p3621_p8 }
 0x110   : > { %p3627_p4 = pnand %p3625_p2, %p3622_p13 }
 0x112   : > { %3630 = shalt.err (!%p3627_p4)
}
 0x113   : > { %s3631_s1 = scalar_lea.vmem %s4371_s13, 16  ;;  %s3638_s24 = scalar_lea.vmem %s4371_s13, 32 }
 0x114   : > { %p3632_p6 = scmp.ne.s32.totalorder %s4371_s13, %s3631_s1  ;;  %p3639_p9 = scmp.lt.s32.totalorder %s4371_s13, %s4371_s13 }
 0x115   : > { %p3640_p3 = scmp.lt.s32.totalorder %s3638_s24, %s3631_s1 }
 0x116   : > { %p3634_p1 = pnand %p3632_p6, %p4179_p7 }
 0x117   : > { %p3641_p10 = por %p3640_p3, %p3639_p9 }
 0x118   : > { %p3635_p11 = pneg %p3634_p1 }
 0x11a   : > { %p3642_p12 = pnand %p3641_p10, %p3635_p11 }
 0x11c   : > { %3645 = shalt.err (!%p3642_p12)
}
 0x11d   : > { %3094 = dma.hbm_to_vmem [thread:$0]  (!%p5489_p0), %s5490_s8, 16, %s4371_s13, [#allocation16]  }
 0x11e   : > { %s3986_s9 = smov [#allocation20]   ;;  %s3987_s15 = smov [#allocation23]  }
 0x11f   : > { %s462_s11 = sshll.u32 %s3986_s9, 4  ;;  %s485_s14 = sshll.u32 %s3987_s15, 4  ;;  %s463_s11 = int_to_ptr.vmem [resolvable:$true] %s462_s11  ;;  %s4415_s14 = int_to_ptr.vmem [resolvable:$true] %s485_s14 }
 0x120   : > { %s5491_s26 = sld [smem:[#allocation58_spill]] }
 0x126   : > { %s5492_s2 = smov %s5491_s26  ;;  %s3646_s10 = scalar_lea.hbm %s5491_s26, 16 }
 0x127   : > { %p3647_p5 = scmp.ne.s32.totalorder %s5492_s2, %s3646_s10  ;;  %p3653_p2 = scmp.lt.u32.totalorder %s3646_s10, %s5492_s2 }
 0x129   : > { %p3649_p8 = pnand %p3647_p5, %p4179_p7 }
 0x12b   : > { %p3650_p13 = pneg %p3649_p8 }
 0x12d   : > { %p3655_p4 = pnand %p3653_p2, %p3650_p13 }
 0x12f   : > { %3658 = shalt.err (!%p3655_p4)
}
 0x130   : > { %s3659_s7 = scalar_lea.vmem %s463_s11, 16  ;;  %s3666_s9 = scalar_lea.vmem %s463_s11, 32 }
 0x131   : > { %p3660_p6 = scmp.ne.s32.totalorder %s463_s11, %s3659_s7  ;;  %p3667_p9 = scmp.lt.s32.totalorder %s463_s11, %s463_s11 }
 0x132   : > { %p3668_p3 = scmp.lt.s32.totalorder %s3666_s9, %s3659_s7 }
 0x133   : > { %p3662_p1 = pnand %p3660_p6, %p4179_p7 }
 0x134   : > { %p3669_p10 = por %p3668_p3, %p3667_p9 }
 0x135   : > { %p3663_p11 = pneg %p3662_p1 }
 0x137   : > { %p3670_p12 = pnand %p3669_p10, %p3663_p11 }
 0x139   : > { %3673 = shalt.err (!%p3670_p12)
}
 0x13a   : > { %3100 = dma.hbm_to_vmem [thread:$0]  (!%p5489_p0), %s5492_s2, 16, %s463_s11, [#allocation19]  }
 0x13b   : > { %s5493_s10 = sld [smem:[#allocation60_spill]] }
 0x141   : > { %s3674_s1 = scalar_lea.hbm %s5493_s10, 256 }
 0x142   : > { %p3675_p5 = scmp.ne.s32.totalorder %s5493_s10, %s3674_s1  ;;  %p3681_p2 = scmp.lt.u32.totalorder %s3674_s1, %s5493_s10 }
 0x144   : > { %p3677_p8 = pnand %p3675_p5, %p4179_p7 }
 0x146   : > { %p3678_p13 = pneg %p3677_p8 }
 0x148   : > { %p3683_p4 = pnand %p3681_p2, %p3678_p13 }
 0x14a   : > { %3686 = shalt.err (!%p3683_p4)
}
 0x14b   : > { %s3687_s11 = scalar_lea.vmem %s4415_s14, 256  ;;  %p3695_p9 = scmp.lt.s32.totalorder %s4415_s14, %s4415_s14 }
 0x14c   : > { %p3688_p6 = scmp.ne.s32.totalorder %s4415_s14, %s3687_s11  ;;  %p3696_p3 = scmp.lt.s32.totalorder %s3687_s11, %s3687_s11 }
 0x14e   : > { %p3690_p1 = pnand %p3688_p6, %p4179_p7  ;;  %p3697_p10 = por %p3696_p3, %p3695_p9 }
 0x150   : > { %p3691_p11 = pneg %p3690_p1 }
 0x152   : > { %p3698_p12 = pnand %p3697_p10, %p3691_p11 }
 0x154   : > { %3701 = shalt.err (!%p3698_p12)
}
 0x155   : > { %s5494_s9 = smov 8   ;;  %s5495_s15 = smov 128  }
 0x156   : > { %s5496_s26 = sld [smem:[#allocation40_spill]]  ;;  %s5497_s1 = sld [smem:[#allocation39_spill]] }
 0x157   : > { %s5498_s18 = sld [smem:[#allocation38_spill]]  ;;  %p5499_p5 = scmp.ne.s32.totalorder %s5485_s28, 0 }
 0x158   : > { %3106 = dma.hbm_to_vmem [thread:$0]  (!%p5489_p0), %s5493_s10, 256, %s4415_s14, [#allocation22], %s5495_s15, %s5495_s15, %s5494_s9  }
 0x159   : > { %p5500_p8 = scmp.eq.s32.totalorder %s3970_s21, 0  ;;  %s2477_s7 = sshll.u32 %s3962_s19, 3 }
 0x15a   : > { %p5502_p4 = scmp.eq.s32.totalorder %s4150_s22, 0  ;;  %s2596_s27 = sshll.u32 %s3966_s20, 5 }
 0x15b   : > { %s510_s12 = sadd.s32 %s2596_s27, %s2477_s7  ;;  %s5504_s10 = sld [smem:[#allocation48_spill]] }
 0x15c   : > { %s60_s3 = sadd.s32 1, %s5496_s26  ;;  %p67_p7 = scmp.ne.s32.totalorder %s5496_s26, %s5497_s1 }
 0x15d   : > { %s4467_s24 = scalar_select %p5499_p5, %s5496_s26, %s60_s3  }
 0x15e   : > { %p4471_p13 = por %p5500_p8, %p67_p7  ;;  %p73_p2 = scmp.ne.s32.totalorder %s5497_s1, %s5498_s18 }
 0x15f   : > { %s499_s13 = sand.u32 1, %s5496_s26   ;;  %s2479_s28 = sshll.u32 %s510_s12, 6 }
 0x160   : > { %p4481_p6 = por %p5502_p4, %p73_p2  ;;  %s2475_s14 = sshll.u32 %s499_s13, 6 }
 0x161   : > { %s503_s3 = scalar_lea.vmem [#allocation3], %s2475_s14  ;;  %s4489_s5 = scalar_lea.hbm %s5504_s10, %s2479_s28 }
 0x162   : > { %s513_s2 = sshll.u32 %s503_s3, 4  ;;  %p5505_p0 = scmp.lt.s32.totalorder %s3970_s21, 4  ;;  %s4491_s2 = int_to_ptr.vmem [resolvable:$true] %s513_s2 }
 0x163   : > { %s4501_s1 = scalar_lea.sflag [#allocation4], %s499_s13  ;;  %s3702_s18 = scalar_lea.hbm %s4489_s5, 1024 }
 0x164   : > { %p4497_p1 = pnand %p5505_p0, %p4471_p13  ;;  %p3703_p11 = scmp.ne.s32.totalorder %s4489_s5, %s3702_s18 }
 0x165   : > { %s3707_s17 = scalar_lea.hbm %s5504_s10, 4096  ;;  %p3708_p12 = scmp.lt.u32.totalorder %s4489_s5, %s5504_s10 }
 0x166   : > { %p3704_p9 = pneg %p4497_p1  ;;  %p3709_p7 = scmp.lt.u32.totalorder %s3707_s17, %s3702_s18 }
 0x167   : > { %p3711_p8 = scmp.lt.u32.totalorder %s3702_s18, %s4489_s5 }
 0x168   : > { %p3705_p3 = pnand %p3704_p9, %p3703_p11  ;;  %p3710_p5 = por %p3709_p7, %p3708_p12 }
 0x16a   : > { %p3706_p10 = pneg %p3705_p3  ;;  %p3712_p13 = por %p3711_p8, %p3710_p5 }
 0x16c   : > { %p3713_p2 = pnand %p3712_p13, %p3706_p10 }
 0x16e   : > { %3716 = shalt.err (!%p3713_p2)
}
 0x16f   : > { %s3717_s13 = scalar_lea.vmem %s4491_s2, 1024  ;;  %s3988_s27 = smov [#allocation3]  }
 0x170   : > { %p3718_p4 = scmp.ne.s32.totalorder %s4491_s2, %s3717_s13  ;;  %s3722_s12 = sshll.u32 %s3988_s27, 4  ;;  %s3723_s12 = int_to_ptr.vmem [resolvable:$false] %s3722_s12 }
 0x171   : > { %s3724_s28 = scalar_lea.vmem %s3723_s12, 2048  ;;  %p3725_p3 = scmp.lt.s32.totalorder %s4491_s2, %s3723_s12 }
 0x172   : > { %p3720_p0 = pnand %p3718_p4, %p3704_p9  ;;  %p3726_p12 = scmp.lt.s32.totalorder %s3724_s28, %s3717_s13 }
 0x174   : > { %p3721_p11 = pneg %p3720_p0  ;;  %p3727_p7 = por %p3726_p12, %p3725_p3 }
 0x176   : > { %p3728_p5 = pnand %p3727_p7, %p3721_p11 }
 0x178   : > { %3731 = shalt.err (!%p3728_p5)
}
 0x179   : > { %s3989_s3 = smov 1024   ;;  %s5507_s18 = sld [smem:[#allocation37_spill]] }
 0x17a   : > { %s5508_s6 = sld [smem:[#allocation36_spill]]  ;;  %s3990_s17 = smov 512  }
 0x17b   : > { %s5509_s8 = sld [smem:[#allocation35_spill]]  ;;  %s3991_s7 = smov 32  }
 0x17c   : > { %3110 = dma.hbm_to_vmem [thread:$0]  (!%p4497_p1), %s4489_s5, 1024, %s4491_s2, %s4501_s1, %s3989_s3, %s3990_s17, %s3991_s7  }
 0x17d   : > { %s2463_s14 = sadd.s32 4294967294, %s3970_s21   ;;  %p5510_p10 = scmp.eq.s32.totalorder %s4308_s16, 0 }
 0x17e   : > { %p5511_p8 = scmp.eq.s32.totalorder %s3970_s21, 0  ;;  %p364_p4 = scmp.eq.s32.totalorder %s4150_s22, 3 }
 0x17f   : > { %s112_s13 = sadd.s32 1, %s5507_s18  ;;  %p370_p0 = scmp.eq.s32.totalorder %s2463_s14, 3 }
 0x180   : > { %p119_p9 = scmp.ne.s32.totalorder %s5507_s18, %s5508_s6  ;;  %p5513_p11 = scmp.eq.s32.totalorder %s4150_s22, 0 }
 0x181   : > { %s4536_s27 = scalar_select %p5510_p10, %s5507_s18, %s112_s13  }
 0x182   : > { %p4540_p13 = por %p119_p9, %p5511_p8  ;;  %p125_p2 = scmp.ne.s32.totalorder %s5508_s6, %s5509_s8 }
 0x183   : > { %s546_s5 = sand.u32 1, %s5507_s18   ;;  %p4554_p1 = por %p364_p4, %p119_p9 }
 0x184   : > { %p4549_p3 = por %p125_p2, %p5513_p11  ;;  %p4558_p12 = por %p370_p0, %p125_p2 }
 0x185   : > { %s5515_s2 = scalar_select %p4554_p1, 1, 0 }
 0x186   : > { %s5514_s26 = scalar_select %p4549_p3, 1, 0 }
 0x187   : > { %s5516_s16 = scalar_select %p4558_p12, 1, 0 }
 0x188   : > { %s4562_s1 = sshll.u32 %s546_s5, 4  ;;  %s2598_s28 = sshll.u32 %s3966_s20, 8 }
 0x189   : > { %s5517_s8 = sld [smem:[#allocation50_spill]]  ;;  %s548_s18 = scalar_lea.vmem [#allocation8], %s4562_s1 }
 0x18a   : > { %s555_s7 = sshll.u32 %s548_s18, 4  ;;  %p5518_p7 = scmp.lt.s32.totalorder %s3970_s21, 4  ;;  %s4579_s7 = int_to_ptr.vmem [resolvable:$true] %s555_s7 }
 0x18b   : > { %s5520_s3 = sld [smem:[#allocation51_spill]] }
 0x18c   : > { %p4575_p5 = pnand %p5518_p7, %p4540_p13 }
 0x18e   : > { %p3734_p10 = pneg %p4575_p5 }
 0x18f   : > { %s4568_s17 = scalar_lea.hbm %s5517_s8, %s2598_s28  ;;  %s3737_s25 = scalar_lea.hbm %s5517_s8, 512 }
 0x190   : > { %s3732_s10 = scalar_lea.hbm %s4568_s17, 256  ;;  %p3738_p2 = scmp.lt.u32.totalorder %s4568_s17, %s5517_s8 }
 0x191   : > { %s4584_s6 = scalar_lea.hbm %s5520_s3, %s2598_s28  ;;  %p3733_p9 = scmp.ne.s32.totalorder %s4568_s17, %s3732_s10 }
 0x192   : > { %p3739_p4 = scmp.lt.u32.totalorder %s3737_s25, %s3732_s10  ;;  %p3741_p11 = scmp.lt.u32.totalorder %s3732_s10, %s4568_s17 }
 0x193   : > { %p3735_p8 = pnand %p3734_p10, %p3733_p9 }
 0x194   : > { %p3740_p0 = por %p3739_p4, %p3738_p2 }
 0x195   : > { %p3736_p13 = pneg %p3735_p8 }
 0x196   : > { %p3742_p7 = por %p3741_p11, %p3740_p0 }
 0x198   : > { %p3743_p12 = pnand %p3742_p7, %p3736_p13 }
 0x19a   : > { %3746 = shalt.err (!%p3743_p12)
}
 0x19b   : > { %s3747_s28 = scalar_lea.vmem %s4579_s7, 256  ;;  %s3992_s13 = smov [#allocation8]  }
 0x19c   : > { %p3748_p9 = scmp.ne.s32.totalorder %s4579_s7, %s3747_s28  ;;  %s3752_s5 = sshll.u32 %s3992_s13, 4  ;;  %s3753_s5 = int_to_ptr.vmem [resolvable:$false] %s3752_s5 }
 0x19d   : > { %s3754_s19 = scalar_lea.vmem %s3753_s5, 512  ;;  %p3755_p3 = scmp.lt.s32.totalorder %s4579_s7, %s3753_s5 }
 0x19e   : > { %p3750_p8 = pnand %p3748_p9, %p3734_p10  ;;  %p3756_p2 = scmp.lt.s32.totalorder %s3754_s19, %s3747_s28 }
 0x1a0   : > { %p3751_p1 = pneg %p3750_p8  ;;  %p3757_p4 = por %p3756_p2, %p3755_p3 }
 0x1a2   : > { %p3758_p0 = pnand %p3757_p4, %p3751_p1 }
 0x1a4   : > { %3761 = shalt.err (!%p3758_p0)
}
 0x1a5   : > { %3116 = dma.hbm_to_vmem [thread:$0]  (!%p4575_p5), %s4568_s17, 256, %s4579_s7, %s4343_s0, %s5495_s15, %s5495_s15, %s5494_s9  }
 0x1a6   : > { %s569_s20 = scalar_lea.vmem [#allocation9], %s4562_s1  ;;  %s5521_s10 = sand.u32 1, %s3970_s21  }
 0x1a7   : > { %s576_s25 = sshll.u32 %s569_s20, 4  ;;  %s4620_s12 = scalar_lea.sflag [#allocation10], %s5521_s10  ;;  %s4616_s25 = int_to_ptr.vmem [resolvable:$true] %s576_s25 }
 0x1a8   : > { %s3762_s18 = scalar_lea.hbm %s4584_s6, 256  ;;  %s3767_s5 = scalar_lea.hbm %s5520_s3, 512 }
 0x1a9   : > { %p3763_p3 = scmp.ne.s32.totalorder %s4584_s6, %s3762_s18  ;;  %p3768_p13 = scmp.lt.u32.totalorder %s4584_s6, %s5520_s3 }
 0x1aa   : > { %p3769_p11 = scmp.lt.u32.totalorder %s3767_s5, %s3762_s18  ;;  %p3771_p9 = scmp.lt.u32.totalorder %s3762_s18, %s4584_s6 }
 0x1ab   : > { %p3765_p1 = pnand %p3763_p3, %p3734_p10 }
 0x1ac   : > { %p3770_p7 = por %p3769_p11, %p3768_p13 }
 0x1ad   : > { %p3766_p12 = pneg %p3765_p1 }
 0x1ae   : > { %p3772_p8 = por %p3771_p9, %p3770_p7 }
 0x1b0   : > { %p3773_p2 = pnand %p3772_p8, %p3766_p12 }
 0x1b2   : > { %3776 = shalt.err (!%p3773_p2)
}
 0x1b3   : > { %s3777_s0 = scalar_lea.vmem %s4616_s25, 256  ;;  %s3993_s1 = smov [#allocation9]  }
 0x1b4   : > { %p3778_p4 = scmp.ne.s32.totalorder %s4616_s25, %s3777_s0  ;;  %s3782_s17 = sshll.u32 %s3993_s1, 4  ;;  %s3783_s17 = int_to_ptr.vmem [resolvable:$false] %s3782_s17 }
 0x1b5   : > { %s3784_s8 = scalar_lea.vmem %s3783_s17, 512  ;;  %p3785_p1 = scmp.lt.s32.totalorder %s4616_s25, %s3783_s17 }
 0x1b6   : > { %p3780_p0 = pnand %p3778_p4, %p3734_p10  ;;  %p3786_p13 = scmp.lt.s32.totalorder %s3784_s8, %s3777_s0 }
 0x1b8   : > { %p3781_p3 = pneg %p3780_p0  ;;  %p3787_p11 = por %p3786_p13, %p3785_p1 }
 0x1ba   : > { %p3788_p7 = pnand %p3787_p11, %p3781_p3 }
 0x1bc   : > { %3791 = shalt.err (!%p3788_p7)
}
 0x1bd   : > { %3119 = dma.hbm_to_vmem [thread:$0]  (!%p4575_p5), %s4584_s6, 256, %s4616_s25, %s4620_s12, %s5495_s15, %s5495_s15, %s5494_s9  }
 0x1be   : > { %s5522_s7 = sld [smem:[#allocation45_spill]] }
 0x1c4   : > { %p5523_p10 = scmp.ne.s32.totalorder %s5522_s7, 0 }
 0x1c5   : > { %s5524_s20 = sld [smem:[#allocation39_spill]] (!%p5523_p10) }
 0x1c6   : > { %588 = sbr.rel (%p5523_p10) target bundleno = 2327 (0x917), region = 72 }
 0x1cb   : > { %s590_s10 = sand.u32 (!%p5523_p10), 1, %s5524_s20  }
 0x1cc   : > { %s2490_s18 = sshll.u32 (!%p5523_p10), %s590_s10, 6  ;;  %s591_s28 = scalar_lea.sflag (!%p5523_p10), [#allocation4], %s590_s10 }
 0x1cd   : > { %s4652_s13 = scalar_lea.vmem [#allocation3], %s2490_s18 }
 0x1ce   : > { %3877 = dma.done.wait (%p4481_p6), %s591_s28, 1024  }
 0x1cf   : > { %3879 = vsyncadd (%p4481_p6), %s591_s28, 4294966272  ;;  %s599_s14 = sand.u32 1, %s4150_s22   ;;  %s601_s9 = sand.u32 1, %s3934_s29  }
 0x1d0   : > { %s2491_s15 = sshll.u32 %s601_s9, 9  ;;  %s600_s6 = scalar_lea.sflag [#allocation7], %s599_s14 }
 0x1d1   : > { %s4660_s25 = scalar_lea.vmem [#allocation6], %s2491_s15  ;;  %p5525_p5 = scmp.ne.s32.totalorder %s5484_s23, 0 }
 0x1d3   : > { %3881 = dma.done.wait (%p5525_p5), %s600_s6, 8192  }
 0x1d4   : > { %3883 = vsyncadd (%p5525_p5), %s600_s6, 4294959104  ;;  %s5526_s12 = sld [smem:[#allocation36_spill]]  ;;  %p5527_p6 = scmp.ne.s32.totalorder %s5514_s26, 0 }
 0x1da   : > { %s610_s5 = sand.u32 1, %s5526_s12  }
 0x1db   : > { %s4669_s11 = sshll.u32 %s610_s5, 4 }
 0x1dc   : > { %s612_s19 = scalar_lea.vmem [#allocation8], %s4669_s11 }
 0x1dd   : > { %3885 = dma.done.wait (%p5527_p6), %s600_s6, 256  }
 0x1de   : > { %3887 = vsyncadd (%p5527_p6), %s600_s6, 4294967040  ;;  %s618_s0 = scalar_lea.sflag [#allocation10], %s599_s14  ;;  %s621_s1 = scalar_lea.vmem [#allocation9], %s4669_s11 }
 0x1df   : > { %3889 = dma.done.wait (%p5527_p6), %s618_s0, 256  }
 0x1e0   : > { %3891 = vsyncadd (%p5527_p6), %s618_s0, 4294967040  ;;  %p5528_p12 = scmp.eq.s32.totalorder %s4150_s22, 0 }
 0x1e2   : > { %3893 = dma.done.wait (%p5528_p12), [#allocation10], 16   ;;  %p5529_p9 = pmov %p5528_p12 }
 0x1e4   : > { %3895 = vsyncadd (%p5529_p9), [#allocation10], 4294967280  ;;  %p5530_p8 = pmov %p5529_p9 }
 0x1e6   : > { %3897 = dma.done.wait (%p5530_p8), [#allocation13], 2080   ;;  %p5531_p2 = pmov %p5530_p8 }
 0x1e8   : > { %3899 = vsyncadd (%p5531_p2), [#allocation13], 4294965216  ;;  %p5532_p4 = pmov %p5531_p2 }
 0x1e9   : > { %p5533_p0 = pmov %p5531_p2 }
 0x1ea   : > { %3901 = dma.done.wait (%p5532_p4), [#allocation16], 1040  }
 0x1eb   : > { %3903 = vsyncadd (%p5533_p0), [#allocation16], 4294966256  ;;  %p5534_p3 = pmov %p5533_p0 }
 0x1ec   : > { %p5535_p1 = pmov %p5533_p0 }
 0x1ed   : > { %3905 = dma.done.wait (%p5534_p3), [#allocation19], 1040  }
 0x1ee   : > { %3907 = vsyncadd (%p5535_p1), [#allocation19], 4294966256  ;;  %p5536_p13 = pmov %p5533_p0 }
 0x1ef   : > { %p5537_p11 = pmov %p5533_p0 }
 0x1f0   : > { %3909 = dma.done.wait (%p5536_p13), [#allocation22], 512  }
 0x1f1   : > { %3911 = vsyncadd (%p5537_p11), [#allocation22], 4294966784  ;;  %s4702_s23 = scalar_lea.vmem [#allocation24], %s4669_s11  ;;  %s5538_s26 = sld [smem:[#allocation41_spill]] }
 0x1f7   : > { %p2504_p7 = scmp.ne.s32.totalorder %s5538_s26, 0 }
 0x1f8   : > { %vm726_vm0 = vcmask (!%p2504_p7), 523264   ;;  %v3994_v0 = vmov (!%p2504_p7), 0.0  }
 0x1f9   : > { %725 = sbr.rel (%p2504_p7) target bundleno = 512 (0x200), region = 128  ;;  %727 = vst.msk [vmem:[#allocation2] sm:$0xff] (!%p2504_p7), %vm726_vm0, %v3994_v0  ;;  %728 = vst.msk [vmem:[#allocation2 + $0x8] sm:$0xff] (!%p2504_p7), %vm726_vm0, %v3994_v0 }
 0x200 PF: > { %v3288_v1 = vld [vmem:[%s4660_s25 + $0x40] sm:$0xff]   ;;  %v3292_v5 = vld [vmem:[%s4660_s25 + $0x48] sm:$0xff]   ;;  %v3296_v9 = vld [vmem:[%s4660_s25 + $0x50] sm:$0xff]   ;;  %vm5438_vm1 = vcmask 523264   ;;  %s5539_s22 = sld [smem:[#allocation41_spill]] }
 0x201   : > { %v3289_v2 = vld [vmem:[%s4660_s25 + $0xc0] sm:$0xff]   ;;  %2601 = vmatprep.subr.bf16.mxu0 %v3288_v1  ;;  %v3293_v6 = vld [vmem:[%s4660_s25 + $0xc8] sm:$0xff]   ;;  %v3297_v10 = vld [vmem:[%s4660_s25 + $0xd0] sm:$0xff]  }
 0x202   : > { %v3290_v3 = vld [vmem:[%s4660_s25] sm:$0xff]   ;;  %2623 = vmatprep.subr.bf16.mxu1 %v3289_v2  ;;  %v3294_v7 = vld [vmem:[%s4660_s25 + $0x8] sm:$0xff]   ;;  %v3298_v11 = vld [vmem:[%s4660_s25 + $0x10] sm:$0xff]  }
 0x203   : > { %v3291_v4 = vld [vmem:[%s4660_s25 + $0x80] sm:$0xff]   ;;  %2602 = vmatpush3.bf16.msra.mxu0 %v3290_v3  ;;  %v3295_v8 = vld [vmem:[%s4660_s25 + $0x88] sm:$0xff]   ;;  %v3299_v12 = vld [vmem:[%s4660_s25 + $0x90] sm:$0xff]  }
 0x204   : > { %2624 = vmatpush3.bf16.msra.mxu1 %v3291_v4  ;;  %2603 = vmatprep.subr.bf16.mxu0 %v3292_v5  ;;  %v3300_v13 = vld [vmem:[%s4660_s25 + $0x58] sm:$0xff]   ;;  %v3304_v17 = vld [vmem:[%s4660_s25 + $0x60] sm:$0xff]   ;;  %v3308_v21 = vld [vmem:[%s4660_s25 + $0x68] sm:$0xff]  }
 0x205   : > { %2625 = vmatprep.subr.bf16.mxu1 %v3293_v6  ;;  %v3301_v14 = vld [vmem:[%s4660_s25 + $0xd8] sm:$0xff]   ;;  %v3305_v18 = vld [vmem:[%s4660_s25 + $0xe0] sm:$0xff]   ;;  %v3309_v22 = vld [vmem:[%s4660_s25 + $0xe8] sm:$0xff]  }
 0x206   : > { %v3302_v15 = vld [vmem:[%s4660_s25 + $0x18] sm:$0xff]   ;;  %v3306_v19 = vld [vmem:[%s4660_s25 + $0x20] sm:$0xff]   ;;  %v3310_v23 = vld [vmem:[%s4660_s25 + $0x28] sm:$0xff]   ;;  %p2577_p10 = scmp.ne.s32.totalorder %s5539_s22, 1 }
 0x207   : > { %2604 = vmatpush3.bf16.msra.mxu0 %v3294_v7  ;;  %v3303_v16 = vld [vmem:[%s4660_s25 + $0x98] sm:$0xff]   ;;  %v3307_v20 = vld [vmem:[%s4660_s25 + $0xa0] sm:$0xff]   ;;  %v3311_v24 = vld [vmem:[%s4660_s25 + $0xa8] sm:$0xff]   ;;  %s3996_s17 = smov (!%p2577_p10), 64   ;;  %s3997_s8 = smov (!%p2577_p10), 112  }
 0x208   : > { %2626 = vmatpush3.bf16.msra.mxu1 %v3295_v8  ;;  %2605 = vmatprep.subr.bf16.mxu0 %v3296_v9  ;;  %v3312_v25 = vld [vmem:[%s4660_s25 + $0x70] sm:$0xff]   ;;  %v3316_v29 = vld [vmem:[%s4660_s25 + $0x78] sm:$0xff]   ;;  %v731_v33 = vld [vmem:[%s4652_s13] sm:$0xff]  ;;  %s4001_s7 = smov (!%p2577_p10), 25   ;;  %s4002_s20 = smov (!%p2577_p10), 22  }
 0x209   : > { %2627 = vmatprep.subr.bf16.mxu1 %v3297_v10  ;;  %v3313_v26 = vld [vmem:[%s4660_s25 + $0xf0] sm:$0xff]   ;;  %v3317_v30 = vld [vmem:[%s4660_s25 + $0xf8] sm:$0xff]   ;;  %v735_v34 = vld [vmem:[%s4652_s13 + $0x20] sm:$0xff]  ;;  %s4003_s10 = smov (!%p2577_p10), 16   ;;  %s4004_s18 = smov (!%p2577_p10), 57  }
 0x20a   : > { %v3314_v27 = vld [vmem:[%s4660_s25 + $0x30] sm:$0xff]   ;;  %v3318_v31 = vld [vmem:[%s4660_s25 + $0x38] sm:$0xff]   ;;  %v732_v35 = vld [vmem:[%s4652_s13 + $0x8] sm:$0xff]  ;;  %v2505_v36 = vcombine.low %v731_v33, %v735_v34  ;;  %v2506_v37 = vcombine.high %v731_v33, %v735_v34  ;;  %s4005_s28 = smov (!%p2577_p10), 73  }
 0x20b   : > { %2606 = vmatpush3.bf16.msra.mxu0 %v3298_v11  ;;  %v3315_v28 = vld [vmem:[%s4660_s25 + $0xb0] sm:$0xff]   ;;  %v3319_v32 = vld [vmem:[%s4660_s25 + $0xb8] sm:$0xff]   ;;  %v736_v38 = vld [vmem:[%s4652_s13 + $0x28] sm:$0xff] }
 0x20c   : > { %2628 = vmatpush3.bf16.msra.mxu1 %v3299_v12  ;;  %2607 = vmatprep.subr.bf16.mxu0 %v3300_v13  ;;  %v2507_v39 = vcombine.low %v732_v35, %v736_v38  ;;  %v2508_v40 = vcombine.high %v732_v35, %v736_v38  ;;  %v3320_v41 = vld [vmem:[%s4660_s25 + $0x140] sm:$0xff]   ;;  %v3324_v45 = vld [vmem:[%s4660_s25 + $0x148] sm:$0xff]   ;;  %v3328_v49 = vld [vmem:[%s4660_s25 + $0x150] sm:$0xff]  }
 0x20d   : > { %2629 = vmatprep.subr.bf16.mxu1 %v3301_v14  ;;  %1323 = vmatprep.mubr.bf16.mxu0 %v2506_v37  ;;  %v3321_v42 = vld [vmem:[%s4660_s25 + $0x1c0] sm:$0xff]   ;;  %v3325_v46 = vld [vmem:[%s4660_s25 + $0x1c8] sm:$0xff]   ;;  %v3329_v50 = vld [vmem:[%s4660_s25 + $0x1d0] sm:$0xff]  }
 0x20e   : > { %1364 = vmatprep.mubr.bf16.mxu1 %v2508_v40  ;;  %v3322_v43 = vld [vmem:[%s4660_s25 + $0x100] sm:$0xff]   ;;  %v3326_v47 = vld [vmem:[%s4660_s25 + $0x108] sm:$0xff]   ;;  %v3330_v51 = vld [vmem:[%s4660_s25 + $0x110] sm:$0xff]  }
 0x20f   : > { %2608 = vmatpush3.bf16.msra.mxu0 %v3302_v15  ;;  %v3323_v44 = vld [vmem:[%s4660_s25 + $0x180] sm:$0xff]   ;;  %v3327_v48 = vld [vmem:[%s4660_s25 + $0x188] sm:$0xff]   ;;  %v3331_v52 = vld [vmem:[%s4660_s25 + $0x190] sm:$0xff]  }
 0x210   : > { %2630 = vmatpush3.bf16.msra.mxu1 %v3303_v16  ;;  %2609 = vmatprep.subr.bf16.mxu0 %v3304_v17  ;;  %v3332_v53 = vld [vmem:[%s4660_s25 + $0x158] sm:$0xff]   ;;  %v3336_v57 = vld [vmem:[%s4660_s25 + $0x160] sm:$0xff]   ;;  %v3340_v61 = vld [vmem:[%s4660_s25 + $0x168] sm:$0xff]  }
 0x211   : > { %2631 = vmatprep.subr.bf16.mxu1 %v3305_v18  ;;  %v3333_v54 = vld [vmem:[%s4660_s25 + $0x1d8] sm:$0xff]   ;;  %v3337_v58 = vld [vmem:[%s4660_s25 + $0x1e0] sm:$0xff]   ;;  %v3341_v62 = vld [vmem:[%s4660_s25 + $0x1e8] sm:$0xff]  }
 0x212   : > { %v3334_v55 = vld [vmem:[%s4660_s25 + $0x118] sm:$0xff]   ;;  %v3338_v59 = vld [vmem:[%s4660_s25 + $0x120] sm:$0xff]   ;;  %v3342_v63 = vld [vmem:[%s4660_s25 + $0x128] sm:$0xff]  }
 0x213   : > { %2610 = vmatpush3.bf16.msra.mxu0 %v3306_v19  ;;  %v3335_v56 = vld [vmem:[%s4660_s25 + $0x198] sm:$0xff]   ;;  %v3339_v60 = vld [vmem:[%s4660_s25 + $0x1a0] sm:$0xff]   ;;  %v3343_v0 = vld [vmem:[%s4660_s25 + $0x1a8] sm:$0xff]  }
 0x214   : > { %2632 = vmatpush3.bf16.msra.mxu1 %v3307_v20  ;;  %2611 = vmatprep.subr.bf16.mxu0 %v3308_v21  ;;  %v3344_v1 = vld [vmem:[%s4660_s25 + $0x170] sm:$0xff]   ;;  %v3348_v5 = vld [vmem:[%s4660_s25 + $0x178] sm:$0xff]  }
 0x215   : > { %2633 = vmatprep.subr.bf16.mxu1 %v3309_v22  ;;  %v3345_v2 = vld [vmem:[%s4660_s25 + $0x1f0] sm:$0xff]   ;;  %v3349_v6 = vld [vmem:[%s4660_s25 + $0x1f8] sm:$0xff]  }
 0x216   : > { %v3346_v3 = vld [vmem:[%s4660_s25 + $0x130] sm:$0xff]   ;;  %v3350_v7 = vld [vmem:[%s4660_s25 + $0x138] sm:$0xff]  }
 0x217   : > { %2612 = vmatpush3.bf16.msra.mxu0 %v3310_v23  ;;  %v3347_v4 = vld [vmem:[%s4660_s25 + $0x1b0] sm:$0xff]   ;;  %v3351_v8 = vld [vmem:[%s4660_s25 + $0x1b8] sm:$0xff]  }
 0x218   : > { %2634 = vmatpush3.bf16.msra.mxu1 %v3311_v24  ;;  %2613 = vmatprep.subr.bf16.mxu0 %v3312_v25  ;;  %v733_v9 = vld [vmem:[%s4652_s13 + $0x10] sm:$0xff]  ;;  %v734_v13 = vld [vmem:[%s4652_s13 + $0x18] sm:$0xff] }
 0x219   : > { %2635 = vmatprep.subr.bf16.mxu1 %v3313_v26  ;;  %v737_v10 = vld [vmem:[%s4652_s13 + $0x30] sm:$0xff]  ;;  %v738_v14 = vld [vmem:[%s4652_s13 + $0x38] sm:$0xff] }
 0x21a   : > { %v2509_v11 = vcombine.low %v733_v9, %v737_v10  ;;  %v2510_v12 = vcombine.high %v733_v9, %v737_v10  ;;  %v2511_v15 = vcombine.low %v734_v13, %v738_v14  ;;  %v2512_v16 = vcombine.high %v734_v13, %v738_v14  ;;  %v1667_v14 = vld [vmem:[%s612_s19 + $0x8] sm:$0xff] (!%p2577_p10) }
 0x21b   : > { %2614 = vmatpush3.bf16.msra.mxu0 %v3314_v27 }
 0x21c   : > { %2636 = vmatpush3.bf16.msra.mxu1 %v3315_v28  ;;  %2615 = vmatprep.subr.bf16.mxu0 %v3316_v29 }
 0x21d   : > { %2637 = vmatprep.subr.bf16.mxu1 %v3317_v30 }
 0x21f   : > { %2616 = vmatpush3.bf16.msra.mxu0 %v3318_v31 }
 0x220   : > { %2638 = vmatpush3.bf16.msra.mxu1 %v3319_v32  ;;  %2645 = vmatprep.subr.bf16.mxu0 %v3320_v41 }
 0x221   : > { %2667 = vmatprep.subr.bf16.mxu1 %v3321_v42 }
 0x222   : > { %1324 = vmatmul.mubr.bf16.vlgmr.msra.gmra.mrb[0].mxu0 %v2505_v36 }
 0x223   : > { %1365 = vmatmul.mubr.bf16.vlgmr.msra.gmra.mrb[0].mxu1 %v2507_v39  ;;  %2646 = vmatpush3.bf16.msra.mxu0 %v3322_v43  ;;  %v729_v43 = vld [vmem:[#allocation2] sm:$0xff] }
 0x224   : > { %2668 = vmatpush3.bf16.msra.mxu1 %v3323_v44  ;;  %2647 = vmatprep.subr.bf16.mxu0 %v3324_v45 }
 0x225   : > { %2669 = vmatprep.subr.bf16.mxu1 %v3325_v46  ;;  %1405 = vmatprep.mubr.bf16.mxu0 %v2510_v12 }
 0x226   : > { %1446 = vmatprep.mubr.bf16.mxu1 %v2512_v16  ;;  %v1489_v16 = vld [vmem:[#allocation12 + $0x60] sm:$0xff] (!%p2577_p10) }
 0x227   : > { %2648 = vmatpush3.bf16.msra.mxu0 %v3326_v47  ;;  %v730_v47 = vld [vmem:[#allocation2 + $0x8] sm:$0xff] }
 0x228   : > { %2670 = vmatpush3.bf16.msra.mxu1 %v3327_v48  ;;  %2649 = vmatprep.subr.bf16.mxu0 %v3328_v49 }
 0x229   : > { %2671 = vmatprep.subr.bf16.mxu1 %v3329_v50 }
 0x22b   : > { %2650 = vmatpush3.bf16.msra.mxu0 %v3330_v51  ;;  %v1478_v51 = vld [vmem:[#allocation12 + $0x8] sm:$0xff] (!%p2577_p10) }
 0x22c   : > { %2672 = vmatpush3.bf16.msra.mxu1 %v3331_v52  ;;  %2651 = vmatprep.subr.bf16.mxu0 %v3332_v53  ;;  %v1480_v52 = vld [vmem:[#allocation12 + $0x18] sm:$0xff] (!%p2577_p10)  ;;  %v1477_v53 = vld [vmem:[#allocation12] sm:$0xff] (!%p2577_p10) }
 0x22d   : > { %2673 = vmatprep.subr.bf16.mxu1 %v3333_v54  ;;  %v2769_v54 = vpack.c.bf16 (!%p2577_p10), %v1480_v52, %v1478_v51 }
 0x22f   : > { %2652 = vmatpush3.bf16.msra.mxu0 %v3334_v55  ;;  %v1479_v55 = vld [vmem:[#allocation12 + $0x10] sm:$0xff] (!%p2577_p10) }
 0x230   : > { %2674 = vmatpush3.bf16.msra.mxu1 %v3335_v56  ;;  %2653 = vmatprep.subr.bf16.mxu0 %v3336_v57  ;;  %v1482_v56 = vld [vmem:[#allocation12 + $0x28] sm:$0xff] (!%p2577_p10)  ;;  %v1484_v57 = vld [vmem:[#allocation12 + $0x38] sm:$0xff] (!%p2577_p10) }
 0x231   : > { %2675 = vmatprep.subr.bf16.mxu1 %v3337_v58  ;;  %v3995_v58 = vmov (!%p2577_p10), 0.0  }
 0x233   : > { %2654 = vmatpush3.bf16.msra.mxu0 %v3338_v59  ;;  %v2771_v59 = vpack.c.bf16 (!%p2577_p10), %v1479_v55, %v1477_v53 }
 0x234   : > { %2676 = vmatpush3.bf16.msra.mxu1 %v3339_v60  ;;  %2655 = vmatprep.subr.bf16.mxu0 %v3340_v61  ;;  %v2773_v60 = vpack.c.bf16 (!%p2577_p10), %v1484_v57, %v1482_v56  ;;  %v1481_v61 = vld [vmem:[#allocation12 + $0x20] sm:$0xff] (!%p2577_p10) }
 0x235   : > { %2677 = vmatprep.subr.bf16.mxu1 %v3341_v62  ;;  %v1483_v62 = vld [vmem:[#allocation12 + $0x30] sm:$0xff] (!%p2577_p10) }
 0x237   : > { %2656 = vmatpush3.bf16.msra.mxu0 %v3342_v63  ;;  %v1486_v63 = vld [vmem:[#allocation12 + $0x48] sm:$0xff] (!%p2577_p10) }
 0x238   : > { %2678 = vmatpush3.bf16.msra.mxu1 %v3343_v0  ;;  %2657 = vmatprep.subr.bf16.mxu0 %v3344_v1  ;;  %v1488_v0 = vld [vmem:[#allocation12 + $0x58] sm:$0xff] (!%p2577_p10)  ;;  %v2775_v1 = vpack.c.bf16 (!%p2577_p10), %v1483_v62, %v1481_v61 }
 0x239   : > { %2679 = vmatprep.subr.bf16.mxu1 %v3345_v2  ;;  %v1485_v2 = vld [vmem:[#allocation12 + $0x40] sm:$0xff] (!%p2577_p10) }
 0x23b   : > { %2658 = vmatpush3.bf16.msra.mxu0 %v3346_v3  ;;  %v1487_v3 = vld [vmem:[#allocation12 + $0x50] sm:$0xff] (!%p2577_p10) }
 0x23c   : > { %2680 = vmatpush3.bf16.msra.mxu1 %v3347_v4  ;;  %2659 = vmatprep.subr.bf16.mxu0 %v3348_v5  ;;  %v2777_v4 = vpack.c.bf16 (!%p2577_p10), %v1488_v0, %v1486_v63  ;;  %v1490_v5 = vld [vmem:[#allocation12 + $0x68] sm:$0xff] (!%p2577_p10)  ;;  %v2779_v13 = vpack.c.bf16 (!%p2577_p10), %v1487_v3, %v1485_v2 }
 0x23d   : > { %2681 = vmatprep.subr.bf16.mxu1 %v3349_v6 }
 0x23f   : > { %2660 = vmatpush3.bf16.msra.mxu0 %v3350_v7  ;;  %v2578_v7 = vld [vmem:[#allocation11] ss:$0 sm:$0xff] (!%p2577_p10) }
 0x240   : > { %2682 = vmatpush3.bf16.msra.mxu1 %v3351_v8  ;;  %2770 = vmatprep.subr.bf16.mxu0 (!%p2577_p10), %v2769_v54  ;;  %v1492_v8 = vld [vmem:[#allocation12 + $0x78] sm:$0xff] (!%p2577_p10) }
 0x242   : > { %1406 = vmatmul.mubr.bf16.vlgmr.msra.gmra.mrb[4].mxu0 %v2509_v11  ;;  %v1666_v11 = vld [vmem:[%s612_s19] sm:$0xff] (!%p2577_p10) }
 0x243   : > { %1447 = vmatmul.mubr.bf16.vlgmr.msra.gmra.mrb[4].mxu1 %v2511_v15  ;;  %1575 = vmatprep.mubr.f32.mxu0 (!%p2577_p10), %v3995_v58  ;;  %v2781_v15 = vpack.c.bf16 (!%p2577_p10), %v1492_v8, %v1490_v5  ;;  %v1695_v8 = vld [vmem:[#allocation15 + $0x38] sm:$0xff] (!%p2577_p10) }
 0x244   : > { %2772 = vmatpush1.bf16.msra.mxu0 (!%p2577_p10), %v2771_v59  ;;  %1670 = vrot.lane.b32.xlu0 (!%p2577_p10), %v1666_v11, %s3996_s17 }
 0x245   : > { %2774 = vmatprep.subr.bf16.mxu0 (!%p2577_p10), %v2773_v60 }
 0x248   : > { %2776 = vmatpush1.bf16.msra.mxu0 (!%p2577_p10), %v2775_v1  ;;  %1672 = vrot.lane.b32.xlu0 (!%p2577_p10), %v1667_v14, %s3996_s17 }
 0x249   : > { %2778 = vmatprep.subr.bf16.mxu0 (!%p2577_p10), %v2777_v4 }
 0x24c   : > { %2780 = vmatpush1.bf16.msra.mxu0 (!%p2577_p10), %v2779_v13 }
 0x24d   : > { %2782 = vmatprep.subr.bf16.mxu0 (!%p2577_p10), %v2781_v15 }
 0x2f5   : > { %v2617_v17 = vpop.f32.mrb[0].mxu0 }
 0x2f6   : > { %v2639_v18 = vpop.f32.mrb[0].mxu1  ;;  %v2618_v19 = vpop.f32.mrb[1].mxu0 }
 0x2f7   : > { %v2619_v20 = vadd.f32 %v2618_v19, %v2617_v17  ;;  %v2640_v21 = vpop.f32.mrb[1].mxu1  ;;  %v2620_v22 = vpop.f32.mrb[2].mxu0  ;;  %v1491_v17 = vld [vmem:[#allocation12 + $0x70] sm:$0xff] (!%p2577_p10) }
 0x2f8   : > { %v2641_v23 = vadd.f32 %v2640_v21, %v2639_v18  ;;  %v2642_v24 = vpop.f32.mrb[2].mxu1  ;;  %v2621_v25 = vpop.f32.mrb[3].mxu0  ;;  %v2783_v18 = vpack.c.bf16 (!%p2577_p10), %v1491_v17, %v1489_v16  ;;  %v1495_v21 = vlaneseq (!%p2577_p10) }
 0x2f9   : > { %v2622_v26 = vadd.f32 %v2621_v25, %v2620_v22  ;;  %v2643_v27 = vpop.f32.mrb[3].mxu1  ;;  %v1671_v16 = vpop.permute.xlu0 (!%p2577_p10), %1670 }
 0x2fa   : > { %v1367_v28 = vadd.f32 %v2641_v23, %v2619_v20  ;;  %v2644_v29 = vadd.f32 %v2643_v27, %v2642_v24  ;;  %2784 = vmatpush1.bf16.msra.mxu0 (!%p2577_p10), %v2783_v18  ;;  %v1496_v22 = vshrl.u32 (!%p2577_p10), %v1495_v21, 7  ;;  %v1493_v24 = vld [vmem:[#allocation14] sm:$0x3] (!%p2577_p10)  ;;  %v1688_v27 = vld [vmem:[#allocation15] sm:$0xff] (!%p2577_p10) }
 0x2fc   : > { %v1370_v30 = vadd.f32 %v2644_v29, %v2622_v26  ;;  %v1497_v23 = vsub.s32 (!%p2577_p10), 0, %v1496_v22  ;;  %v1690_v29 = vld [vmem:[#allocation15 + $0x10] sm:$0xff] (!%p2577_p10) }
 0x2fd   : > { %v1673_v21 = vpop.permute.xlu0 (!%p2577_p10), %1672 }
 0x2fe   : > { %v1498_v25 = vrot.slane (!%p2577_p10), %v1493_v24, %v1497_v23 }
 0x315   : > { %v2661_v31 = vpop.f32.mrb[4].mxu0 }
 0x316   : > { %v2683_v32 = vpop.f32.mrb[4].mxu1  ;;  %v2662_v33 = vpop.f32.mrb[5].mxu0 }
 0x317   : > { %v2663_v34 = vadd.f32 %v2662_v33, %v2661_v31  ;;  %v2684_v35 = vpop.f32.mrb[5].mxu1  ;;  %v2664_v36 = vpop.f32.mrb[6].mxu0  ;;  %v1691_v33 = vld [vmem:[#allocation15 + $0x18] sm:$0xff] (!%p2577_p10) }
 0x318   : > { %v2685_v37 = vadd.f32 %v2684_v35, %v2683_v32  ;;  %v2686_v38 = vpop.f32.mrb[6].mxu1  ;;  %v2665_v39 = vpop.f32.mrb[7].mxu0  ;;  %v1692_v35 = vld [vmem:[#allocation15 + $0x20] sm:$0xff] (!%p2577_p10) }
 0x319   : > { %v1408_v40 = vadd.f32 %v2663_v34, %v1367_v28  ;;  %v2666_v41 = vadd.f32 %v2665_v39, %v2664_v36  ;;  %v2687_v42 = vpop.f32.mrb[7].mxu1  ;;  %v1689_v28 = vld [vmem:[#allocation15 + $0x8] sm:$0xff] (!%p2577_p10)  ;;  %v2789_v34 = vpack.c.bf16 (!%p2577_p10), %v1691_v33, %v1690_v29  ;;  %v1939_v29 = vld [vmem:[#allocation23] sm:$0xff] (!%p2577_p10) }
 0x31a   : > { %v2688_v44 = vadd.f32 %v2687_v42, %v2686_v38  ;;  %v2785_v32 = vpack.c.bf16 (!%p2577_p10), %v1689_v28, %v1688_v27  ;;  %v1693_v36 = vld [vmem:[#allocation15 + $0x28] sm:$0xff] (!%p2577_p10) }
 0x31b   : > { %v1449_v45 = vadd.f32 %v2685_v37, %v1408_v40  ;;  %v1411_v46 = vadd.f32 %v2666_v41, %v1370_v30  ;;  %1463 = sbr.rel (%p2577_p10) target bundleno = 2299 (0x8fb), region = 132  ;;  %v2793_v40 = vpack.c.bf16 (!%p2577_p10), %v1693_v36, %v1692_v35  ;;  %v1501_v41 = vsub.s32 (!%p2577_p10), 1, %v1496_v22  ;;  %v4816_v33 = vld [vmem:[%s621_s1] sm:$0xff] (!%p2577_p10)  ;;  %v4823_v35 = vld [vmem:[%s621_s1 + $0x8] sm:$0xff] (!%p2577_p10) }
 0x31c   : > { %2786 = vmatprep.subr.bf16.mxu1 (!%p2577_p10), %v2785_v32  ;;  %v4827_v36 = vand.u32 (!%p2577_p10), 2147483647, %v4823_v35  ;;  %vm5441_vm6 = vcmp.eq.f32.partialorder (!%p2577_p10), %v4816_v33, 0  ;;  %vm5439_vm12 = vcmp.lt.f32.partialorder (!%p2577_p10), %v4816_v33, 0 }
 0x31d   : > { %v1455_v48 = vadd.f32 %v1449_v45, %v729_v43  ;;  %v1452_v49 = vadd.f32 %v2688_v44, %v1411_v46  ;;  %2788 = vmatpush3.bf16.msra.mxu1 (!%p2577_p10), %v2785_v32  ;;  %v1502_v42 = vrot.slane (!%p2577_p10), %v1493_v24, %v1501_v41 }
 0x31e   : > { %2790 = vmatprep.subr.bf16.mxu1 (!%p2577_p10), %v2789_v34 }
 0x31f   : > { %1458 = vst.msk [vmem:[#allocation2] sm:$0xff] %vm5438_vm1, %v1455_v48  ;;  %v1456_v50 = vadd.f32 %v1452_v49, %v730_v47 }
 0x321   : > { %1459 = vst.msk [vmem:[#allocation2 + $0x8] sm:$0xff] %vm5438_vm1, %v1456_v50  ;;  %2792 = vmatpush3.bf16.msra.mxu1 (!%p2577_p10), %v2789_v34  ;;  %v4819_v34 = vand.u32 (!%p2577_p10), 2147483647, %v4816_v33 }
 0x322   : > { %2794 = vmatprep.subr.bf16.mxu1 %v2793_v40 }
 0x323   : > { %vm2849_vm8 = vcmp.gt.f32.partialorder %v4819_v34, 1065353216 }
 0x325   : > { %2796 = vmatpush3.bf16.msra.mxu1 %v2793_v40 }
 0x326   : > { %v1464_v6 = vld [vmem:[#allocation2] sm:$0xff] }
 0x327   : > { %v1473_v9 = vadd.f32 %v2578_v7, %v1464_v6 }
 0x328   : > { %v1465_v10 = vld [vmem:[#allocation2 + $0x8] sm:$0xff] }
 0x329   : > { %v1474_v12 = vadd.f32 %v2578_v7, %v1465_v10  ;;  %3356 = vtanh.f32 %v1473_v9  ;;  %v1694_v7 = vld [vmem:[#allocation15 + $0x30] sm:$0xff] }
 0x32a   : > { %v2797_v10 = vpack.c.bf16 %v1695_v8, %v1694_v7 }
 0x32b   : > { %3358 = vtanh.f32 %v1474_v12 }
 0x32c   : > { %2798 = vmatprep.subr.bf16.mxu1 %v2797_v10 }
 0x32d   : > { %2800 = vmatpush3.bf16.msra.mxu1 %v2797_v10 }
 0x333   : > { %v3357_v19 = vpop.eup %3356 }
 0x334   : > { %2579 = vmatmul.mubr.msk.f32.vlgmr.msra.gmra.mrb[0].mxu0 %vm5438_vm1, %v3357_v19 }
 0x335   : > { %v3359_v20 = vpop.eup %3358  ;;  %1581 = vmatprep.mubr.f32.mxu0 %v3995_v58 }
 0x338   : > { %2580 = vmatmul.mubr.msk.f32.gmra.mrb[2].mxu0 %vm5438_vm1, %v3359_v20 }
 0x407   : > { %v1577_v26 = vpop.f32.mrb[0].mxu0 }
 0x408   : > { %v4790_v30 = vadd.f32 %v1577_v26, %v1498_v25  ;;  %v1579_v31 = vpop.f32.mrb[1].mxu0 }
 0x409   : > { %v1580_v43 = vadd.f32 %v1579_v31, %v1502_v42  ;;  %v1940_v31 = vld [vmem:[#allocation23 + $0x8] sm:$0xff] }
 0x40a   : > { %1680 = vrot.lane.b32.xlu1 %v4790_v30, %s3996_s17  ;;  %v1662_v61 = vmul.f32 1.442695, %v4790_v30  ;;  %v2817_v32 = vpack.c.bf16 %v1940_v31, %v1939_v29 }
 0x40b   : > { %v1583_v37 = vpop.f32.mrb[2].mxu0  ;;  %v1594_v44 = vand.u32 2147483647, %v1580_v43  ;;  %v1588_v6 = vmax.f32 %v1580_v43, 0.0  ;;  %vm1590_vm4 = vcmp.ne.f32.partialorder %v1580_v43, %v1580_v43 }
 0x40c   : > { %v4794_v38 = vadd.f32 %v1583_v37, %v1498_v25  ;;  %v1585_v39 = vpop.f32.mrb[3].mxu0  ;;  %2818 = vmatprep.subr.bf16.mxu1 %v2817_v32 }
 0x40d   : > { %v1586_v45 = vadd.f32 %v1585_v39, %v1502_v42  ;;  %v1596_v46 = vsub.f32 0.0, %v1594_v44 }
 0x40e   : > { %1682 = vrot.lane.b32.xlu1 %v4794_v38, %s3996_s17  ;;  %v1664_v4 = vmul.f32 1.442695, %v4794_v38 }
 0x40f   : > { %v1595_v47 = vand.u32 2147483647, %v1586_v45  ;;  %v1598_v48 = vmul.f32 1.442695, %v1596_v46  ;;  %v1589_v13 = vmax.f32 %v1586_v45, 0.0  ;;  %vm1591_vm5 = vcmp.ne.f32.partialorder %v1586_v45, %v1586_v45 }
 0x411   : > { %v1597_v49 = vsub.f32 0.0, %v1595_v47  ;;  %3360 = vpow2.f32 %v1598_v48 }
 0x413   : > { %v1600_v50 = vmul.f32 1.442695, %v1597_v49 }
 0x415   : > { %3362 = vpow2.f32 %v1600_v50 }
 0x41b   : > { %v3361_v51 = vpop.eup %3360 }
 0x41c   : > { %v1602_v52 = vadd.f32 1.0, %v3361_v51  ;;  %v1605_v55 = vmul.f32 -0.5, %v3361_v51  ;;  %v1608_v60 = vand.u32 2147483647, %v3361_v51 }
 0x41e   : > { %3364 = vlog2.f32 %v1602_v52  ;;  %v1606_v57 = vadd.f32 1.0, %v1605_v55  ;;  %vm1609_vm2 = vcmp.lt.f32.partialorder %v1608_v60, 0.0004427343 }
 0x41f   : > { %v3363_v53 = vpop.eup %3362 }
 0x420   : > { %v1611_v54 = vadd.f32 1.0, %v3363_v53  ;;  %v1614_v59 = vmul.f32 -0.5, %v3363_v53  ;;  %v1607_v0 = vmul.f32 %v3361_v51, %v1606_v57  ;;  %v1617_v2 = vand.u32 2147483647, %v3363_v53 }
 0x422   : > { %3366 = vlog2.f32 %v1611_v54  ;;  %v1615_v1 = vadd.f32 1.0, %v1614_v59  ;;  %vm1618_vm3 = vcmp.lt.f32.partialorder %v1617_v2, 0.0004427343 }
 0x423   : > { %3368 = vpow2.f32 %v1662_v61  ;;  %v3998_v61 = vmov 2139095040  }
 0x424   : > { %v1616_v9 = vmul.f32 %v3363_v53, %v1615_v1  ;;  %3370 = vpow2.f32 %v1664_v4 }
 0x428   : > { %v3365_v56 = vpop.eup %3364 }
 0x429   : > { %v1604_v62 = vmul.f32 0.6931472, %v3365_v56 }
 0x42b   : > { %v1610_v3 = vsel %vm1609_vm2, %v1607_v0, %v1604_v62  ;;  %vm2848_vm2 = vcmp.lt.s32.totalorder %v4816_v33, 0 }
 0x42c   : > { %v3367_v63 = vpop.eup %3366  ;;  %v1620_v11 = vadd.f32 %v1610_v3, %v1588_v6  ;;  %v3999_v6 = vmov 0  }
 0x42d   : > { %v1613_v5 = vmul.f32 0.6931472, %v3367_v63  ;;  %v3369_v17 = vpop.eup %3368 }
 0x42e   : > { %v4800_v14 = vsel %vm1590_vm4, %v1580_v43, %v1620_v11  ;;  %v1676_v19 = vmul.f32 %v3369_v17, %v1671_v16  ;;  %v3371_v20 = vpop.eup %3370  ;;  %vm2870_vm4 = vcmp.ne.f32.partialorder %v4816_v33, %v4816_v33 }
 0x42f   : > { %v1619_v12 = vsel %vm1618_vm3, %v1616_v9, %v1613_v5  ;;  %3372 = vrcp.f32 %v4800_v14  ;;  %v1677_v24 = vmul.f32 %v3371_v20, %v1673_v21 }
 0x430   : > { %v1621_v15 = vadd.f32 %v1619_v12, %v1589_v13 }
 0x432   : > { %v4803_v18 = vsel %vm1591_vm5, %v1586_v45, %v1621_v15 }
 0x433   : > { %3374 = vrcp.f32 %v4803_v18 }
 0x434   : > { %3376 = vlog2.f32 %v4819_v34 }
 0x435   : > { %3378 = vlog2.f32 %v4827_v36 }
 0x439   : > { %v4807_v27 = vpop.eup %3372 }
 0x43a   : > { %v4968_v17 = vand.u32 2147483647, %v4807_v27 }
 0x43d   : > { %v4811_v28 = vpop.eup %3374 }
 0x43e   : > { %v3377_v39 = vpop.eup %3376  ;;  %v5039_v53 = vand.u32 2147483647, %v4811_v28 }
 0x43f   : > { %v3379_v44 = vpop.eup %3378 }
 0x47c   : > { %v1681_v22 = vpop.permute.xlu1 %1680 }
 0x47d   : > { %v1686_v23 = vadd.f32 %v1681_v22, %v1676_v19 }
 0x47f   : > { %1705 = vrot.lane.b32.xlu0 %v1686_v23, %s3996_s17 }
 0x480   : > { %v1683_v25 = vpop.permute.xlu1 %1682 }
 0x481   : > { %v1687_v26 = vadd.f32 %v1683_v25, %v1677_v24 }
 0x483   : > { %1707 = vrot.lane.b32.xlu1 %v1687_v26, %s3996_s17  ;;  %1919 = vrot.lane.b32.xlu0 %v4807_v27, %s3997_s8 }
 0x487   : > { %1921 = vrot.lane.b32.xlu1 %v4811_v28, %s3997_s8 }
 0x4f1   : > { %v1706_v37 = vpop.permute.xlu0 %1705 }
 0x4f2   : > { %2733 = vmatprep.mubr.msk.f32.mxu1 %vm5438_vm1, %v1706_v37 }
 0x4f5   : > { %v1708_v40 = vpop.permute.xlu1 %1707  ;;  %v4831_v41 = vpop.permute.xlu0 %1919 }
 0x4f6   : > { %v2827_v42 = vmul.f32 %v3377_v39, %v4831_v41  ;;  %v4836_v43 = vand.u32 2147483647, %v4831_v41  ;;  %2734 = vmatmul.mubr.msk.f32.vlgmr.msra.gmra.mrb[0].mxu1 %vm5438_vm1, %v1708_v40  ;;  %vm5442_vm7 = vcmp.lt.f32.partialorder %v4831_v41, 0  ;;  %v2834_v45 = vtrunc.f32 %v4831_v41 }
 0x4f7   : > { %2820 = vmatpush3.bf16.msra.mxu1 %v2817_v32  ;;  %vm4849_vm11 = vmand %vm5442_vm7, %vm5441_vm6  ;;  %vm2831_vm5 = vcmp.eq.f32.partialorder %v4831_v41, 0  ;;  %vm2871_vm1 = vcmp.ne.f32.partialorder %v4831_v41, %v4831_v41  ;;  %v2865_v62 = vsel %vm5442_vm7, 0, %v3998_v61 }
 0x4f8   : > { %3380 = vpow2.f32 %v2827_v42  ;;  %vm5440_vm9 = vcmp.eq.f32.partialorder %v4836_v43, 2139095040  ;;  %v2838_v46 = vtrunc.f32 %v4836_v43  ;;  %vm2835_vm10 = vcmp.ne.f32.partialorder %v4831_v41, %v2834_v45  ;;  %vm4868_vm14 = vmxor %vm5442_vm7, %vm2849_vm8 }
 0x4f9   : > { %v4853_v48 = vpop.permute.xlu1 %1921  ;;  %vm4858_vm13 = vmor %vm2835_vm10, %vm5440_vm9  ;;  %v2866_v8 = vxor.u32 2147483648, %v2865_v62 }
 0x4fa   : > { %v2839_v50 = vcvt.f32.s32 %v2838_v46  ;;  %v2879_v51 = vmul.f32 %v3379_v44, %v4853_v48  ;;  %v4864_v52 = vand.u32 2147483647, %v4853_v48  ;;  %v2886_v54 = vtrunc.f32 %v4853_v48  ;;  %vm2842_vm15 = vmneg %vm4858_vm13 }
 0x4fb   : > { %vm4881_vm3 = vmand %vm5439_vm12, %vm4858_vm13  ;;  %vm2837_vm13 = vcmp.lt.f32.partialorder %v4836_v43, 1266679808 }
 0x4fc   : > { %v2840_v55 = vand.u32 1, %v2839_v50  ;;  %3382 = vpow2.f32 %v2879_v51  ;;  %v2890_v57 = vtrunc.f32 %v4864_v52  ;;  %vm5443_vm9 = vcmp.eq.f32.partialorder %v4864_v52, 2139095040 }
 0x4fd   : > { %vm2887_vm6 = vcmp.ne.f32.partialorder %v4853_v48, %v2886_v54  ;;  %v2942_v50 = vtrunc.f32 %v4968_v17  ;;  %v2938_v54 = vtrunc.f32 %v4807_v27 }
 0x4fe   : > { %vm2841_vm8 = vcmp.eq.s32.totalorder %v2840_v55, 1  ;;  %v2891_v59 = vcvt.f32.s32 %v2890_v57  ;;  %v2990_v57 = vtrunc.f32 %v4811_v28 }
 0x4ff   : > { %vm2843_vm12 = vmand %vm2841_vm8, %vm2842_vm15  ;;  %vm5554_vm8 = vcmp.eq.f32.partialorder %v4816_v33, 1065353216  ;;  %v2943_v55 = vcvt.f32.s32 %v2942_v50 }
 0x500   : > { %vm4898_vm0 = vmand %vm2837_vm13, %vm2843_vm12  ;;  %v2892_v1 = vand.u32 1, %v2891_v59  ;;  %vm5560_vm12 = vcmp.eq.f32.partialorder %v4816_v33, 0 }
 0x501   : > { %vm4909_vm10 = vmand %vm2848_vm2, %vm4898_vm0  ;;  %v2867_v12 = vsel %vm4898_vm0, %v2866_v8, %v2865_v62  ;;  %vm2898_vm2 = vcmp.eq.f32.partialorder %v4823_v35, 0 }
 0x502   : > { %vm4913_vm15 = vmor %vm2870_vm4, %vm2871_vm1  ;;  %v3381_v2 = vpop.eup %3380  ;;  %vm5559_vm4 = vcmp.lt.f32.partialorder %v4831_v41, 0 }
 0x503   : > { %vm4922_vm13 = vmor %vm5554_vm8, %vm2831_vm5  ;;  %v2852_v5 = vsel %vm4881_vm3, 2143289344, %v3381_v2  ;;  %v2853_v7 = vsel %vm5559_vm4, 2139095040, %v3999_v6  ;;  %vm2893_vm5 = vcmp.eq.s32.totalorder %v2892_v1, 1  ;;  %vm2900_vm3 = vcmp.lt.s32.totalorder %v4823_v35, 0 }
 0x504   : > { %vm4930_vm1 = vmor %vm2887_vm6, %vm5443_vm9  ;;  %v2854_v9 = vsel %vm5560_vm12, %v2853_v7, %v2852_v5  ;;  %vm2889_vm9 = vcmp.lt.f32.partialorder %v4864_v52, 1266679808  ;;  %vm5564_vm12 = vcmp.lt.f32.partialorder %v4853_v48, 0  ;;  %v1796_v5 = vld [vmem:[#allocation18 + $0x30] sm:$0xff]  ;;  %v1797_v7 = vld [vmem:[#allocation18 + $0x38] sm:$0xff] }
 0x505   : > { %vm2894_vm8 = vmneg %vm4930_vm1  ;;  %v2856_v11 = vxor.u32 2147483648, %v2854_v9  ;;  %v2917_v15 = vsel %vm5564_vm12, 0, %v3998_v61  ;;  %v2813_v8 = vpack.c.bf16 %v1797_v7, %v1796_v5 }
 0x506   : > { %vm5561_vm6 = vmor %vm4849_vm11, %vm4868_vm14  ;;  %v3383_v16 = vpop.eup %3382  ;;  %vm2850_vm11 = vcmp.eq.f32.partialorder %v4819_v34, 2139095040  ;;  %vm2901_vm14 = vcmp.gt.f32.partialorder %v4827_v36, 1065353216  ;;  %v2918_v29 = vxor.u32 2147483648, %v2917_v15 }
 0x507   : > { %v2861_v10 = vsel %vm5561_vm6, 2139095040, %v3999_v6  ;;  %vm2895_vm4 = vmand %vm2893_vm5, %vm2894_vm8  ;;  %vm5565_vm5 = vcmp.lt.f32.partialorder %v4823_v35, 0  ;;  %v2857_v19 = vsel %vm4909_vm10, %v2856_v11, %v2854_v9  ;;  %vm5571_vm10 = vcmp.lt.f32.partialorder %v4816_v33, 0 }
 0x508   : > { %vm4954_vm7 = vmand %vm2889_vm9, %vm2895_vm4  ;;  %vm5566_vm9 = vcmp.eq.f32.partialorder %v4816_v33, 3212836864  ;;  %v2868_v25 = vsel %vm5571_vm10, %v2867_v12, %v2865_v62  ;;  %v1790_v62 = vld [vmem:[#allocation18] sm:$0xff] }
 0x509   : > { %vm2903_vm0 = vmand %vm5565_vm5, %vm4930_vm1  ;;  %v2863_v20 = vsel %vm5566_vm9, 1065353216, %v2861_v10  ;;  %vm5570_vm1 = vcmp.eq.f32.partialorder %v4836_v43, 2139095040  ;;  %vm2922_vm5 = vcmp.ne.f32.partialorder %v4823_v35, %v4823_v35  ;;  %v2919_v37 = vsel %vm4954_vm7, %v2918_v29, %v2917_v15 }
 0x50a   : > { %v2904_v21 = vsel %vm2903_vm0, 2143289344, %v3383_v16  ;;  %vm5567_vm8 = vmmov %vm5564_vm12  ;;  %v2864_v24 = vsel %vm5570_vm1, %v2863_v20, %v2857_v19 }
 0x50b   : > { %v2905_v22 = vsel %vm5567_vm8, 2139095040, %v3999_v6  ;;  %vm4981_vm6 = vmand %vm2900_vm3, %vm4954_vm7  ;;  %v2869_v31 = vsel %vm2850_vm11, %v2868_v25, %v2864_v24  ;;  %vm2914_vm3 = vcmp.eq.f32.partialorder %v4823_v35, 3212836864  ;;  %vm2923_vm11 = vcmp.ne.f32.partialorder %v4853_v48, %v4853_v48 }
 0x50c   : > { %v2906_v26 = vsel %vm2898_vm2, %v2905_v22, %v2904_v21  ;;  %vm5572_vm4 = vmmov %vm5567_vm8  ;;  %vm2832_vm8 = vcmp.eq.f32.partialorder %v4831_v41, 1065353216  ;;  %v2873_v34 = vsel %vm4913_vm15, 2143289344, %v2869_v31  ;;  %vm2899_vm15 = vcmp.eq.f32.partialorder %v4823_v35, 1065353216 }
 0x50d   : > { %vm2910_vm12 = vmand %vm5572_vm4, %vm2898_vm2  ;;  %v2908_v32 = vxor.u32 2147483648, %v2906_v26  ;;  %vm2902_vm2 = vcmp.eq.f32.partialorder %v4827_v36, 2139095040  ;;  %v2875_v39 = vsel %vm4922_vm13, 1065353216, %v2873_v34  ;;  %vm5574_vm7 = vcmp.eq.f32.partialorder %v4864_v52, 2139095040 }
 0x50e   : > { %vm5573_vm0 = vmmov %vm5572_vm4  ;;  %v2876_v41 = vsel %vm2832_vm8, %v4816_v33, %v2875_v39  ;;  %vm5575_vm13 = vcmp.lt.f32.partialorder %v4823_v35, 0  ;;  %vm2884_vm4 = vcmp.eq.f32.partialorder %v4853_v48, 1065353216  ;;  %vm2991_vm8 = vcmp.ne.f32.partialorder %v4811_v28, %v2990_v57 }
 0x50f   : > { %vm2911_vm9 = vmxor %vm5573_vm0, %vm2901_vm14  ;;  %v2909_v40 = vsel %vm4981_vm6, %v2908_v32, %v2906_v26  ;;  %vm2883_vm14 = vcmp.eq.f32.partialorder %v4853_v48, 0  ;;  %v5020_v43 = vsub.f32 1.0, %v2876_v41  ;;  %v2920_v45 = vsel %vm5575_vm13, %v2919_v37, %v2917_v15 }
 0x510   : > { %vm2912_vm1 = vmor %vm2910_vm12, %vm2911_vm9  ;;  %v2994_v48 = vtrunc.f32 %v5039_v53  ;;  %vm5445_vm12 = vcmp.eq.f32.partialorder %v4968_v17, 2139095040  ;;  %vm5444_vm9 = vcmp.eq.f32.partialorder %v5039_v53, 2139095040 }
 0x511   : > { %v2913_v42 = vsel %vm2912_vm1, 2139095040, %v3999_v6  ;;  %vm2924_vm6 = vmor %vm2922_vm5, %vm2923_vm11  ;;  %v5030_v47 = vand.u32 2147483647, %v5020_v43 }
 0x512   : > { %v2915_v36 = vsel %vm2914_vm3, 1065353216, %v2913_v42  ;;  %vm2926_vm10 = vmor %vm2899_vm15, %vm2883_vm14  ;;  %vm2939_vm3 = vcmp.ne.f32.partialorder %v4807_v27, %v2938_v54  ;;  %v2995_v59 = vcvt.f32.s32 %v2994_v48  ;;  %vm2941_vm15 = vcmp.lt.f32.partialorder %v4968_v17, 1266679808 }
 0x513   : > { %v2916_v44 = vsel %vm5574_vm7, %v2915_v36, %v2909_v40  ;;  %3384 = vlog2.f32 %v5030_v47  ;;  %vm5052_vm5 = vmor %vm2939_vm3, %vm5445_vm12  ;;  %vm2953_vm14 = vcmp.gt.f32.partialorder %v5030_v47, 1065353216  ;;  %vm2951_vm12 = vcmp.eq.f32.partialorder %v5020_v43, 1065353216 }
 0x514   : > { %v2921_v46 = vsel %vm2902_vm2, %v2920_v45, %v2916_v44  ;;  %vm2946_vm2 = vmneg %vm5052_vm5  ;;  %v2996_v0 = vand.u32 1, %v2995_v59 }
 0x515   : > { %v2925_v33 = vsel %vm2924_vm6, 2143289344, %v2921_v46  ;;  %vm5063_vm11 = vmor %vm2991_vm8, %vm5444_vm9  ;;  %vm2937_vm6 = vcmp.lt.f32.partialorder %v4807_v27, 0 }
 0x516   : > { %v2927_v49 = vsel %vm2926_vm10, 1065353216, %v2925_v33  ;;  %vm2997_vm13 = vcmp.eq.s32.totalorder %v2996_v0, 1  ;;  %vm2950_vm10 = vcmp.eq.f32.partialorder %v5020_v43, 0  ;;  %vm5080_vm3 = vmxor %vm2937_vm6, %vm2953_vm14  ;;  %v2969_v9 = vsel %vm2937_vm6, 0, %v3998_v61 }
 0x517   : > { %v2928_v51 = vsel %vm2884_vm4, %v4823_v35, %v2927_v49  ;;  %v2944_v35 = vand.u32 1, %v2943_v55  ;;  %vm2998_vm4 = vmneg %vm5063_vm11  ;;  %v2957_v12 = vsel %vm2937_vm6, 2139095040, %v3999_v6  ;;  %v2970_v20 = vxor.u32 2147483648, %v2969_v9 }
 0x518   : > { %v5036_v52 = vsub.f32 1.0, %v2928_v51  ;;  %vm5085_vm8 = vmand %vm2997_vm13, %vm2998_vm4  ;;  %vm2989_vm4 = vcmp.lt.f32.partialorder %v4811_v28, 0 }
 0x519   : > { %vm2945_vm0 = vcmp.eq.s32.totalorder %v2944_v35, 1  ;;  %v3009_v22 = vsel %vm2989_vm4, 2139095040, %v3999_v6  ;;  %v3021_v25 = vsel %vm2989_vm4, 0, %v3998_v61 }
 0x51a   : > { %v5043_v56 = vand.u32 2147483647, %v5036_v52  ;;  %vm2947_vm1 = vmand %vm2945_vm0, %vm2946_vm2  ;;  %vm2949_vm0 = vcmp.lt.f32.partialorder %v5020_v43, 0  ;;  %vm5446_vm9 = vcmp.eq.f32.partialorder %v5036_v52, 0  ;;  %v3022_v42 = vxor.u32 2147483648, %v3021_v25 }
 0x51b   : > { %vm5070_vm7 = vmand %vm2941_vm15, %vm2947_vm1  ;;  %vm2952_vm15 = vcmp.lt.s32.totalorder %v5020_v43, 0 }
 0x51c   : > { %3386 = vlog2.f32 %v5043_v56  ;;  %vm5093_vm2 = vmand %vm2937_vm6, %vm2950_vm10  ;;  %vm3005_vm1 = vcmp.gt.f32.partialorder %v5043_v56, 1065353216  ;;  %vm3001_vm6 = vcmp.lt.f32.partialorder %v5036_v52, 0  ;;  %v2971_v24 = vsel %vm5070_vm7, %v2970_v20, %v2969_v9 }
 0x51d   : > { %v3385_v60 = vpop.eup %3384  ;;  %vm2964_vm14 = vmor %vm5093_vm2, %vm5080_vm3  ;;  %vm2975_vm2 = vcmp.ne.f32.partialorder %v4807_v27, %v4807_v27  ;;  %v2972_v61 = vsel %vm2949_vm0, %v2971_v24, %v2969_v9  ;;  %v2029_v9 = vld [vmem:[#allocation21] sm:$0xff] }
 0x51e   : > { %v2931_v63 = vmul.f32 %v3385_v60, %v4807_v27  ;;  %vm2955_vm13 = vmand %vm2949_vm0, %vm5052_vm5  ;;  %v2965_v19 = vsel %vm2964_vm14, 2139095040, %v3999_v6  ;;  %vm2974_vm14 = vcmp.ne.f32.partialorder %v5020_v43, %v5020_v43  ;;  %vm5597_vm0 = vcmp.eq.f32.partialorder %v5036_v52, 0 }
 0x51f   : > { %vm5118_vm3 = vmxor %vm2989_vm4, %vm3005_vm1  ;;  %vm2993_vm1 = vcmp.lt.f32.partialorder %v5039_v53, 1266679808 }
 0x520   : > { %3388 = vpow2.f32 %v2931_v63  ;;  %vm5126_vm5 = vmand %vm2952_vm15, %vm5070_vm7  ;;  %vm2966_vm15 = vcmp.eq.f32.partialorder %v5020_v43, 3212836864  ;;  %v1791_v63 = vld [vmem:[#allocation18 + $0x8] sm:$0xff] }
 0x521   : > { %v2967_v31 = vsel %vm2966_vm15, 1065353216, %v2965_v19  ;;  %vm3007_vm7 = vmand %vm3001_vm6, %vm5063_vm11  ;;  %v2801_v0 = vpack.c.bf16 %v1791_v63, %v1790_v62  ;;  %v4000_v63 = vmov 1  }
 0x522   : > { %vm2976_vm11 = vmor %vm2974_vm14, %vm2975_vm2  ;;  %vm3027_vm2 = vcmp.ne.f32.partialorder %v4811_v28, %v4811_v28  ;;  %3353 = vset.pattern.permute.xlu0 %v4000_v63  ;;  %3352 = vset.pattern.permute.xlu1 %v4000_v63 }
 0x523   : > { %2802 = vmatprep.subr.bf16.mxu0 %v2801_v0 }
 0x524   : > { %2804 = vmatpush3.bf16.msra.mxu0 %v2801_v0 }
 0x526   : > { %v3387_v1 = vpop.eup %3386 }
 0x527   : > { %v2983_v3 = vmul.f32 %v3387_v1, %v4811_v28  ;;  %v1793_v1 = vld [vmem:[#allocation18 + $0x18] sm:$0xff] }
 0x529   : > { %3390 = vpow2.f32 %v2983_v3  ;;  %v1794_v3 = vld [vmem:[#allocation18 + $0x20] sm:$0xff] }
 0x52a   : > { %v3389_v10 = vpop.eup %3388 }
 0x52b   : > { %v2956_v11 = vsel %vm2955_vm13, 2143289344, %v3389_v10  ;;  %vm5594_vm13 = vcmp.eq.f32.partialorder %v4968_v17, 2139095040  ;;  %v2030_v10 = vld [vmem:[#allocation21 + $0x8] sm:$0xff] }
 0x52c   : > { %v2958_v15 = vsel %vm2950_vm10, %v2957_v12, %v2956_v11  ;;  %vm5142_vm10 = vmand %vm2989_vm4, %vm5446_vm9  ;;  %vm2954_vm9 = vcmp.eq.f32.partialorder %v5030_v47, 2139095040  ;;  %v2821_v11 = vpack.c.bf16 %v2030_v10, %v2029_v9  ;;  %v2581_v12 = vld [vmem:[#allocation17] ss:$0 sm:$0xff] }
 0x52d   : > { %v2960_v21 = vxor.u32 2147483648, %v2958_v15  ;;  %vm5174_vm4 = vmand %vm2993_vm1, %vm5085_vm8  ;;  %vm5599_vm1 = vcmp.eq.f32.partialorder %v4807_v27, 0 }
 0x52e   : > { %vm5598_vm8 = vmor %vm5142_vm10, %vm5118_vm3  ;;  %vm3018_vm3 = vcmp.eq.f32.partialorder %v5036_v52, 3212836864  ;;  %v3023_v45 = vsel %vm5174_vm4, %v3022_v42, %v3021_v25  ;;  %vm3026_vm10 = vcmp.ne.f32.partialorder %v5036_v52, %v5036_v52  ;;  %2822 = vmatprep.subr.bf16.mxu1 %v2821_v11 }
 0x52f   : > { %v2961_v29 = vsel %vm5126_vm5, %v2960_v21, %v2958_v15  ;;  %vm3004_vm5 = vcmp.lt.s32.totalorder %v5036_v52, 0  ;;  %v3017_v40 = vsel %vm5598_vm8, 2139095040, %v3999_v6  ;;  %vm2978_vm15 = vmor %vm2951_vm12, %vm5599_vm1  ;;  %vm3003_vm12 = vcmp.eq.f32.partialorder %v5036_v52, 1065353216 }
 0x530   : > { %v2968_v32 = vsel %vm5594_vm13, %v2967_v31, %v2961_v29  ;;  %vm3011_vm14 = vmand %vm3004_vm5, %vm5174_vm4  ;;  %v3019_v33 = vsel %vm3018_vm3, 1065353216, %v3017_v40  ;;  %vm3006_vm13 = vcmp.eq.f32.partialorder %v5043_v56, 2139095040  ;;  %v3024_v50 = vsel %vm3001_vm6, %v3023_v45, %v3021_v25 }
 0x531   : > { %v2973_v39 = vsel %vm2954_vm9, %v2972_v61, %v2968_v32  ;;  %vm2936_vm9 = vcmp.eq.f32.partialorder %v4807_v27, 1065353216  ;;  %vm2987_vm4 = vcmp.eq.f32.partialorder %v4811_v28, 0  ;;  %vm3028_vm5 = vmor %vm3026_vm10, %vm3027_vm2  ;;  %vm1941_vm6 = vcmask 130048   ;;  %v2584_v61 = vld [vmem:[#allocation20] ss:$0 sm:$0xff] }
 0x532   : > { %v2977_v41 = vsel %vm2976_vm11, 2143289344, %v2973_v39  ;;  %vm3030_vm11 = vmor %vm3003_vm12, %vm2987_vm4  ;;  %vm5601_vm8 = vcmask 523264   ;;  %vm1888_vm1 = vcmask 23552   ;;  %vm2151_vm3 = vcmask 195712  }
 0x533   : > { %v3391_v26 = vpop.eup %3390  ;;  %v2979_v44 = vsel %vm2978_vm15, 1065353216, %v2977_v41  ;;  %vm2112_vm15 = vcmask 64512   ;;  %vm5603_vm2 = vmmov %vm5601_vm8  ;;  %vm2164_vm10 = vcmask 203968   ;;  %vm2175_vm12 = vcmask 335048  }
 0x534   : > { %v3008_v37 = vsel %vm3007_vm7, 2143289344, %v3391_v26  ;;  %v5208_v27 = vsel %vm2936_vm9, %v5020_v43, %v2979_v44  ;;  %vm5600_vm7 = vcmp.eq.f32.partialorder %v5039_v53, 2139095040  ;;  %vm5602_vm9 = vmmov %vm5601_vm8  ;;  %vm2198_vm4 = vcmask 663112  }
 0x535   : > { %v3010_v17 = vsel %vm5597_vm0, %v3009_v22, %v3008_v37  ;;  %v1931_v47 = vsub.f32 1.0, %v5208_v27  ;;  %vm2988_vm0 = vcmp.eq.f32.partialorder %v4811_v28, 1065353216  ;;  %v1792_v28 = vld [vmem:[#allocation18 + $0x10] sm:$0xff] }
 0x536   : > { %v3012_v36 = vxor.u32 2147483648, %v3010_v17  ;;  %v2805_v2 = vpack.c.bf16 %v1793_v1, %v1792_v28 }
 0x537   : > { %v1933_v43 = vmax.f32 %v1931_v47, 1e-37  ;;  %v1629_v47 = vmul.f32 2.0, %v4794_v38 }
 0x538   : > { %v3013_v46 = vsel %vm3011_vm14, %v3012_v36, %v3010_v17  ;;  %2806 = vmatprep.subr.bf16.mxu0 %v2805_v2  ;;  %vm5604_vm14 = vmmov %vm5603_vm2 }
 0x539   : > { %v3020_v49 = vsel %vm5600_vm7, %v3019_v33, %v3013_v46  ;;  %3392 = vlog2.f32 %v1933_v43  ;;  %2808 = vmatpush3.bf16.msra.mxu0 %v2805_v2  ;;  %v1628_v33 = vmul.f32 2.0, %v4790_v30  ;;  %vm2187_vm7 = vcmask 597448  }
 0x53a   : > { %v3025_v51 = vsel %vm3006_vm13, %v3024_v50, %v3020_v49  ;;  %v1642_v50 = vmul.f32 1.442695, %v1629_v47  ;;  %vm2178_vm13 = vcmask 466248  }
 0x53b   : > { %v3029_v54 = vsel %vm3028_vm5, 2143289344, %v3025_v51  ;;  %v1640_v49 = vmul.f32 1.442695, %v1628_v33  ;;  %vm2201_vm5 = vcmask 671368  }
 0x53c   : > { %v3031_v55 = vsel %vm3030_vm11, 1065353216, %v3029_v54  ;;  %vm2204_vm11 = vcmask 679568  }
 0x53d   : > { %v3032_v53 = vsel %vm2988_vm0, %v5036_v52, %v3031_v55  ;;  %v1795_v52 = vld [vmem:[#allocation18 + $0x28] sm:$0xff]  ;;  %vm2207_vm0 = vcmask 1048216  }
 0x53e   : > { %v1932_v56 = vsub.f32 1.0, %v3032_v53  ;;  %v2809_v4 = vpack.c.bf16 %v1795_v52, %v1794_v3 }
 0x540   : > { %v1934_v48 = vmax.f32 %v1932_v56, 1e-37  ;;  %2810 = vmatprep.subr.bf16.mxu0 %v2809_v4 }
 0x541   : > { %2812 = vmatpush3.bf16.msra.mxu0 %v2809_v4 }
 0x542   : > { %3394 = vlog2.f32 %v1934_v48  ;;  %2814 = vmatprep.subr.bf16.mxu0 %v2813_v8 }
 0x543   : > { %v3393_v35 = vpop.eup %3392 }
 0x544   : > { %v1936_v57 = vmul.f32 0.6931472, %v3393_v35 }
 0x545   : > { %2816 = vmatpush3.bf16.msra.mxu0 %v2813_v8  ;;  %v1625_v8 = vmul.f32 %v4794_v38, %v4794_v38 }
 0x546   : > { %2759 = vmatprep.mubr.msk.f32.mxu1 %vm1941_vm6, %v1936_v57 }
 0x54c   : > { %v3395_v59 = vpop.eup %3394 }
 0x54d   : > { %v1938_v60 = vmul.f32 0.6931472, %v3395_v59 }
 0x54f   : > { %2760 = vmatmul.mubr.msk.f32.vlgmr.msra.gmra.mrb[2].mxu1 %vm1941_vm6, %v1938_v60 }
 0x550   : > { %2824 = vmatpush3.bf16.msra.mxu1 %v2821_v11  ;;  %v1627_v11 = vsub.f32 1.0, %v1625_v8 }
 0x5c9   : > { %v2735_v13 = vpop.f32.mrb[0].mxu1 }
 0x5ca   : > { %v1785_v15 = vadd.f32 %v2735_v13, %v2581_v12  ;;  %v1779_v16 = vpop.f32.mrb[1].mxu1 }
 0x5cb   : > { %v1780_v19 = vadd.f32 %v2581_v12, %v1779_v16  ;;  %v1624_v16 = vmul.f32 %v4790_v30, %v4790_v30 }
 0x5cd   : > { %3396 = vtanh.f32 %v1780_v19 }
 0x5ce   : > { %3398 = vtanh.f32 %v1785_v15 }
 0x5d7   : > { %v3397_v20 = vpop.eup %3396 }
 0x5d8   : > { %v3399_v21 = vpop.eup %3398  ;;  %2752 = vmatprep.mubr.msk.f32.mxu0 %vm5601_vm8, %v3397_v20 }
 0x5d9   : > { %2753 = vmatmul.mubr.msk.f32.vlgmr.msra.gmra.mrb[4].mxu0 %vm5602_vm9, %v3399_v21 }
 0x622   : > { %v2761_v22 = vpop.f32.mrb[2].mxu1 }
 0x623   : > { %v2025_v23 = vmul.f32 1.442695, %v2761_v22  ;;  %v2014_v24 = vpop.f32.mrb[3].mxu1 }
 0x624   : > { %v2023_v25 = vmul.f32 1.442695, %v2014_v24 }
 0x625   : > { %3400 = vpow2.f32 %v2025_v23 }
 0x626   : > { %3402 = vpow2.f32 %v2023_v25 }
 0x62f   : > { %v3401_v26 = vpop.eup %3400 }
 0x630   : > { %v3403_v29 = vpop.eup %3402  ;;  %v5230_v32 = vmul.f32 %v3401_v26, %v3032_v53 }
 0x631   : > { %v5228_v31 = vmul.f32 %v3403_v29, %v5208_v27 }
 0x633   : > { %2766 = vmatprep.mubr.msk.f32.mxu1 %vm1941_vm6, %v5228_v31 }
 0x634   : > { %2767 = vmatmul.mubr.msk.f32.vlgmr.msra.gmra.mrb[4].mxu1 %vm1941_vm6, %v5230_v32 }
 0x6ac   : > { %v2754_v34 = vpop.f32.mrb[4].mxu0 }
 0x6ad   : > { %v1883_v37 = vadd.f32 %v2754_v34, %v2584_v61  ;;  %v1877_v39 = vpop.f32.mrb[5].mxu0 }
 0x6ae   : > { %v1878_v17 = vadd.f32 %v2584_v61, %v1877_v39 }
 0x6af   : > { %3404 = vtanh.f32 %v1883_v37 }
 0x6b0   : > { %3406 = vtanh.f32 %v1878_v17 }
 0x6b1   : > { %3408 = vpow2.f32 %v1640_v49 }
 0x6b2   : > { %3410 = vpow2.f32 %v1642_v50 }
 0x6b9   : > { %v3405_v40 = vpop.eup %3404 }
 0x6ba   : > { %v3407_v42 = vpop.eup %3406  ;;  %v1892_v41 = vsel %vm1888_vm1, %v3405_v40, -inf }
 0x6bb   : > { %1893 = vmax.xlane.f32.xlu1 %v1892_v41  ;;  %v1889_v36 = vsel %vm1888_vm1, %v3407_v42, -inf  ;;  %v3409_v51 = vpop.eup %3408 }
 0x6bc   : > { %1890 = vmax.xlane.f32.xlu0 %v1889_v36  ;;  %v3411_v43 = vpop.eup %3410 }
 0x707   : > { %v5238_v44 = vpop.f32.mrb[4].mxu1 }
 0x708   : > { %v5240_v45 = vpop.f32.mrb[5].mxu1  ;;  %v2116_v27 = vsel %vm2112_vm15, %v5238_v44, 0.0 }
 0x709   : > { %v2113_v46 = vsel %vm2112_vm15, %v5240_v45, 0.0 }
 0x70a   : > { %2114 = vadd.xlane.f32.xlu1 %v2113_v46 }
 0x71b   : > { %1632 = vrot.lane.b32.xlu1 %v1628_v33, %s3996_s17 }
 0x71f   : > { %1646 = vrot.lane.b32.xlu1 %v3409_v51, %s3996_s17 }
 0x723   : > { %1648 = vrot.lane.b32.xlu1 %v3411_v43, %s3996_s17 }
 0x748   : > { %v1894_v54 = vpop.xlane.xlu1 %1893 }
 0x749   : > { %v1896_v55 = vsub.f32 %v3405_v40, %v1894_v54  ;;  %v1891_v53 = vpop.xlane.xlu0 %1890 }
 0x74a   : > { %v1895_v56 = vsub.f32 %v3407_v42, %v1891_v53 }
 0x74b   : > { %v1899_v48 = vmul.f32 1.442695, %v1896_v55 }
 0x74c   : > { %v1897_v35 = vmul.f32 1.442695, %v1895_v56 }
 0x74e   : > { %3412 = vpow2.f32 %v1897_v35 }
 0x74f   : > { %3414 = vpow2.f32 %v1899_v48 }
 0x758   : > { %v3413_v57 = vpop.eup %3412 }
 0x759   : > { %v1901_v59 = vsel %vm1888_vm1, %v3413_v57, 0.0  ;;  %v3415_v60 = vpop.eup %3414 }
 0x75a   : > { %1902 = vadd.xlane.f32.xlu0 %v1901_v59  ;;  %v1904_v62 = vsel %vm1888_vm1, %v3415_v60, 0.0 }
 0x75e   : > { %1905 = vadd.xlane.f32.xlu0 %v1904_v62 }
 0x762   : > { %2117 = vadd.xlane.f32.xlu0 %v2116_v27 }
 0x778   : > { %1634 = vrot.lane.b32.xlu0 %v1629_v47, %s3996_s17 }
 0x797   : > { %v5253_v4 = vpop.xlane.xlu1 %2114 }
 0x79b   : > { %v1633_v5 = vpop.permute.xlu1 %1632 }
 0x79f   : > { %v1647_v9 = vpop.permute.xlu1 %1646 }
 0x7a3   : > { %v1649_v13 = vpop.permute.xlu1 %1648 }
 0x7e7   : > { %v1903_v0 = vpop.xlane.xlu0 %1902 }
 0x7e8   : > { %3416 = vrcp.f32 %v1903_v0 }
 0x7eb   : > { %v1906_v28 = vpop.xlane.xlu0 %1905 }
 0x7ec   : > { %3418 = vrcp.f32 %v1906_v28 }
 0x7ef   : > { %v5255_v7 = vpop.xlane.xlu0 %2117 }
 0x7f2   : > { %v3417_v1 = vpop.eup %3416 }
 0x7f3   : > { %v1908_v2 = vmul.f32 %v3417_v1, %v3413_v57  ;;  %v1635_v10 = vpop.permute.xlu0 %1634 }
 0x7f4   : > { %v1639_v12 = vadd.f32 %v1635_v10, %v1627_v11 }
 0x7f5   : > { %2134 = vperm.xlu0 %3353, %v1908_v2   ;;  %v2154_v30 = vmul.f32 %v5253_v4, %v1908_v2 }
 0x7f6   : > { %v3419_v3 = vpop.eup %3418  ;;  %v1653_v15 = vsub.f32 %v1639_v12, %v1649_v13 }
 0x7f7   : > { %v1910_v52 = vmul.f32 %v3419_v3, %v3415_v60 }
 0x7f8   : > { %v1657_v19 = vsel %vm5603_vm2, %v1653_v15, 0.0 }
 0x7f9   : > { %2138 = vperm.xlu1 %3352, %v1910_v52   ;;  %3354 = vset.pattern.permute.xlu0 %v3999_v6  ;;  %v1626_v6 = vsub.f32 1.0, %v1624_v16  ;;  %v2155_v38 = vmul.f32 %v5255_v7, %v1910_v52 }
 0x7fb   : > { %v1638_v20 = vadd.f32 %v1633_v5, %v1626_v6 }
 0x7fd   : > { %v1652_v21 = vsub.f32 %v1638_v20, %v1647_v9 }
 0x7ff   : > { %v1654_v22 = vsel %vm5604_vm14, %v1652_v21, 0.0 }
 0x814   : > { %1658 = vadd.xlane.f32.xlu0 %v1657_v19 }
 0x81d   : > { %1655 = vadd.xlane.f32.xlu1 %v1654_v22 }
 0x82a   : > { %2126 = vperm.xlu0 %3354, %v1910_v52  }
 0x82e   : > { %2121 = vperm.xlu0 %3354, %v1908_v2   ;;  %2169 = vrot.lane.b32.xlu1 %v4800_v14, %s4001_s7 }
 0x832   : > { %2171 = vrot.lane.b32.xlu1 %v4803_v18, %s4001_s7  ;;  %3355 = vset.pattern.permute.xlu0 %v4000_v63 }
 0x836   : > { %2160 = vrot.lane.b32.xlu1 %v2155_v38, %s4002_s20 }
 0x83a   : > { %2158 = vrot.lane.b32.xlu1 %v2154_v30, %s4002_s20 }
 0x874   : > { %v2135_v23 = vpop.permute.xlu0 %2134 }
 0x875   : > { %v2141_v24 = vmul.f32 %v2135_v23, %v5240_v45 }
 0x877   : > { %2145 = vrot.lane.b32.xlu1 %v2141_v24, %s4003_s10 }
 0x878   : > { %v2139_v25 = vpop.permute.xlu1 %2138 }
 0x879   : > { %v2142_v14 = vmul.f32 %v5238_v44, %v2139_v25 }
 0x87b   : > { %2147 = vrot.lane.b32.xlu0 %v2142_v14, %s4003_s10  ;;  %2183 = vrot.lane.b32.xlu1 %v5230_v32, %s4004_s18 }
 0x87f   : > { %2181 = vrot.lane.b32.xlu0 %v5228_v31, %s4004_s18  ;;  %2194 = vrot.lane.b32.xlu1 %v5238_v44, %s4005_s28 }
 0x883   : > { %2192 = vrot.lane.b32.xlu0 %v5240_v45, %s4005_s28 }
 0x8a1   : > { %v1659_v18 = vpop.xlane.xlu0 %1658 }
 0x8a2   : > { %v1661_v45 = vmul.f32 -0.5, %v1659_v18 }
 0x8a9   : > { %v2127_v26 = vpop.permute.xlu0 %2126 }
 0x8aa   : > { %v2130_v29 = vmul.f32 %v2127_v26, %v5230_v32  ;;  %v1656_v37 = vpop.xlane.xlu1 %1655 }
 0x8ab   : > { %v1660_v46 = vmul.f32 -0.5, %v1656_v37 }
 0x8ac   : > { %2132 = vst.msk [vmem:[%s4702_s23 + $0x8] sm:$0xff] %vm1941_vm6, %v2130_v29 }
 0x8ad   : > { %v2122_v61 = vpop.permute.xlu0 %2121 }
 0x8ae   : > { %v2129_v34 = vmul.f32 %v2122_v61, %v5228_v31  ;;  %v2170_v39 = vpop.permute.xlu1 %2169 }
 0x8b0   : > { %2131 = vst.msk [vmem:[%s4702_s23] sm:$0xff] %vm1941_vm6, %v2129_v34 }
 0x8b2   : > { %v2172_v17 = vpop.permute.xlu1 %2171 }
 0x8b6   : > { %v2161_v40 = vpop.permute.xlu1 %2160 }
 0x8ba   : > { %v2159_v42 = vpop.permute.xlu1 %2158 }
 0x8e9   : > { %v2146_v32 = vpop.permute.xlu1 %2145 }
 0x8ea   : > { %2152 = vst.msk [vmem:[%s4702_s23] sm:$0xff] %vm2151_vm3, %v2146_v32 }
 0x8eb   : > { %2165 = vst.msk [vmem:[%s4702_s23] sm:$0xff] %vm2164_vm10, %v2159_v42 }
 0x8ec   : > { %2176 = vst.msk [vmem:[%s4702_s23] sm:$0xff] %vm2175_vm12, %v2170_v39 }
 0x8ed   : > { %v2148_v31 = vpop.permute.xlu0 %2147  ;;  %v2184_v41 = vpop.permute.xlu1 %2183  ;;  %2179 = vst.msk [vmem:[%s4702_s23] sm:$0xff] %vm2178_vm13, %v2170_v39 }
 0x8ee   : > { %2153 = vst.msk [vmem:[%s4702_s23 + $0x8] sm:$0xff] %vm2151_vm3, %v2148_v31 }
 0x8ef   : > { %2166 = vst.msk [vmem:[%s4702_s23 + $0x8] sm:$0xff] %vm2164_vm10, %v2161_v40 }
 0x8f0   : > { %2177 = vst.msk [vmem:[%s4702_s23 + $0x8] sm:$0xff] %vm2175_vm12, %v2172_v17 }
 0x8f1   : > { %2180 = vst.msk [vmem:[%s4702_s23 + $0x8] sm:$0xff] %vm2178_vm13, %v2172_v17  ;;  %v2182_v36 = vpop.permute.xlu0 %2181  ;;  %v2195_v44 = vpop.permute.xlu1 %2194 }
 0x8f2   : > { %2189 = vst.msk [vmem:[%s4702_s23 + $0x8] sm:$0xff] %vm2187_vm7, %v2184_v41  ;;  %2188 = vst.msk [vmem:[%s4702_s23] sm:$0xff] %vm2187_vm7, %v2182_v36 }
 0x8f3   : > { %2200 = vst.msk [vmem:[%s4702_s23 + $0x8] sm:$0xff] %vm2198_vm4, %v2195_v44 }
 0x8f4   : > { %2203 = vst.msk [vmem:[%s4702_s23 + $0x8] sm:$0xff] %vm2201_vm5, %v5255_v7 }
 0x8f5   : > { %2206 = vst.msk [vmem:[%s4702_s23 + $0x8] sm:$0xff] %vm2204_vm11, %v1661_v45  ;;  %v2193_v27 = vpop.permute.xlu0 %2192 }
 0x8f6   : > { %2209 = vst.msk [vmem:[%s4702_s23 + $0x8] sm:$0xff] %vm2207_vm0, %v3995_v58 }
 0x8f7   : > { %2199 = vst.msk [vmem:[%s4702_s23] sm:$0xff] %vm2198_vm4, %v2193_v27 }
 0x8f8   : > { %2202 = vst.msk [vmem:[%s4702_s23] sm:$0xff] %vm2201_vm5, %v5253_v4 }
 0x8f9   : > { %2205 = vst.msk [vmem:[%s4702_s23] sm:$0xff] %vm2204_vm11, %v1660_v46 }
 0x8fa   : > { %2208 = vst.msk [vmem:[%s4702_s23] sm:$0xff] %vm2207_vm0, %v3995_v58 }
 0x8fb PF: > { %s5605_s13 = sld [smem:[#allocation42_spill]]  ;;  %s5607_s25 = sld [smem:[#allocation61_spill]] }
 0x8fc   : > { %s2224_s19 = sshll.u32 %s4702_s23, 4  ;;  %s5314_s0 = scalar_lea.sflag [#allocation5], %s610_s5  ;;  %s5310_s19 = int_to_ptr.vmem [resolvable:$true] %s2224_s19 }
 0x8fd   : > { %s3792_s1 = scalar_lea.vmem %s5310_s19, 256  ;;  %p5609_p6 = scmp.ne.s32.totalorder %s5515_s2, 0 }
 0x8fe   : > { %p3793_p5 = scmp.ne.s32.totalorder %s5310_s19, %s3792_s1  ;;  %s4006_s26 = smov [#allocation24]  }
 0x8ff   : > { %s3796_s22 = sshll.u32 %s4006_s26, 4  ;;  %s3797_s22 = int_to_ptr.vmem [resolvable:$false] %s3796_s22 }
 0x900   : > { %p3794_p12 = pnand %p3793_p5, %p5609_p6  ;;  %s3798_s17 = scalar_lea.vmem %s3797_s22, 512 }
 0x901   : > { %s2600_s9 = sshll.u32 %s5605_s13, 8  ;;  %s5608_s12 = smov %s5607_s25 }
 0x902   : > { %s5307_s11 = scalar_lea.hbm %s5607_s25, %s2600_s9  ;;  %p3795_p9 = pneg %p3794_p12 }
 0x903   : > { %p3799_p8 = scmp.lt.s32.totalorder %s5310_s19, %s3797_s22  ;;  %p3800_p2 = scmp.lt.s32.totalorder %s3798_s17, %s3792_s1 }
 0x905   : > { %p3801_p4 = por %p3800_p2, %p3799_p8 }
 0x907   : > { %p3802_p0 = pnand %p3801_p4, %p3795_p9 }
 0x909   : > { %3805 = shalt.err (!%p3802_p0)
}
 0x90a   : > { %s3806_s5 = scalar_lea.hbm %s5307_s11, 256  ;;  %s3810_s7 = scalar_lea.hbm %s5608_s12, 512 }
 0x90b   : > { %p3807_p3 = scmp.ne.s32.totalorder %s5307_s11, %s3806_s5  ;;  %p3811_p11 = scmp.lt.u32.totalorder %s5307_s11, %s5608_s12 }
 0x90c   : > { %p3812_p7 = scmp.lt.u32.totalorder %s3810_s7, %s3806_s5  ;;  %p3814_p5 = scmp.lt.u32.totalorder %s3806_s5, %s5307_s11 }
 0x90d   : > { %p3808_p1 = pnand %p3807_p3, %p5609_p6 }
 0x90e   : > { %p3813_p10 = por %p3812_p7, %p3811_p11 }
 0x90f   : > { %p3809_p13 = pneg %p3808_p1 }
 0x910   : > { %p3815_p12 = por %p3814_p5, %p3813_p10 }
 0x912   : > { %p3816_p9 = pnand %p3815_p12, %p3809_p13 }
 0x914   : > { %3819 = shalt.err (!%p3816_p9)
}
 0x915   : > { %s4007_s18 = smov 128   ;;  %s4008_s28 = smov 8  }
 0x916   : > { %3077 = dma.vmem_to_hbm [thread:$0]  (%p5609_p6), %s5310_s19, 256, %s5307_s11, %s5314_s0, %s4007_s18, %s4007_s18, %s4008_s28  }
 0x917 PF: > { %s5610_s13 = sld [smem:[#allocation35_spill]]  ;;  %p3143_p8 = scmp.ge.s32.totalorder %s3970_s21, 2 }
 0x918   : > { %p5611_p2 = scmp.ne.s32.totalorder %s5516_s16, 0 }
 0x91a   : > { %p3121_p4 = pnand %p3143_p8, %p5611_p2 }
 0x91d   : > { %s2239_s14 = sand.u32 1, %s5610_s13  }
 0x91e   : > { %s2240_s9 = scalar_lea.sflag [#allocation5], %s2239_s14 }
 0x91f   : > { %3913 = dma.done.wait (!%p3121_p4), %s2240_s9, 256  }
 0x920   : > { %3915 = vsyncadd (!%p3121_p4), %s2240_s9, 4294967040  ;;  %s39_s21 = sadd.s32 1, %s3970_s21   ;;  %s5613_s25 = sld [smem:[#allocation36_spill]] }
 0x921   : > { %p5343_p0 = scmp.ge.s32.totalorder %s39_s21, 6   ;;  %s5614_s26 = sld [smem:[#allocation37_spill]] }
 0x922   : > { %s5615_s14 = sld [smem:[#allocation39_spill]]  ;;  %s5616_s2 = sld [smem:[#allocation40_spill]] }
 0x923   : > { %s5617_s17 = sld [smem:[#allocation43_spill]]  ;;  %s5618_s18 = sld [smem:[#allocation44_spill]] }
 0x924   : > { %s5619_s19 = sld [smem:[#allocation46_spill]]  ;;  %s5620_s20 = sld [smem:[#allocation47_spill]] }
 0x925   : > { %s5622_s28 = smov %s3934_s29  ;;  %s5623_s29 = smov %s3938_s30 }
 0x926   : > { %s5624_s30 = smov %s4304_s4  ;;  %s5626_s16 = smov %s4467_s24 }
 0x927   :  { %38 = sbr.rel (!%p5343_p0) target bundleno = 33 (0x21), region = 198 }
 0x928   : > { %s5625_s15 = smov %s5616_s2 }
 0x92e   :  { %2245 = vsyncpa [#allocation4], 1 }
 0x92f   :  { %2247 = vsyncpa [#allocation4 + $0x1], 1 }
 0x930   :  { %2248 = vsyncpa [#allocation7], 1 }
 0x931   :  { %2250 = vsyncpa [#allocation7 + $0x1], 1 }
 0x932   :  { %2251 = vsyncpa [#allocation10], 1 }
 0x933   :  { %2253 = vsyncpa [#allocation10 + $0x1], 1 }
 0x934   :  { %2254 = vsyncpa [#allocation13], 1 }
 0x935   :  { %2255 = vsyncpa [#allocation16], 1 }
 0x936   :  { %2256 = vsyncpa [#allocation19], 1 }
 0x937   :  { %2257 = vsyncpa [#allocation22], 1 }
 0x938   :  { %2258 = vsyncpa [#allocation5], 1 }
 0x939   :  { %2260 = vsyncpa [#allocation5 + $0x1], 1 }

// kernel: ntsntm_forward.5
= control target key start
LH: loop header
LB: loop body
LE: loop exit
PB: predicated region body
PF: predicated region fallthrough
CT: control target
= control target key end

     0   :  { %8 = vsyncpa [#allocation3], 0  ;;  %s1832_s0 = inlined_call_operand.hbm [shape: bf16[25,64], index: 0, kind: input, shape index: {}]   ;;  %s1833_s1 = inlined_call_operand.hbm [shape: bf16[64,2048], index: 1, kind: input, shape index: {}]   ;;  %s1834_s2 = inlined_call_operand.hbm [shape: f32[25,1], index: 2, kind: input, shape index: {}]   ;;  %s1835_s3 = inlined_call_operand.hbm [shape: f32[25,2048], index: 3, kind: output, shape index: {}]  }
   0x1   :  { %9 = vsyncpa [#allocation6], 0 }
   0x2   :  { %11 = vsyncpa [#allocation6 + $0x1], 0 }
   0x3   :  { %12 = vsyncpa [#allocation4], 0 }
   0x4   :  { %14 = vsyncpa [#allocation4 + $0x1], 0  ;;  %s1371_s12 = smov 0   ;;  %s1373_s13 = smov 0  }
   0x5   :  { %s1375_s14 = smov 0   ;;  %s1377_s15 = smov 0  }
   0x6 LB: > { %s1392_s16 = sadd.s32 4294967295, %s1334_s15   ;;  %s965_s17 = sadd.s32 4294967294, %s1334_s15   ;;  %s1334_s15 = sphi %s1377_s15, %s1863_s15   ;;  %s1330_s14 = sphi %s1375_s14, %s1862_s14   ;;  %s1326_s13 = sphi %s1373_s13, %s1861_s13   ;;  %s1322_s12 = sphi %s1371_s12, %s1860_s12  }
   0x7   : > { %s1396_s18 = sadd.s32 1, %s1334_s15   ;;  %s48_s19 = sadd.s32 1, %s1330_s14 }
   0x8   : > { %s45_s20 = ssub.s32 %s1334_s15, %s1396_s18  ;;  %p55_p0 = scmp.ne.s32.totalorder %s1330_s14, %s1326_s13 }
   0x9   : > { %p46_p1 = scmp.eq.s32.totalorder %s45_s20, 0  ;;  %p56_p2 = scmp.eq.s32.totalorder %s1334_s15, 0 }
   0xa   : > { %p61_p3 = scmp.ne.s32.totalorder %s1326_s13, %s1322_s12  ;;  %p1836_p4 = scmp.eq.s32.totalorder %s1392_s16, 0 }
   0xb   : > { %s1408_s21 = scalar_select %p46_p1, %s1330_s14, %s48_s19  }
   0xc   : > { %p1410_p5 = por %p56_p2, %p55_p0  ;;  %p1416_p6 = por %p1836_p4, %p61_p3 }
   0xd   : > { %p106_p7 = scmp.eq.s32.totalorder %s1392_s16, 1  ;;  %p112_p8 = scmp.eq.s32.totalorder %s965_s17, 1 }
   0xe   : > { %s1841_s22 = scalar_select %p1410_p5, 1, 0 }
   0xf   : > { %s1842_s23 = scalar_select %p1416_p6, 1, 0 }
  0x10   : > { %p966_p9 = scmp.ge.s32.totalorder %s1334_s15, 1  ;;  %p119_p10 = scmp.lt.s32.totalorder %s1334_s15, 3 }
  0x11   : > { %p1423_p11 = por %p106_p7, %p55_p0  ;;  %p1427_p12 = por %p112_p8, %p61_p3 }
  0x12   : > { %p1431_p13 = pnand %p966_p9, %p119_p10  ;;  %s1336_s27 = smov [#allocation7]  }
  0x13   : > { %s1843_s24 = scalar_select %p1423_p11, 1, 0 }
  0x14   : > { %s1844_s25 = scalar_select %p1427_p12, 1, 0 }
  0x15   : > { %s1845_s26 = scalar_select %p1431_p13, 1, 0 }
  0x16   : > { %p1040_p1 = pneg %p1431_p13  ;;  %s144_s28 = sshll.u32 %s1336_s27, 4  ;;  %s145_s28 = int_to_ptr.vmem [resolvable:$true] %s144_s28 }
  0x17   : > { %s1337_s30 = smov [#allocation2]   ;;  %s1174_s7 = scalar_lea.hbm %s1834_s2, 512 }
  0x18   : > { %p1439_p2 = pnand %p1040_p1, %p1836_p4  ;;  %s131_s4 = sshll.u32 %s1337_s30, 4  ;;  %s132_s4 = int_to_ptr.vmem [resolvable:$true] %s131_s4 }
  0x19   : > { %p1175_p7 = scmp.ne.s32.totalorder %s1834_s2, %s1174_s7  ;;  %p1181_p1 = scmp.lt.u32.totalorder %s1174_s7, %s1834_s2 }
  0x1a   : > { %p1176_p8 = pneg %p1439_p2 }
  0x1c   : > { %p1177_p9 = pnand %p1176_p8, %p1175_p7 }
  0x1e   : > { %p1178_p10 = pneg %p1177_p9 }
  0x20   : > { %p1183_p0 = pnand %p1181_p1, %p1178_p10 }
  0x22   : > { %1186 = shalt.err (!%p1183_p0)
}
  0x23   : > { %s1187_s17 = scalar_lea.vmem %s145_s28, 512  ;;  %p1195_p11 = scmp.lt.s32.totalorder %s145_s28, %s145_s28 }
  0x24   : > { %p1188_p4 = scmp.ne.s32.totalorder %s145_s28, %s1187_s17  ;;  %p1196_p6 = scmp.lt.s32.totalorder %s1187_s17, %s1187_s17 }
  0x26   : > { %p1190_p3 = pnand %p1188_p4, %p1176_p8  ;;  %p1197_p13 = por %p1196_p6, %p1195_p11 }
  0x28   : > { %p1191_p12 = pneg %p1190_p3 }
  0x2a   : > { %p1198_p5 = pnand %p1197_p13, %p1191_p12 }
  0x2c   : > { %1201 = shalt.err (!%p1198_p5)
}
  0x2d   : > { %s1338_s19 = smov 128   ;;  %s1339_s20 = smov 8  }
  0x2e   : > { %1046 = dma.hbm_to_vmem [thread:$0]  (!%p1439_p2), %s1834_s2, 512, %s145_s28, [#allocation6], %s1338_s19, %s1338_s19, %s1339_s20  }
  0x2f   : > { %p1847_p0 = scmp.ne.s32.totalorder %s1841_s22, 0  ;;  %p1848_p4 = scmp.lt.s32.totalorder %s1334_s15, 2 }
  0x30   : > { %s158_s6 = sand.u32 1, %s1334_s15   ;;  %s1202_s9 = scalar_lea.hbm %s1832_s0, 256 }
  0x31   : > { %p1471_p3 = pnand %p1848_p4, %p1847_p0  ;;  %p1203_p5 = scmp.ne.s32.totalorder %s1832_s0, %s1202_s9 }
  0x32   : > { %p1209_p12 = scmp.lt.u32.totalorder %s1202_s9, %s1832_s0 }
  0x33   : > { %s1849_s5 = scalar_select %p1471_p3, 1, 0 }
  0x34   : > { %p1205_p6 = pnand %p1203_p5, %p1176_p8 }
  0x36   : > { %p1206_p11 = pneg %p1205_p6 }
  0x38   : > { %p1211_p13 = pnand %p1209_p12, %p1206_p11 }
  0x3a   : > { %1214 = shalt.err (!%p1211_p13)
}
  0x3b   : > { %s1215_s17 = scalar_lea.vmem %s132_s4, 256  ;;  %p1223_p1 = scmp.lt.s32.totalorder %s132_s4, %s132_s4 }
  0x3c   : > { %p1216_p7 = scmp.ne.s32.totalorder %s132_s4, %s1215_s17  ;;  %p1224_p0 = scmp.lt.s32.totalorder %s1215_s17, %s1215_s17 }
  0x3e   : > { %p1218_p9 = pnand %p1216_p7, %p1176_p8  ;;  %p1225_p4 = por %p1224_p0, %p1223_p1 }
  0x40   : > { %p1219_p10 = pneg %p1218_p9 }
  0x42   : > { %p1226_p3 = pnand %p1225_p4, %p1219_p10 }
  0x44   : > { %1229 = shalt.err (!%p1226_p3)
}
  0x45   : > { %s1340_s19 = smov 64   ;;  %s1341_s20 = smov 4  }
  0x46   : > { %1043 = dma.hbm_to_vmem [thread:$0]  (!%p1439_p2), %s1832_s0, 256, %s132_s4, [#allocation3], %s1340_s19, %s1340_s19, %s1341_s20  }
  0x47   : > { %s160_s7 = sand.u32 1, %s1330_s14   ;;  %s1026_s9 = sshll.u32 %s1334_s15, 9 }
  0x48   : > { %s970_s8 = sshll.u32 %s160_s7, 8  ;;  %s1501_s22 = scalar_lea.hbm %s1833_s1, %s1026_s9 }
  0x49   : > { %s162_s28 = scalar_lea.vmem [#allocation5], %s970_s8  ;;  %s1505_s29 = scalar_lea.sflag [#allocation6], %s158_s6 }
  0x4a   : > { %s169_s17 = sshll.u32 %s162_s28, 4  ;;  %s1230_s27 = scalar_lea.hbm %s1501_s22, 4096  ;;  %s1503_s17 = int_to_ptr.vmem [resolvable:$true] %s169_s17 }
  0x4b   : > { %p1231_p2 = scmp.ne.s32.totalorder %s1501_s22, %s1230_s27  ;;  %p1850_p8 = scmp.ne.s32.totalorder %s1849_s5, 0 }
  0x4c   : > { %s1235_s20 = scalar_lea.hbm %s1833_s1, 8192  ;;  %p1236_p11 = scmp.lt.u32.totalorder %s1501_s22, %s1833_s1 }
  0x4d   : > { %p1232_p3 = pneg %p1850_p8  ;;  %p1237_p12 = scmp.lt.u32.totalorder %s1235_s20, %s1230_s27 }
  0x4e   : > { %p1239_p7 = scmp.lt.u32.totalorder %s1230_s27, %s1501_s22 }
  0x4f   : > { %p1233_p5 = pnand %p1232_p3, %p1231_p2  ;;  %p1238_p13 = por %p1237_p12, %p1236_p11 }
  0x51   : > { %p1234_p6 = pneg %p1233_p5  ;;  %p1240_p9 = por %p1239_p7, %p1238_p13 }
  0x53   : > { %p1241_p10 = pnand %p1240_p9, %p1234_p6 }
  0x55   : > { %1244 = shalt.err (!%p1241_p10)
}
  0x56   : > { %s1245_s6 = scalar_lea.vmem %s1503_s17, 4096  ;;  %s1342_s8 = smov [#allocation5]  }
  0x57   : > { %p1246_p1 = scmp.ne.s32.totalorder %s1503_s17, %s1245_s6  ;;  %s1250_s9 = sshll.u32 %s1342_s8, 4  ;;  %s1251_s9 = int_to_ptr.vmem [resolvable:$false] %s1250_s9 }
  0x58   : > { %s1252_s10 = scalar_lea.vmem %s1251_s9, 8192  ;;  %p1253_p2 = scmp.lt.s32.totalorder %s1503_s17, %s1251_s9 }
  0x59   : > { %p1248_p0 = pnand %p1246_p1, %p1232_p3  ;;  %p1254_p5 = scmp.lt.s32.totalorder %s1252_s10, %s1245_s6 }
  0x5b   : > { %p1249_p4 = pneg %p1248_p0  ;;  %p1255_p11 = por %p1254_p5, %p1253_p2 }
  0x5d   : > { %p1256_p12 = pnand %p1255_p11, %p1249_p4 }
  0x5f   : > { %1259 = shalt.err (!%p1256_p12)
}
  0x60   : > { %s1343_s11 = smov 1024   ;;  %s1344_s28 = smov 512  }
  0x61   : > { %s1345_s27 = smov 32   ;;  %p1851_p3 = scmp.ne.s32.totalorder %s1845_s26, 0 }
  0x62   : > { %1050 = dma.hbm_to_vmem [thread:$0]  (!%p1850_p8), %s1501_s22, 4096, %s1503_s17, %s1505_s29, %s1343_s11, %s1344_s28, %s1345_s27  }
  0x63   : > { %181 = sbr.rel (%p1851_p3) target bundleno = 412 (0x19c), region = 32  ;;  %p1852_p6 = scmp.eq.s32.totalorder (!%p1851_p3), %s1392_s16, 0 }
  0x6a   : > { %1305 = dma.done.wait (%p1852_p6), [#allocation3], 256   ;;  %p1853_p13 = pmov %p1852_p6 }
  0x6b   : > { %s187_s4 = sand.u32 1, %s1392_s16   ;;  %s189_s19 = sand.u32 1, %s1326_s13  }
  0x6c   : > { %1307 = vsyncadd (%p1853_p13), [#allocation3], 4294967040  ;;  %s1543_s20 = sshll.u32 %s189_s19, 8  ;;  %s188_s5 = scalar_lea.sflag [#allocation6], %s187_s4 }
  0x6d   : > { %s1546_s22 = scalar_lea.vmem [#allocation5], %s1543_s20  ;;  %p1854_p8 = scmp.ne.s32.totalorder %s1842_s23, 0 }
  0x6f   : > { %1309 = dma.done.wait (%p1854_p8), %s188_s5, 4096  }
  0x70   : > { %1311 = vsyncadd (%p1854_p8), %s188_s5, 4294963200  ;;  %p1855_p7 = pmov %p1852_p6 }
  0x71   : > { %p1856_p9 = pmov %p1852_p6 }
  0x72   : > { %1313 = dma.done.wait (%p1855_p7), [#allocation6], 512  }
  0x73   : > { %1315 = vsyncadd (%p1856_p9), [#allocation6], 4294966784  ;;  %v1346_v0 = vmov 0   ;;  %v225_v1 = vld [vmem:[%s1546_s22] sm:$0xff]  ;;  %v226_v3 = vld [vmem:[%s1546_s22 + $0x8] sm:$0xff]  ;;  %vm427_vm0 = vcmask 523264  }
  0x74   : > { %466 = vmatprep.mubr.bf16.mxu0 %v1346_v0  ;;  %519 = vmatprep.mubr.bf16.mxu1 %v1346_v0  ;;  %v229_v2 = vld [vmem:[%s1546_s22 + $0x20] sm:$0xff]  ;;  %v230_v5 = vld [vmem:[%s1546_s22 + $0x28] sm:$0xff]  ;;  %v227_v31 = vld [vmem:[%s1546_s22 + $0x10] sm:$0xff]  ;;  %s1020_s23 = sshll.u32 %s1392_s16, 10  ;;  %s1696_s26 = scalar_lea.vmem [#allocation8], %s1543_s20 }
  0x75   : > { %1106 = vset.pattern.permute.xlu0 %v1346_v0  ;;  %1107 = vset.pattern.permute.xlu1 %v1346_v0  ;;  %v981_v4 = vcombine.high %v225_v1, %v229_v2  ;;  %v980_v6 = vcombine.low %v225_v1, %v229_v2  ;;  %v233_v7 = vld [vmem:[%s1546_s22 + $0x40] sm:$0xff]  ;;  %v983_v9 = vcombine.high %v226_v3, %v230_v5  ;;  %v234_v12 = vld [vmem:[%s1546_s22 + $0x48] sm:$0xff]  ;;  %v231_v32 = vld [vmem:[%s1546_s22 + $0x30] sm:$0xff]  ;;  %s871_s17 = sshll.u32 %s1696_s26, 4  ;;  %s1779_s7 = scalar_lea.hbm %s1835_s3, %s1020_s23  ;;  %s1783_s17 = int_to_ptr.vmem [resolvable:$true] %s871_s17 }
  0x76   : > { %v237_v8 = vld [vmem:[%s1546_s22 + $0x60] sm:$0xff]  ;;  %v982_v10 = vcombine.low %v226_v3, %v230_v5  ;;  %v238_v13 = vld [vmem:[%s1546_s22 + $0x68] sm:$0xff]  ;;  %v228_v33 = vld [vmem:[%s1546_s22 + $0x18] sm:$0xff]  ;;  %v985_v38 = vcombine.high %v227_v31, %v231_v32  ;;  %v984_v47 = vcombine.low %v227_v31, %v231_v32  ;;  %s1790_s16 = scalar_lea.sflag [#allocation4], %s189_s19  ;;  %s1260_s6 = scalar_lea.vmem %s1783_s17, 4096 }
  0x77   : > { %v989_v11 = vcombine.high %v233_v7, %v237_v8  ;;  %v241_v14 = vld [vmem:[%s1546_s22 + $0x80] sm:$0xff]  ;;  %434 = vmatprep.subr.bf16.mxu0 %v981_v4  ;;  %v991_v15 = vcombine.high %v234_v12, %v238_v13  ;;  %v242_v17 = vld [vmem:[%s1546_s22 + $0x88] sm:$0xff]  ;;  %487 = vmatprep.subr.bf16.mxu1 %v983_v9  ;;  %v988_v19 = vcombine.low %v233_v7, %v237_v8  ;;  %v232_v34 = vld [vmem:[%s1546_s22 + $0x38] sm:$0xff]  ;;  %v647_v8 = vlaneseq  ;;  %p1261_p10 = scmp.ne.s32.totalorder %s1783_s17, %s1260_s6  ;;  %p1857_p1 = scmp.ne.s32.totalorder %s1843_s24, 0 }
  0x78   : > { %v245_v16 = vld [vmem:[%s1546_s22 + $0xa0] sm:$0xff]  ;;  %v246_v18 = vld [vmem:[%s1546_s22 + $0xa8] sm:$0xff]  ;;  %435 = vmatpush1.bf16.msra.mxu0 %v980_v6  ;;  %488 = vmatpush1.bf16.msra.mxu1 %v982_v10  ;;  %v990_v20 = vcombine.low %v234_v12, %v238_v13  ;;  %v707_v39 = vld [vmem:[#allocation7 + $0x10] sm:$0xff]  ;;  %v987_v41 = vcombine.high %v228_v33, %v232_v34  ;;  %v986_v49 = vcombine.low %v228_v33, %v232_v34  ;;  %v656_v10 = vstv %s1020_s23  ;;  %s1347_s8 = smov [#allocation8]  }
  0x79   : > { %436 = vmatprep.subr.bf16.mxu0 %v989_v11  ;;  %v997_v21 = vcombine.high %v241_v14, %v245_v16  ;;  %489 = vmatprep.subr.bf16.mxu1 %v991_v15  ;;  %v999_v22 = vcombine.high %v242_v17, %v246_v18  ;;  %v249_v23 = vld [vmem:[%s1546_s22 + $0xc0] sm:$0xff]  ;;  %v250_v25 = vld [vmem:[%s1546_s22 + $0xc8] sm:$0xff]  ;;  %v996_v27 = vcombine.low %v241_v14, %v245_v16  ;;  %v1580_v40 = vld [vmem:[#allocation2] sm:$0xff]   ;;  %v648_v9 = vand.u32 127, %v647_v8  ;;  %p1262_p0 = pnand %p1261_p10, %p1857_p1  ;;  %s1264_s9 = sshll.u32 %s1347_s8, 4  ;;  %s1265_s9 = int_to_ptr.vmem [resolvable:$false] %s1264_s9 }
  0x7a   : > { %v253_v24 = vld [vmem:[%s1546_s22 + $0xe0] sm:$0xff]  ;;  %v254_v26 = vld [vmem:[%s1546_s22 + $0xe8] sm:$0xff]  ;;  %v998_v28 = vcombine.low %v242_v17, %v246_v18  ;;  %v235_v42 = vld [vmem:[%s1546_s22 + $0x50] sm:$0xff]  ;;  %721 = vperm.xlu1 %1107, %v707_v39   ;;  %s1266_s10 = scalar_lea.vmem %s1265_s9, 8192  ;;  %p1267_p2 = scmp.lt.s32.totalorder %s1783_s17, %s1265_s9 }
  0x7b   : > { %v1005_v29 = vcombine.high %v249_v23, %v253_v24  ;;  %v1007_v30 = vcombine.high %v250_v25, %v254_v26  ;;  %v1004_v35 = vcombine.low %v249_v23, %v253_v24  ;;  %v705_v36 = vld [vmem:[#allocation7] sm:$0xff]  ;;  %v1006_v37 = vcombine.low %v250_v25, %v254_v26  ;;  %v239_v43 = vld [vmem:[%s1546_s22 + $0x70] sm:$0xff]  ;;  %v236_v44 = vld [vmem:[%s1546_s22 + $0x58] sm:$0xff]  ;;  %p1263_p4 = pneg %p1262_p0  ;;  %p1268_p5 = scmp.lt.s32.totalorder %s1266_s10, %s1260_s6 }
  0x7c   : > { %437 = vmatpush1.bf16.msra.mxu0 %v988_v19  ;;  %490 = vmatpush1.bf16.msra.mxu1 %v990_v20  ;;  %v240_v45 = vld [vmem:[%s1546_s22 + $0x78] sm:$0xff]  ;;  %v706_v46 = vld [vmem:[#allocation7 + $0x8] sm:$0xff]  ;;  %v993_v50 = vcombine.high %v235_v42, %v239_v43  ;;  %v243_v52 = vld [vmem:[%s1546_s22 + $0x90] sm:$0xff]  ;;  %v992_v56 = vcombine.low %v235_v42, %v239_v43  ;;  %v650_v11 = vadd.s32 256, %v648_v9  ;;  %v649_v12 = vadd.s32 128, %v648_v9 }
  0x7d   : > { %438 = vmatprep.subr.bf16.mxu0 %v997_v21  ;;  %491 = vmatprep.subr.bf16.mxu1 %v999_v22  ;;  %v708_v48 = vld [vmem:[#allocation7 + $0x18] sm:$0x1]  ;;  %v995_v51 = vcombine.high %v236_v44, %v240_v45  ;;  %v247_v53 = vld [vmem:[%s1546_s22 + $0xb0] sm:$0xff]  ;;  %v994_v57 = vcombine.low %v236_v44, %v240_v45  ;;  %v651_v13 = vadd.s32 384, %v648_v9  ;;  %v1617_v15 = vadd.s32 %v656_v10, %v648_v9  ;;  %p1269_p11 = por %p1268_p5, %p1267_p2 }
  0x7e   : > { %711 = vperm.xlu0 %1106, %v705_v36   ;;  %v244_v54 = vld [vmem:[%s1546_s22 + $0x98] sm:$0xff]  ;;  %726 = vperm.xlu1 %1107, %v708_v48   ;;  %v1001_v58 = vcombine.high %v243_v52, %v247_v53  ;;  %v251_v60 = vld [vmem:[%s1546_s22 + $0xd0] sm:$0xff]  ;;  %v1000_v2 = vcombine.low %v243_v52, %v247_v53  ;;  %v1619_v16 = vadd.s32 %v656_v10, %v650_v11  ;;  %v652_v18 = vadd.s32 512, %v648_v9 }
  0x7f   : > { %v248_v55 = vld [vmem:[%s1546_s22 + $0xb8] sm:$0xff]  ;;  %v255_v61 = vld [vmem:[%s1546_s22 + $0xf0] sm:$0xff]  ;;  %v1621_v17 = vadd.s32 %v656_v10, %v649_v12  ;;  %v654_v19 = vadd.s32 768, %v648_v9  ;;  %v653_v20 = vadd.s32 640, %v648_v9  ;;  %vm665_vm1 = vcmp.lt.s32.totalorder %v1617_v15, 2048  ;;  %p1270_p12 = pnand %p1269_p11, %p1263_p4 }
  0x80   : > { %439 = vmatpush1.bf16.msra.mxu0 %v996_v27  ;;  %492 = vmatpush1.bf16.msra.mxu1 %v998_v28  ;;  %v1003_v59 = vcombine.high %v244_v54, %v248_v55  ;;  %v1109_v62 = vld [vmem:[#allocation2 + $0x8] sm:$0x1f]   ;;  %v1002_v3 = vcombine.low %v244_v54, %v248_v55  ;;  %v1009_v4 = vcombine.high %v251_v60, %v255_v61  ;;  %v655_v21 = vadd.s32 896, %v648_v9 }
  0x81   : > { %440 = vmatprep.subr.bf16.mxu0 %v1005_v29  ;;  %493 = vmatprep.subr.bf16.mxu1 %v1007_v30  ;;  %v252_v63 = vld [vmem:[%s1546_s22 + $0xd8] sm:$0xff]  ;;  %v1008_v6 = vcombine.low %v251_v60, %v255_v61  ;;  %vm667_vm2 = vcmp.lt.s32.totalorder %v1619_v16, 2048  ;;  %vm666_vm3 = vcmp.lt.s32.totalorder %v1621_v17, 2048  ;;  %v1635_v28 = vadd.s32 %v656_v10, %v652_v18 }
  0x82   : > { %716 = vperm.xlu0 %1106, %v706_v46   ;;  %v256_v1 = vld [vmem:[%s1546_s22 + $0xf8] sm:$0xff]  ;;  %v1637_v29 = vadd.s32 %v656_v10, %v654_v19  ;;  %v1639_v30 = vadd.s32 %v656_v10, %v653_v20  ;;  %v1646_v36 = vadd.s32 %v656_v10, %v655_v21 }
  0x83   : > { %v1011_v5 = vcombine.high %v252_v63, %v256_v1  ;;  %v1010_v7 = vcombine.low %v252_v63, %v256_v1  ;;  %vm669_vm5 = vcmp.lt.s32.totalorder %v1635_v28, 2048 }
  0x84   : > { %441 = vmatpush1.bf16.msra.mxu0 %v1004_v35  ;;  %494 = vmatpush1.bf16.msra.mxu1 %v1006_v37  ;;  %vm671_vm6 = vcmp.lt.s32.totalorder %v1637_v29, 2048  ;;  %vm670_vm7 = vcmp.lt.s32.totalorder %v1639_v30, 2048  ;;  %vm672_vm8 = vcmp.lt.s32.totalorder %v1646_v36, 2048 }
  0x85   : > { %540 = vmatprep.subr.bf16.mxu0 %v985_v38  ;;  %593 = vmatprep.subr.bf16.mxu1 %v987_v41 }
  0x87   : > { %1012 = vmatmul.mubr.msk.bf16.vlgmr.msra.gmra.mrb[0].mxu0 %vm427_vm0, %v1580_v40  ;;  %1014 = vmatmul.mubr.msk.bf16.vlgmr.msra.gmra.mrb[0].mxu1 %vm427_vm0, %v1580_v40 }
  0x88   : > { %541 = vmatpush1.bf16.msra.mxu0 %v984_v47  ;;  %594 = vmatpush1.bf16.msra.mxu1 %v986_v49 }
  0x89   : > { %542 = vmatprep.subr.bf16.mxu0 %v993_v50  ;;  %595 = vmatprep.subr.bf16.mxu1 %v995_v51 }
  0x8a   : > { %476 = vmatprep.mubr.bf16.mxu0 %v1346_v0  ;;  %529 = vmatprep.mubr.bf16.mxu1 %v1346_v0 }
  0x8c   : > { %543 = vmatpush1.bf16.msra.mxu0 %v992_v56  ;;  %596 = vmatpush1.bf16.msra.mxu1 %v994_v57 }
  0x8d   : > { %544 = vmatprep.subr.bf16.mxu0 %v1001_v58  ;;  %597 = vmatprep.subr.bf16.mxu1 %v1003_v59 }
  0x8f   : > { %1013 = vmatmul.mubr.msk.bf16.gmra.mrb[4].mxu0 %vm427_vm0, %v1109_v62  ;;  %1015 = vmatmul.mubr.msk.bf16.gmra.mrb[4].mxu1 %vm427_vm0, %v1109_v62 }
  0x90   : > { %545 = vmatpush1.bf16.msra.mxu0 %v1000_v2  ;;  %598 = vmatpush1.bf16.msra.mxu1 %v1002_v3 }
  0x91   : > { %546 = vmatprep.subr.bf16.mxu0 %v1009_v4  ;;  %599 = vmatprep.subr.bf16.mxu1 %v1011_v5 }
  0x92   : > { %572 = vmatprep.mubr.bf16.mxu0 %v1346_v0  ;;  %625 = vmatprep.mubr.bf16.mxu1 %v1346_v0 }
  0x94   : > { %547 = vmatpush1.bf16.msra.mxu0 %v1008_v6  ;;  %600 = vmatpush1.bf16.msra.mxu1 %v1010_v7 }
  0x97   : > { %1016 = vmatmul.mubr.msk.bf16.vlgmr.msra.gmra.mrb[8].mxu0 %vm427_vm0, %v1580_v40  ;;  %1018 = vmatmul.mubr.msk.bf16.vlgmr.msra.gmra.mrb[8].mxu1 %vm427_vm0, %v1580_v40 }
  0x98   : > { %582 = vmatprep.mubr.bf16.mxu0 %v1346_v0  ;;  %635 = vmatprep.mubr.bf16.mxu1 %v1346_v0  ;;  %v1623_v0 = vadd.s32 %v656_v10, %v651_v13 }
  0x9a   : > { %vm668_vm4 = vcmp.lt.s32.totalorder %v1623_v0, 2048 }
  0x9f   : > { %1017 = vmatmul.mubr.msk.bf16.gmra.mrb[12].mxu0 %vm427_vm0, %v1109_v62  ;;  %1019 = vmatmul.mubr.msk.bf16.gmra.mrb[12].mxu1 %vm427_vm0, %v1109_v62 }
  0xf9   : > { %v1628_v22 = vpop.permute.xlu1 %721 }
  0xfd   : > { %v1615_v14 = vpop.permute.xlu0 %711  ;;  %v1666_v60 = vpop.permute.xlu1 %726 }
 0x101   : > { %v1631_v24 = vpop.permute.xlu0 %716 }
 0x15a   : > { %v468_v23 = vpop.f32.mrb[0].mxu0  ;;  %v521_v26 = vpop.f32.mrb[0].mxu1 }
 0x15b   : > { %v673_v25 = vsel %vm665_vm1, %v468_v23, -inf  ;;  %v470_v27 = vpop.f32.mrb[1].mxu0  ;;  %v675_v32 = vsel %vm667_vm2, %v521_v26, -inf  ;;  %v523_v34 = vpop.f32.mrb[1].mxu1 }
 0x15c   : > { %v729_v31 = vsub.f32 %v673_v25, %v1615_v14  ;;  %v674_v33 = vsel %vm666_vm3, %v470_v27, -inf  ;;  %v472_v35 = vpop.f32.mrb[2].mxu0  ;;  %v731_v37 = vsub.f32 %v675_v32, %v1615_v14  ;;  %v676_v39 = vsel %vm668_vm4, %v523_v34, -inf  ;;  %v525_v41 = vpop.f32.mrb[2].mxu1 }
 0x15d   : > { %v730_v38 = vsub.f32 %v674_v33, %v1615_v14  ;;  %v681_v40 = vsel %vm665_vm1, %v472_v35, -inf  ;;  %v474_v42 = vpop.f32.mrb[3].mxu0  ;;  %v732_v44 = vsub.f32 %v676_v39, %v1615_v14  ;;  %v683_v45 = vsel %vm667_vm2, %v525_v41, -inf  ;;  %v527_v47 = vpop.f32.mrb[3].mxu1 }
 0x15e   : > { %v761_v43 = vmul.f32 1.442695, %v729_v31  ;;  %v737_v46 = vsub.f32 %v681_v40, %v1631_v24  ;;  %v765_v48 = vmul.f32 1.442695, %v731_v37  ;;  %v739_v50 = vsub.f32 %v683_v45, %v1631_v24 }
 0x15f   : > { %v763_v49 = vmul.f32 1.442695, %v730_v38  ;;  %v682_v51 = vsel %vm666_vm3, %v474_v42, -inf  ;;  %v767_v52 = vmul.f32 1.442695, %v732_v44  ;;  %v684_v56 = vsel %vm668_vm4, %v527_v47, -inf }
 0x160   : > { %1110 = vpow2.f32 %v761_v43  ;;  %v777_v53 = vmul.f32 1.442695, %v737_v46  ;;  %v738_v54 = vsub.f32 %v682_v51, %v1631_v24  ;;  %v781_v55 = vmul.f32 1.442695, %v739_v50 }
 0x161   : > { %1112 = vpow2.f32 %v765_v48  ;;  %v740_v58 = vsub.f32 %v684_v56, %v1631_v24 }
 0x162   : > { %1114 = vpow2.f32 %v763_v49  ;;  %v779_v57 = vmul.f32 1.442695, %v738_v54  ;;  %v478_v59 = vpop.f32.mrb[4].mxu0  ;;  %v531_v62 = vpop.f32.mrb[4].mxu1 }
 0x163   : > { %1116 = vpow2.f32 %v767_v52  ;;  %v689_v61 = vsel %vm665_vm1, %v478_v59, -inf  ;;  %v480_v63 = vpop.f32.mrb[5].mxu0  ;;  %v783_v1 = vmul.f32 1.442695, %v740_v58  ;;  %v691_v3 = vsel %vm667_vm2, %v531_v62, -inf  ;;  %v533_v4 = vpop.f32.mrb[5].mxu1 }
 0x164   : > { %1118 = vpow2.f32 %v777_v53  ;;  %v745_v2 = vsub.f32 %v689_v61, %v1628_v22  ;;  %v482_v5 = vpop.f32.mrb[6].mxu0  ;;  %v747_v6 = vsub.f32 %v691_v3, %v1628_v22  ;;  %v690_v7 = vsel %vm666_vm3, %v480_v63, -inf  ;;  %v535_v9 = vpop.f32.mrb[6].mxu1 }
 0x165   : > { %1120 = vpow2.f32 %v781_v55  ;;  %v692_v8 = vsel %vm668_vm4, %v533_v4, -inf  ;;  %v484_v10 = vpop.f32.mrb[7].mxu0  ;;  %v746_v12 = vsub.f32 %v690_v7, %v1628_v22  ;;  %v537_v18 = vpop.f32.mrb[7].mxu1  ;;  %v697_v20 = vsel %vm665_vm1, %v482_v5, -inf }
 0x166   : > { %1122 = vpow2.f32 %v779_v57  ;;  %v793_v11 = vmul.f32 1.442695, %v745_v2  ;;  %v748_v13 = vsub.f32 %v692_v8, %v1628_v22  ;;  %v797_v19 = vmul.f32 1.442695, %v747_v6 }
 0x167   : > { %1124 = vpow2.f32 %v783_v1  ;;  %v699_v21 = vsel %vm667_vm2, %v535_v9, -inf  ;;  %v795_v23 = vmul.f32 1.442695, %v746_v12  ;;  %v753_v26 = vsub.f32 %v697_v20, %v1666_v60 }
 0x168   : > { %1126 = vpow2.f32 %v793_v11  ;;  %v799_v25 = vmul.f32 1.442695, %v748_v13  ;;  %v755_v27 = vsub.f32 %v699_v21, %v1666_v60  ;;  %v698_v31 = vsel %vm666_vm3, %v484_v10, -inf }
 0x169   : > { %1128 = vpow2.f32 %v797_v19  ;;  %v700_v32 = vsel %vm668_vm4, %v537_v18, -inf  ;;  %v809_v33 = vmul.f32 1.442695, %v753_v26  ;;  %v754_v16 = vsub.f32 %v698_v31, %v1666_v60 }
 0x16a   : > { %v1111_v15 = vpop.eup %1110  ;;  %1130 = vpow2.f32 %v795_v23  ;;  %v756_v34 = vsub.f32 %v700_v32, %v1666_v60  ;;  %v574_v35 = vpop.f32.mrb[8].mxu0  ;;  %v813_v17 = vmul.f32 1.442695, %v755_v27 }
 0x16b   : > { %v1113_v37 = vpop.eup %1112  ;;  %825 = vst [vmem:[%s1696_s26] sm:$0xff] %v1111_v15  ;;  %1132 = vpow2.f32 %v799_v25  ;;  %v677_v0 = vsel %vm669_vm5, %v574_v35, -inf  ;;  %v627_v38 = vpop.f32.mrb[8].mxu1  ;;  %v811_v41 = vmul.f32 1.442695, %v754_v16 }
 0x16c   : > { %v576_v39 = vpop.f32.mrb[9].mxu0  ;;  %v1115_v40 = vpop.eup %1114  ;;  %827 = vst [vmem:[%s1696_s26 + $0x10] sm:$0xff] %v1113_v37  ;;  %1134 = vpow2.f32 %v809_v33  ;;  %v815_v42 = vmul.f32 1.442695, %v756_v34  ;;  %v733_v43 = vsub.f32 %v677_v0, %v1615_v14  ;;  %v679_v47 = vsel %vm671_vm6, %v627_v38, -inf }
 0x16d   : > { %v629_v44 = vpop.f32.mrb[9].mxu1  ;;  %v578_v45 = vpop.f32.mrb[10].mxu0  ;;  %826 = vst [vmem:[%s1696_s26 + $0x8] sm:$0xff] %v1115_v40  ;;  %1136 = vpow2.f32 %v813_v17  ;;  %v678_v48 = vsel %vm670_vm7, %v576_v39, -inf  ;;  %v735_v54 = vsub.f32 %v679_v47, %v1615_v14 }
 0x16e   : > { %v1117_v46 = vpop.eup %1116  ;;  %v680_v49 = vsel %vm672_vm8, %v629_v44, -inf  ;;  %v631_v50 = vpop.f32.mrb[10].mxu1  ;;  %1138 = vpow2.f32 %v811_v41  ;;  %v769_v53 = vmul.f32 1.442695, %v733_v43  ;;  %v734_v55 = vsub.f32 %v678_v48, %v1615_v14 }
 0x16f   : > { %v580_v51 = vpop.f32.mrb[11].mxu0  ;;  %v1119_v52 = vpop.eup %1118  ;;  %828 = vst [vmem:[%s1696_s26 + $0x18] sm:$0xff] %v1117_v46  ;;  %1140 = vpow2.f32 %v815_v42  ;;  %v736_v58 = vsub.f32 %v680_v49, %v1615_v14  ;;  %v685_v59 = vsel %vm669_vm5, %v578_v45, -inf  ;;  %v687_v61 = vsel %vm671_vm6, %v631_v50, -inf }
 0x170   : > { %v633_v56 = vpop.f32.mrb[11].mxu1  ;;  %v1121_v57 = vpop.eup %1120  ;;  %833 = vst [vmem:[%s1696_s26 + $0x40] sm:$0xff] %v1119_v52  ;;  %1142 = vpow2.f32 %v769_v53  ;;  %v773_v63 = vmul.f32 1.442695, %v735_v54  ;;  %v771_v1 = vmul.f32 1.442695, %v734_v55  ;;  %v741_v2 = vsub.f32 %v685_v59, %v1631_v24 }
 0x171   : > { %v1123_v62 = vpop.eup %1122  ;;  %835 = vst [vmem:[%s1696_s26 + $0x50] sm:$0xff] %v1121_v57  ;;  %v775_v4 = vmul.f32 1.442695, %v736_v58  ;;  %v743_v14 = vsub.f32 %v687_v61, %v1631_v24  ;;  %v686_v5 = vsel %vm670_vm7, %v580_v51, -inf  ;;  %v688_v6 = vsel %vm672_vm8, %v633_v56, -inf }
 0x172   : > { %v1125_v3 = vpop.eup %1124  ;;  %834 = vst [vmem:[%s1696_s26 + $0x48] sm:$0xff] %v1123_v62  ;;  %1144 = vpow2.f32 %v773_v63  ;;  %v785_v8 = vmul.f32 1.442695, %v741_v2  ;;  %v742_v9 = vsub.f32 %v686_v5, %v1631_v24  ;;  %v744_v10 = vsub.f32 %v688_v6, %v1631_v24  ;;  %v584_v11 = vpop.f32.mrb[12].mxu0 }
 0x173   : > { %v1127_v7 = vpop.eup %1126  ;;  %836 = vst [vmem:[%s1696_s26 + $0x58] sm:$0xff] %v1125_v3  ;;  %1146 = vpow2.f32 %v771_v1  ;;  %v789_v13 = vmul.f32 1.442695, %v743_v14  ;;  %v693_v18 = vsel %vm669_vm5, %v584_v11, -inf  ;;  %v637_v19 = vpop.f32.mrb[12].mxu1 }
 0x174   : > { %v1129_v12 = vpop.eup %1128  ;;  %841 = vst [vmem:[%s1696_s26 + $0x80] sm:$0xff] %v1127_v7  ;;  %v586_v20 = vpop.f32.mrb[13].mxu0  ;;  %1148 = vpow2.f32 %v775_v4  ;;  %v787_v23 = vmul.f32 1.442695, %v742_v9  ;;  %v791_v25 = vmul.f32 1.442695, %v744_v10  ;;  %v749_v26 = vsub.f32 %v693_v18, %v1628_v22 }
 0x175   : > { %v1131_v21 = vpop.eup %1130  ;;  %843 = vst [vmem:[%s1696_s26 + $0x90] sm:$0xff] %v1129_v12  ;;  %v639_v24 = vpop.f32.mrb[13].mxu1  ;;  %1150 = vpow2.f32 %v785_v8  ;;  %v695_v32 = vsel %vm671_vm6, %v637_v19, -inf  ;;  %v694_v15 = vsel %vm670_vm7, %v586_v20, -inf }
 0x176   : > { %v588_v27 = vpop.f32.mrb[14].mxu0  ;;  %v1133_v31 = vpop.eup %1132  ;;  %842 = vst [vmem:[%s1696_s26 + $0x88] sm:$0xff] %v1131_v21  ;;  %v696_v33 = vsel %vm672_vm8, %v639_v24, -inf  ;;  %1152 = vpow2.f32 %v789_v13  ;;  %v801_v37 = vmul.f32 1.442695, %v749_v26  ;;  %v751_v17 = vsub.f32 %v695_v32, %v1628_v22 }
 0x177   : > { %v641_v16 = vpop.f32.mrb[14].mxu1  ;;  %v590_v34 = vpop.f32.mrb[15].mxu0  ;;  %844 = vst [vmem:[%s1696_s26 + $0x98] sm:$0xff] %v1133_v31  ;;  %v750_v0 = vsub.f32 %v694_v15, %v1628_v22  ;;  %1154 = vpow2.f32 %v787_v23  ;;  %v752_v40 = vsub.f32 %v696_v33, %v1628_v22  ;;  %v701_v41 = vsel %vm669_vm5, %v588_v27, -inf }
 0x178   : > { %v1135_v35 = vpop.eup %1134  ;;  %v643_v38 = vpop.f32.mrb[15].mxu1  ;;  %v703_v42 = vsel %vm671_vm6, %v641_v16, -inf  ;;  %1156 = vpow2.f32 %v791_v25  ;;  %v805_v44 = vmul.f32 1.442695, %v751_v17  ;;  %v757_v46 = vsub.f32 %v701_v41, %v1666_v60 }
 0x179   : > { %v1137_v39 = vpop.eup %1136  ;;  %849 = vst [vmem:[%s1696_s26 + $0xc0] sm:$0x1] %v1135_v35  ;;  %v803_v45 = vmul.f32 1.442695, %v750_v0  ;;  %1158 = vpow2.f32 %v801_v37  ;;  %v807_v48 = vmul.f32 1.442695, %v752_v40  ;;  %v759_v22 = vsub.f32 %v703_v42, %v1666_v60 }
 0x17a   : > { %v1139_v43 = vpop.eup %1138  ;;  %851 = vst [vmem:[%s1696_s26 + $0xd0] sm:$0x1] %v1137_v39  ;;  %v702_v28 = vsel %vm670_vm7, %v590_v34, -inf  ;;  %1160 = vpow2.f32 %v805_v44  ;;  %v817_v49 = vmul.f32 1.442695, %v757_v46  ;;  %v704_v51 = vsel %vm672_vm8, %v643_v38, -inf }
 0x17b   : > { %v1141_v47 = vpop.eup %1140  ;;  %850 = vst [vmem:[%s1696_s26 + $0xc8] sm:$0x1] %v1139_v43  ;;  %v758_v50 = vsub.f32 %v702_v28, %v1666_v60  ;;  %1162 = vpow2.f32 %v803_v45  ;;  %v821_v52 = vmul.f32 1.442695, %v759_v22  ;;  %v760_v53 = vsub.f32 %v704_v51, %v1666_v60 }
 0x17c   : > { %v1143_v29 = vpop.eup %1142  ;;  %852 = vst [vmem:[%s1696_s26 + $0xd8] sm:$0x1] %v1141_v47  ;;  %1164 = vpow2.f32 %v807_v48 }
 0x17d   : > { %829 = vst [vmem:[%s1696_s26 + $0x20] sm:$0xff] %v1143_v29  ;;  %v1145_v30 = vpop.eup %1144  ;;  %v819_v54 = vmul.f32 1.442695, %v758_v50  ;;  %1166 = vpow2.f32 %v817_v49  ;;  %v823_v56 = vmul.f32 1.442695, %v760_v53 }
 0x17e   : > { %v1147_v55 = vpop.eup %1146  ;;  %831 = vst [vmem:[%s1696_s26 + $0x30] sm:$0xff] %v1145_v30  ;;  %1168 = vpow2.f32 %v821_v52 }
 0x17f   : > { %v1149_v57 = vpop.eup %1148  ;;  %830 = vst [vmem:[%s1696_s26 + $0x28] sm:$0xff] %v1147_v55  ;;  %1170 = vpow2.f32 %v819_v54 }
 0x180   : > { %v1151_v36 = vpop.eup %1150  ;;  %832 = vst [vmem:[%s1696_s26 + $0x38] sm:$0xff] %v1149_v57  ;;  %1172 = vpow2.f32 %v823_v56 }
 0x181   : > { %v1153_v60 = vpop.eup %1152  ;;  %837 = vst [vmem:[%s1696_s26 + $0x60] sm:$0xff] %v1151_v36 }
 0x182   : > { %v1155_v58 = vpop.eup %1154  ;;  %839 = vst [vmem:[%s1696_s26 + $0x70] sm:$0xff] %v1153_v60 }
 0x183   : > { %v1157_v59 = vpop.eup %1156  ;;  %838 = vst [vmem:[%s1696_s26 + $0x68] sm:$0xff] %v1155_v58 }
 0x184   : > { %v1159_v61 = vpop.eup %1158  ;;  %840 = vst [vmem:[%s1696_s26 + $0x78] sm:$0xff] %v1157_v59 }
 0x185   : > { %v1161_v62 = vpop.eup %1160  ;;  %845 = vst [vmem:[%s1696_s26 + $0xa0] sm:$0xff] %v1159_v61 }
 0x186   : > { %v1163_v63 = vpop.eup %1162  ;;  %847 = vst [vmem:[%s1696_s26 + $0xb0] sm:$0xff] %v1161_v62 }
 0x187   : > { %v1165_v1 = vpop.eup %1164  ;;  %846 = vst [vmem:[%s1696_s26 + $0xa8] sm:$0xff] %v1163_v63 }
 0x188   : > { %v1167_v2 = vpop.eup %1166  ;;  %848 = vst [vmem:[%s1696_s26 + $0xb8] sm:$0xff] %v1165_v1 }
 0x189   : > { %v1169_v3 = vpop.eup %1168  ;;  %853 = vst [vmem:[%s1696_s26 + $0xe0] sm:$0x1] %v1167_v2 }
 0x18a   : > { %v1171_v4 = vpop.eup %1170  ;;  %855 = vst [vmem:[%s1696_s26 + $0xf0] sm:$0x1] %v1169_v3 }
 0x18b   : > { %v1173_v14 = vpop.eup %1172  ;;  %854 = vst [vmem:[%s1696_s26 + $0xe8] sm:$0x1] %v1171_v4 }
 0x18c   : > { %856 = vst [vmem:[%s1696_s26 + $0xf8] sm:$0x1] %v1173_v14 }
 0x18d   : > { %1273 = shalt.err (!%p1270_p12)
}
 0x18e   : > { %s1274_s11 = scalar_lea.hbm %s1779_s7, 4096  ;;  %s1278_s4 = scalar_lea.hbm %s1835_s3, 8192 }
 0x18f   : > { %p1275_p3 = scmp.ne.s32.totalorder %s1779_s7, %s1274_s11  ;;  %p1279_p8 = scmp.lt.u32.totalorder %s1779_s7, %s1835_s3 }
 0x190   : > { %p1280_p7 = scmp.lt.u32.totalorder %s1278_s4, %s1274_s11  ;;  %p1282_p10 = scmp.lt.u32.totalorder %s1274_s11, %s1779_s7 }
 0x191   : > { %p1276_p6 = pnand %p1275_p3, %p1857_p1 }
 0x192   : > { %p1281_p9 = por %p1280_p7, %p1279_p8 }
 0x193   : > { %p1277_p13 = pneg %p1276_p6 }
 0x194   : > { %p1283_p0 = por %p1282_p10, %p1281_p9 }
 0x196   : > { %p1284_p4 = pnand %p1283_p0, %p1277_p13 }
 0x198   : > { %1287 = shalt.err (!%p1284_p4)
}
 0x199   : > { %s1348_s5 = smov 1024   ;;  %s1349_s22 = smov 2048  }
 0x19a   : > { %s1350_s23 = smov 64  }
 0x19b   : > { %1038 = dma.vmem_to_hbm [thread:$0]  (%p1857_p1), %s1783_s17, 4096, %s1779_s7, %s1790_s16, %s1348_s5, %s1349_s22, %s1350_s23  }
 0x19c PF: > { %s886_s26 = sand.u32 1, %s1322_s12   ;;  %p1858_p2 = scmp.ne.s32.totalorder %s1844_s25, 0 }
 0x19d   : > { %p1859_p5 = scmp.ge.s32.totalorder %s1334_s15, 2  ;;  %s887_s29 = scalar_lea.sflag [#allocation4], %s886_s26 }
 0x19f   : > { %p1052_p11 = pnand %p1859_p5, %p1858_p2 }
 0x1a1   : > { %1317 = dma.done.wait (!%p1052_p11), %s887_s29, 4096  }
 0x1a2   : > { %1319 = vsyncadd (!%p1052_p11), %s887_s29, 4294963200  ;;  %p17_p12 = scmp.ge.s32.totalorder %s1396_s18, 4   ;;  %s1860_s12 = smov %s1326_s13 }
 0x1a3   : > { %s1861_s13 = smov %s1330_s14  ;;  %s1862_s14 = smov %s1408_s21 }
 0x1a4   : > { %s1863_s15 = smov %s1396_s18  ;;  %19 = sbr.rel (!%p17_p12) target bundleno = 6 (0x6), region = 86 }
 0x1ab   :  { %892 = vsyncpa [#allocation3], 1 }
 0x1ac   :  { %894 = vsyncpa [#allocation3 + $0x1], 1 }
 0x1ad   :  { %895 = vsyncpa [#allocation6], 1 }
 0x1ae   :  { %897 = vsyncpa [#allocation6 + $0x1], 1 }
 0x1af   :  { %898 = vsyncpa [#allocation4], 1 }
 0x1b0   :  { %900 = vsyncpa [#allocation4 + $0x1], 1 }

// kernel: ntsntm_forward.7
= control target key start
LH: loop header
LB: loop body
LE: loop exit
PB: predicated region body
PF: predicated region fallthrough
CT: control target
= control target key end

     0   :  { %s1831_s0 = inlined_call_operand.hbm [shape: f32[32,128], index: 0, kind: input, shape index: {}]   ;;  %s1832_s1 = inlined_call_operand.hbm [shape: bf16[25,2048], index: 1, kind: input, shape index: {}]   ;;  %s1833_s2 = inlined_call_operand.hbm [shape: bf16[32,2048], index: 2, kind: input, shape index: {}]   ;;  %s1834_s3 = inlined_call_operand.hbm [shape: f32[32,1], index: 3, kind: output, shape index: {}]  }
   0x1   :  { %1852 = sst [smem:[#allocation21_spill]] %s1831_s0 }
   0x2   :  { %1853 = sst [smem:[#allocation22_spill]] %s1832_s1 }
   0x3   :  { %1854 = sst [smem:[#allocation23_spill]] %s1834_s3 }
   0x4   :  { %8 = vsyncpa [#allocation3], 0 }
   0x5   :  { %10 = vsyncpa [#allocation3 + $0x1], 0 }
   0x6   :  { %11 = vsyncpa [#allocation6], 0 }
   0x7   :  { %13 = vsyncpa [#allocation6 + $0x1], 0 }
   0x8   :  { %14 = vsyncpa [#allocation4], 0 }
   0x9   :  { %16 = vsyncpa [#allocation4 + $0x1], 0  ;;  %s1358_s12 = smov 0   ;;  %s1360_s13 = smov 0  }
   0xa   :  { %s1362_s14 = smov 0   ;;  %s1364_s15 = smov 0  }
   0xb   :  { %s1366_s16 = smov 0   ;;  %s1368_s17 = smov 0  }
   0xc   :  { %s1370_s18 = smov 0   ;;  %s1372_s19 = smov 0  }
   0xd   :  { %s1374_s20 = smov 0   ;;  %s1376_s21 = smov 0  }
   0xe   :  { %s1378_s22 = smov 0   ;;  %s1380_s23 = smov 0  }
   0xf   :  { %s1382_s24 = smov 0   ;;  %s1384_s25 = smov 0  }
  0x10 LB: > { %1855 = sst [smem:[#allocation13_spill]] %s1290_s17  ;;  %s31_s26 = sadd.s32 1, %s1314_s23  ;;  %s1322_s25 = sphi %s1384_s25, %s22_s25   ;;  %s1318_s24 = sphi %s1382_s24, %s1913_s24   ;;  %s1314_s23 = sphi %s1380_s23, %s1912_s23   ;;  %s1310_s22 = sphi %s1378_s22, %s1911_s22   ;;  %s1306_s21 = sphi %s1376_s21, %s1910_s21   ;;  %s1302_s20 = sphi %s1374_s20, %s1909_s20   ;;  %s1298_s19 = sphi %s1372_s19, %s1908_s19   ;;  %s1294_s18 = sphi %s1370_s18, %s1907_s18   ;;  %s1290_s17 = sphi %s1368_s17, %s1899_s17   ;;  %s1286_s16 = sphi %s1366_s16, %s1906_s16   ;;  %s1282_s15 = sphi %s1364_s15, %s1905_s15   ;;  %s1278_s14 = sphi %s1362_s14, %s1904_s14   ;;  %s1274_s13 = sphi %s1360_s13, %s1903_s13   ;;  %s1270_s12 = sphi %s1358_s12, %s1902_s12  }
  0x11   : > { %1856 = sst [smem:[#allocation14_spill]] %s1306_s21  ;;  %p1838_p0 = scmp.eq.s32.totalorder %s1322_s25, 0 }
  0x12   : > { %1857 = sst [smem:[#allocation15_spill]] %s1310_s22  ;;  %p1430_p1 = scmp.ge.s32.totalorder %s31_s26, 2 }
  0x13   : > { %s67_s28 = sadd.s32 1, %s1290_s17  ;;  %p74_p2 = scmp.ne.s32.totalorder %s1290_s17, %s1286_s16 }
  0x14   : > { %s1915_s26 = smov (%p1430_p1, %s31_s26), 0  ;;  %p1837_p5 = scmp.lt.s32.totalorder %s1322_s25, 4 }
  0x15   : > { %1859 = sst [smem:[#allocation16_spill]] %s1915_s26  ;;  %p76_p4 = por %p74_p2, %p1838_p0 }
  0x16   : > { %s1447_s29 = ssub.s32 %s1314_s23, %s1915_s26  ;;  %s179_s30 = sand.u32 1, %s1322_s25  }
  0x17   : > { %p65_p6 = scmp.eq.s32.totalorder %s1447_s29, 0  ;;  %s181_s4 = sand.u32 1, %s1290_s17  }
  0x18   : > { %s857_s6 = sshll.u32 %s181_s4, 7  ;;  %s897_s7 = sshll.u32 %s1314_s23, 9 }
  0x19   : > { %s1454_s5 = scalar_select %p65_p6, %s1290_s17, %s67_s28  }
  0x1a   : > { %s1861_s1 = sld [smem:[#allocation22_spill]]  ;;  %s183_s11 = scalar_lea.vmem [#allocation5], %s857_s6 }
  0x1b   : > { %1860 = sst [smem:[#allocation17_spill]] %s1454_s5  ;;  %s190_s26 = sshll.u32 %s183_s11, 4  ;;  %s1468_s26 = int_to_ptr.vmem [resolvable:$true] %s190_s26 }
  0x1c   : > { %p1464_p7 = pnand %p1837_p5, %p76_p4  ;;  %s1471_s28 = scalar_lea.sflag [#allocation6], %s179_s30 }
  0x1e   : > { %p1080_p10 = pneg %p1464_p7 }
  0x20   : > { %s1460_s10 = scalar_lea.hbm %s1861_s1, %s897_s7  ;;  %s1083_s8 = scalar_lea.hbm %s1861_s1, 4096 }
  0x21   : > { %s1078_s4 = scalar_lea.hbm %s1460_s10, 2048  ;;  %p1084_p13 = scmp.lt.u32.totalorder %s1460_s10, %s1861_s1 }
  0x22   : > { %p1079_p9 = scmp.ne.s32.totalorder %s1460_s10, %s1078_s4  ;;  %p1085_p2 = scmp.lt.u32.totalorder %s1083_s8, %s1078_s4 }
  0x23   : > { %p1087_p6 = scmp.lt.u32.totalorder %s1078_s4, %s1460_s10 }
  0x24   : > { %p1081_p11 = pnand %p1080_p10, %p1079_p9  ;;  %p1086_p4 = por %p1085_p2, %p1084_p13 }
  0x26   : > { %p1082_p12 = pneg %p1081_p11  ;;  %p1088_p5 = por %p1087_p6, %p1086_p4 }
  0x28   : > { %p1089_p3 = pnand %p1088_p5, %p1082_p12 }
  0x2a   : > { %1092 = shalt.err (!%p1089_p3)
}
  0x2b   : > { %s1093_s30 = scalar_lea.vmem %s1468_s26, 2048  ;;  %s1324_s6 = smov [#allocation5]  }
  0x2c   : > { %p1094_p9 = scmp.ne.s32.totalorder %s1468_s26, %s1093_s30  ;;  %s1098_s7 = sshll.u32 %s1324_s6, 4  ;;  %s1099_s7 = int_to_ptr.vmem [resolvable:$false] %s1098_s7 }
  0x2d   : > { %s1100_s9 = scalar_lea.vmem %s1099_s7, 4096  ;;  %p1101_p8 = scmp.lt.s32.totalorder %s1468_s26, %s1099_s7 }
  0x2e   : > { %p1096_p11 = pnand %p1094_p9, %p1080_p10  ;;  %p1102_p13 = scmp.lt.s32.totalorder %s1100_s9, %s1093_s30 }
  0x30   : > { %p1097_p0 = pneg %p1096_p11  ;;  %p1103_p2 = por %p1102_p13, %p1101_p8 }
  0x32   : > { %p1104_p4 = pnand %p1103_p2, %p1097_p0 }
  0x34   : > { %1107 = shalt.err (!%p1104_p4)
}
  0x35   : > { %s1839_s4 = smov 1024   ;;  %s1840_s8 = smov 512  }
  0x36   : > { %s1841_s11 = smov 32   ;;  %p222_p0 = scmp.lt.s32.totalorder %s1322_s25, 5 }
  0x37   : > { %914 = dma.hbm_to_vmem [thread:$0]  (!%p1464_p7), %s1460_s10, 2048, %s1468_s26, %s1471_s28, %s1839_s4, %s1840_s8, %s1841_s11  }
  0x38   : > { %p1863_p3 = scmp.ge.s32.totalorder %s1322_s25, 1  ;;  %s1510_s6 = sadd.s32 4294967295, %s1322_s25  }
  0x39   : > { %s851_s3 = sadd.s32 4294967294, %s1322_s25   ;;  %s34_s7 = sadd.s32 1, %s1318_s24 }
  0x3a   : > { %p1505_p5 = pnand %p1863_p3, %p222_p0  ;;  %s41_s9 = sadd.s32 1, %s1302_s20 }
  0x3b   : > { %s1917_s7 = smov (!%p1430_p1, %s34_s7), %s1318_s24  ;;  %p48_p7 = scmp.ne.s32.totalorder %s1302_s20, %s1298_s19 }
  0x3c   : > { %s1864_s30 = scalar_select %p1505_p5, 1, 0 }
  0x3d   : > { %p54_p8 = scmp.ne.s32.totalorder %s1298_s19, %s1294_s18  ;;  %p36_p10 = scmp.ge.s32.totalorder %s1917_s7, 2 }
  0x3e   : > { %p1848_p12 = scmp.eq.s32.totalorder %s1510_s6, 0  ;;  %p1865_p6 = scmp.eq.s32.totalorder %s1322_s25, 0 }
  0x3f   : > { %p132_p11 = scmp.eq.s32.totalorder %s1510_s6, 3  ;;  %s1919_s7 = smov (%p36_p10, %s1917_s7), 0 }
  0x40   : > { %p1525_p9 = por %p1865_p6, %p48_p7  ;;  %1867 = sst [smem:[#allocation18_spill]] %s1919_s7 }
  0x41   : > { %p1537_p1 = por %p1848_p12, %p54_p8  ;;  %p1869_p13 = scmp.ne.s32.totalorder %s1286_s16, %s1282_s15 }
  0x42   : > { %s38_s4 = ssub.s32 %s1318_s24, %s1919_s7  ;;  %p1552_p4 = por %p132_p11, %p48_p7 }
  0x43   : > { %s1868_s27 = scalar_select %p1537_p1, 1, 0 }
  0x44   : > { %p1546_p2 = por %p1869_p13, %p1848_p12  ;;  %p39_p0 = scmp.eq.s32.totalorder %s38_s4, 0 }
  0x45   : > { %s1872_s8 = scalar_select %p1552_p4, 1, 0 }
  0x46   : > { %s1870_s10 = scalar_select %p1546_p2, 1, 0 }
  0x47   : > { %1873 = sst [smem:[#allocation20_spill]] %s1872_s8  ;;  %s92_s11 = sor.u32 %s1447_s29, %s38_s4 }
  0x48   : > { %1871 = sst [smem:[#allocation19_spill]] %s1870_s10  ;;  %p1557_p3 = scmp.eq.s32.totalorder %s92_s11, 0 }
  0x49   : > { %p138_p10 = scmp.eq.s32.totalorder %s851_s3, 3  ;;  %s158_s17 = sand.u32 1, %s1302_s20  }
  0x4a   : > { %s1562_s5 = scalar_select %p39_p0, %s1302_s20, %s41_s9  }
  0x4b   : > { %p1567_p6 = por %p138_p10, %p54_p8  ;;  %s854_s7 = sshll.u32 %s158_s17, 4 }
  0x4c   : > { %s896_s22 = sshll.u32 %s1318_s24, 8  ;;  %s1876_s0 = sld [smem:[#allocation21_spill]] }
  0x4d   : > { %s1875_s15 = scalar_select %p1567_p6, 1, 0 }
  0x4e   : > { %s162_s29 = scalar_lea.vmem [#allocation2], %s854_s7  ;;  %p1877_p7 = scmp.lt.s32.totalorder %s1322_s25, 4 }
  0x4f   : > { %s169_s4 = sshll.u32 %s162_s29, 4  ;;  %s1588_s3 = scalar_lea.sflag [#allocation3], %s158_s17  ;;  %s1578_s4 = int_to_ptr.vmem [resolvable:$true] %s169_s4 }
  0x50   : > { %p1584_p8 = pnand %p1877_p7, %p1525_p9 }
  0x52   : > { %s1576_s8 = scalar_lea.hbm %s1876_s0, %s896_s22  ;;  %p1110_p13 = pneg %p1584_p8 }
  0x53   : > { %s1108_s21 = scalar_lea.hbm %s1576_s8, 256  ;;  %s1113_s9 = scalar_lea.hbm %s1876_s0, 512 }
  0x54   : > { %p1109_p11 = scmp.ne.s32.totalorder %s1576_s8, %s1108_s21  ;;  %p1114_p9 = scmp.lt.u32.totalorder %s1576_s8, %s1876_s0 }
  0x55   : > { %p1115_p7 = scmp.lt.u32.totalorder %s1113_s9, %s1108_s21  ;;  %p1117_p6 = scmp.lt.u32.totalorder %s1108_s21, %s1576_s8 }
  0x56   : > { %p1111_p0 = pnand %p1110_p13, %p1109_p11 }
  0x57   : > { %p1116_p12 = por %p1115_p7, %p1114_p9 }
  0x58   : > { %p1112_p10 = pneg %p1111_p0 }
  0x59   : > { %p1118_p4 = por %p1117_p6, %p1116_p12 }
  0x5b   : > { %p1119_p2 = pnand %p1118_p4, %p1112_p10 }
  0x5d   : > { %1122 = shalt.err (!%p1119_p2)
}
  0x5e   : > { %s1123_s17 = scalar_lea.vmem %s1578_s4, 256  ;;  %s1328_s29 = smov [#allocation2]  }
  0x5f   : > { %p1124_p11 = scmp.ne.s32.totalorder %s1578_s4, %s1123_s17  ;;  %s1128_s22 = sshll.u32 %s1328_s29, 4  ;;  %s1129_s22 = int_to_ptr.vmem [resolvable:$false] %s1128_s22 }
  0x60   : > { %s1130_s7 = scalar_lea.vmem %s1129_s22, 512  ;;  %p1131_p5 = scmp.lt.s32.totalorder %s1578_s4, %s1129_s22 }
  0x61   : > { %p1126_p0 = pnand %p1124_p11, %p1110_p13  ;;  %p1132_p9 = scmp.lt.s32.totalorder %s1130_s7, %s1123_s17 }
  0x63   : > { %p1127_p1 = pneg %p1126_p0  ;;  %p1133_p7 = por %p1132_p9, %p1131_p5 }
  0x65   : > { %p1134_p12 = pnand %p1133_p7, %p1127_p1 }
  0x67   : > { %1137 = shalt.err (!%p1134_p12)
}
  0x68   : > { %s1329_s21 = smov 128   ;;  %s1330_s9 = smov 8  }
  0x69   : > { %911 = dma.hbm_to_vmem [thread:$0]  (!%p1584_p8), %s1576_s8, 256, %s1578_s4, %s1588_s3, %s1329_s21, %s1329_s21, %s1330_s9  }
  0x6a   : > { %s95_s26 = sadd.s32 1, %s1278_s14  ;;  %p102_p5 = scmp.ne.s32.totalorder %s1278_s14, %s1274_s13 }
  0x6b   : > { %s1620_s10 = scalar_select %p1557_p3, %s1278_s14, %s95_s26  }
  0x6c   : > { %p108_p1 = scmp.ne.s32.totalorder %s1274_s13, %s1270_s12  ;;  %s202_s17 = sand.u32 1, %s1278_s14  }
  0x6d   : > { %s862_s29 = sshll.u32 %s1314_s23, 3  ;;  %p1879_p2 = scmp.eq.s32.totalorder %s1322_s25, 0 }
  0x6e   : > { %p1880_p6 = scmp.eq.s32.totalorder %s1510_s6, 0  ;;  %s860_s7 = sshll.u32 %s202_s17, 6 }
  0x6f   : > { %p104_p4 = por %p102_p5, %p1879_p2  ;;  %s898_s0 = sshll.u32 %s1318_s24, 5 }
  0x70   : > { %p1632_p13 = por %p108_p1, %p1880_p6  ;;  %s211_s11 = sadd.s32 %s898_s0, %s862_s29 }
  0x71   : > { %s864_s8 = sshll.u32 %s211_s11, 6  ;;  %s204_s4 = scalar_lea.vmem [#allocation7], %s860_s7 }
  0x72   : > { %s214_s1 = sshll.u32 %s204_s4, 4  ;;  %s1640_s9 = scalar_lea.hbm %s1833_s2, %s864_s8  ;;  %s1642_s1 = int_to_ptr.vmem [resolvable:$true] %s214_s1 }
  0x73   : > { %p1882_p3 = scmp.lt.s32.totalorder %s1322_s25, 4  ;;  %s1138_s0 = scalar_lea.hbm %s1640_s9, 1024 }
  0x74   : > { %p1139_p10 = scmp.ne.s32.totalorder %s1640_s9, %s1138_s0  ;;  %s1143_s29 = scalar_lea.hbm %s1833_s2, 4096 }
  0x75   : > { %p1646_p8 = pnand %p1882_p3, %p104_p4  ;;  %p1144_p7 = scmp.lt.u32.totalorder %s1640_s9, %s1833_s2 }
  0x76   : > { %p1145_p12 = scmp.lt.u32.totalorder %s1143_s29, %s1138_s0  ;;  %p1147_p1 = scmp.lt.u32.totalorder %s1138_s0, %s1640_s9 }
  0x77   : > { %p1140_p11 = pneg %p1646_p8 }
  0x78   : > { %p1146_p5 = por %p1145_p12, %p1144_p7 }
  0x79   : > { %p1141_p0 = pnand %p1140_p11, %p1139_p10 }
  0x7a   : > { %p1148_p2 = por %p1147_p1, %p1146_p5 }
  0x7b   : > { %p1142_p9 = pneg %p1141_p0 }
  0x7d   : > { %p1149_p4 = pnand %p1148_p2, %p1142_p9 }
  0x7f   : > { %1152 = shalt.err (!%p1149_p4)
}
  0x80   : > { %s1153_s8 = scalar_lea.vmem %s1642_s1, 1024  ;;  %s1331_s4 = smov [#allocation7]  }
  0x81   : > { %p1154_p6 = scmp.ne.s32.totalorder %s1642_s1, %s1153_s8  ;;  %s1158_s3 = sshll.u32 %s1331_s4, 4  ;;  %s1159_s3 = int_to_ptr.vmem [resolvable:$false] %s1158_s3 }
  0x82   : > { %s1160_s21 = scalar_lea.vmem %s1159_s3, 2048  ;;  %p1161_p0 = scmp.lt.s32.totalorder %s1642_s1, %s1159_s3 }
  0x83   : > { %p1156_p3 = pnand %p1154_p6, %p1140_p11  ;;  %p1162_p7 = scmp.lt.s32.totalorder %s1160_s21, %s1153_s8 }
  0x85   : > { %p1157_p10 = pneg %p1156_p3  ;;  %p1163_p12 = por %p1162_p7, %p1161_p0 }
  0x87   : > { %p1164_p5 = pnand %p1163_p12, %p1157_p10 }
  0x89   : > { %1167 = shalt.err (!%p1164_p5)
}
  0x8a   : > { %s1884_s0 = smov 32   ;;  %s1885_s26 = smov 512  }
  0x8b   : > { %s1886_s17 = smov 1024   ;;  %p1887_p11 = scmp.ne.s32.totalorder %s1864_s30, 0 }
  0x8c   : > { %917 = dma.hbm_to_vmem [thread:$0]  (!%p1646_p8), %s1640_s9, 1024, %s1642_s1, %s1471_s28, %s1886_s17, %s1885_s26, %s1884_s0  }
  0x8d   : > { %226 = sbr.rel (%p1887_p11) target bundleno = 599 (0x257), region = 32  ;;  %s1682_s29 = sand.u32 (!%p1887_p11), 1, %s1298_s19  }
  0x8e   : > { %s866_s7 = sshll.u32 (!%p1887_p11), %s1682_s29, 4  ;;  %s229_s11 = scalar_lea.sflag (!%p1887_p11), [#allocation3], %s1682_s29 }
  0x8f   : > { %s1686_s8 = scalar_lea.vmem (!%p1887_p11), [#allocation2], %s866_s7  ;;  %p1888_p9 = scmp.ne.s32.totalorder (!%p1887_p11), %s1868_s27, 0 }
  0x94   : > { %1253 = dma.done.wait (%p1888_p9), %s229_s11, 256  }
  0x95   : > { %1255 = vsyncadd (%p1888_p9), %s229_s11, 4294967040  ;;  %s1889_s28 = sld [smem:[#allocation19_spill]]  ;;  %s237_s30 = sand.u32 1, %s1510_s6  }
  0x96   : > { %s239_s1 = sand.u32 1, %s1286_s16   ;;  %s238_s12 = scalar_lea.sflag [#allocation6], %s237_s30 }
  0x97   : > { %s867_s9 = sshll.u32 %s239_s1, 7 }
  0x98   : > { %s1694_s4 = scalar_lea.vmem [#allocation5], %s867_s9 }
  0x9b   : > { %p1890_p8 = scmp.ne.s32.totalorder %s1889_s28, 0 }
  0x9d   : > { %1257 = dma.done.wait (%p1890_p8), %s238_s12, 2048  }
  0x9e   : > { %1259 = vsyncadd (%p1890_p8), %s238_s12, 4294965248  ;;  %s248_s3 = sand.u32 1, %s1274_s13  }
  0x9f   : > { %s868_s21 = sshll.u32 %s248_s3, 6 }
  0xa0   : > { %s1701_s27 = scalar_lea.vmem [#allocation7], %s868_s21 }
  0xa1   : > { %1261 = dma.done.wait (%p1632_p13), %s238_s12, 1024  }
  0xa2   : > { %1263 = vsyncadd (%p1632_p13), %s238_s12, 4294966272  ;;  %s1707_s6 = scalar_lea.vmem [#allocation8], %s866_s7  ;;  %s1891_s0 = sld [smem:[#allocation14_spill]] }
  0xa8   : > { %p870_p1 = scmp.ne.s32.totalorder %s1891_s0, 0 }
  0xa9   : > { %vm293_vm0 = vcmask (!%p870_p1), 7168   ;;  %v1332_v0 = vmov (!%p870_p1), 0.0  }
  0xaa   : > { %292 = sbr.rel (%p870_p1) target bundleno = 177 (0xb1), region = 48  ;;  %294 = vst.msk [vmem:[%s1707_s6] sm:$0xff] (!%p870_p1), %vm293_vm0, %v1332_v0  ;;  %295 = vst.msk [vmem:[%s1707_s6 + $0x8] sm:$0xff] (!%p870_p1), %vm293_vm0, %v1332_v0 }
  0xb1 PF: > { %v299_v1 = vld [vmem:[%s1694_s4] sm:$0xff]  ;;  %v300_v3 = vld [vmem:[%s1694_s4 + $0x8] sm:$0xff]  ;;  %vm391_vm1 = vcmask 1043456   ;;  %vm392_vm2 = vcmask 1044480   ;;  %v1333_v9 = vmov 65535   ;;  %v1334_v17 = vmov 0  }
  0xb2   : > { %v303_v2 = vld [vmem:[%s1694_s4 + $0x20] sm:$0xff]  ;;  %v304_v6 = vld [vmem:[%s1694_s4 + $0x28] sm:$0xff]  ;;  %v393_v10 = vsel %vm391_vm1, 4294967295, %v1333_v9  ;;  %451 = vmatprep.mubr.bf16.mxu0 %v1334_v17  ;;  %494 = vmatprep.mubr.bf16.mxu1 %v1334_v17  ;;  %v301_v23 = vld [vmem:[%s1694_s4 + $0x10] sm:$0xff]  ;;  %vm387_vm3 = vcmask 203776   ;;  %s1892_s22 = sld [smem:[#allocation15_spill]] }
  0xb3   : > { %v872_v4 = vcombine.high %v299_v1, %v303_v2  ;;  %v871_v5 = vcombine.low %v299_v1, %v303_v2  ;;  %v307_v7 = vld [vmem:[%s1694_s4 + $0x40] sm:$0xff]  ;;  %v874_v11 = vcombine.high %v300_v3, %v304_v6  ;;  %v873_v12 = vcombine.low %v300_v3, %v304_v6  ;;  %v308_v15 = vld [vmem:[%s1694_s4 + $0x48] sm:$0xff]  ;;  %v305_v24 = vld [vmem:[%s1694_s4 + $0x30] sm:$0xff]  ;;  %s1893_s26 = sld [smem:[#allocation20_spill]]  ;;  %s720_s7 = sshll.u32 %s1707_s6, 4  ;;  %s1752_s7 = int_to_ptr.vmem [resolvable:$true] %s720_s7 }
  0xb4   : > { %v311_v8 = vld [vmem:[%s1694_s4 + $0x60] sm:$0x11]  ;;  %v394_v14 = vsel %vm392_vm2, %v393_v10, 0  ;;  %v312_v16 = vld [vmem:[%s1694_s4 + $0x68] sm:$0x11]  ;;  %v302_v26 = vld [vmem:[%s1694_s4 + $0x18] sm:$0xff]  ;;  %v876_v32 = vcombine.high %v301_v23, %v305_v24  ;;  %v875_v40 = vcombine.low %v301_v23, %v305_v24 }
  0xb5   : > { %v880_v13 = vcombine.high %v307_v7, %v311_v8  ;;  %v296_v18 = vld [vmem:[%s1686_s8] sm:$0xff]  ;;  %419 = vmatprep.subr.bf16.mxu0 %v872_v4  ;;  %v879_v19 = vcombine.low %v307_v7, %v311_v8  ;;  %v882_v20 = vcombine.high %v308_v15, %v312_v16  ;;  %v881_v21 = vcombine.low %v308_v15, %v312_v16  ;;  %v297_v22 = vld [vmem:[%s1686_s8 + $0x8] sm:$0xff]  ;;  %s1894_s28 = sld [smem:[#allocation23_spill]]  ;;  %s707_s1 = scalar_lea.sflag [#allocation4], %s1682_s29 }
  0xb6   : > { %420 = vmatpush1.bf16.msra.mxu0 %v871_v5  ;;  %462 = vmatprep.subr.bf16.mxu1 %v874_v11  ;;  %v306_v27 = vld [vmem:[%s1694_s4 + $0x38] sm:$0xff]  ;;  %v309_v28 = vld [vmem:[%s1694_s4 + $0x50] sm:$0xff]  ;;  %v298_v38 = vpack.c.bf16 %v297_v22, %v296_v18  ;;  %v641_v1 = vld [vmem:[%s1701_s27] sm:$0xff]  ;;  %vm703_vm4 = vcmask 7168   ;;  %s1168_s9 = scalar_lea.vmem %s1752_s7, 256  ;;  %s1335_s12 = smov [#allocation8]  }
  0xb7   : > { %v399_v25 = vand.u32 %v880_v13, %v394_v14  ;;  %463 = vmatpush1.bf16.msra.mxu1 %v873_v12  ;;  %v396_v29 = vand.u32 %v879_v19, %v394_v14  ;;  %v405_v30 = vand.u32 %v882_v20, %v394_v14  ;;  %v402_v31 = vand.u32 %v881_v21, %v394_v14  ;;  %v313_v33 = vld [vmem:[%s1694_s4 + $0x70] sm:$0x11]  ;;  %v310_v34 = vld [vmem:[%s1694_s4 + $0x58] sm:$0xff]  ;;  %v645_v9 = vld [vmem:[%s1701_s27 + $0x20] sm:$0xff]  ;;  %p1169_p13 = scmp.ne.s32.totalorder %s1752_s7, %s1168_s9 }
  0xb8   : > { %v314_v35 = vld [vmem:[%s1694_s4 + $0x78] sm:$0x11]  ;;  %v878_v36 = vcombine.high %v302_v26, %v306_v27  ;;  %v884_v37 = vcombine.high %v309_v28, %v313_v33  ;;  %v883_v41 = vcombine.low %v309_v28, %v313_v33  ;;  %v877_v42 = vcombine.low %v302_v26, %v306_v27  ;;  %v646_v28 = vld [vmem:[%s1701_s27 + $0x28] sm:$0xff]  ;;  %s899_s17 = sshll.u32 %s1892_s22, 8  ;;  %s1172_s4 = sshll.u32 %s1335_s12, 4  ;;  %s1173_s4 = int_to_ptr.vmem [resolvable:$false] %s1172_s4 }
  0xb9   : > { %421 = vmatprep.subr.bf16.mxu0 %v399_v25  ;;  %464 = vmatprep.subr.bf16.mxu1 %v405_v30  ;;  %v886_v39 = vcombine.high %v310_v34, %v314_v35  ;;  %v885_v44 = vcombine.low %v310_v34, %v314_v35  ;;  %v649_v13 = vunpack.c.l.bf16 %v641_v1  ;;  %v650_v19 = vunpack.c.h.bf16 %v641_v1  ;;  %p1895_p2 = scmp.ne.s32.totalorder %s1893_s26, 0  ;;  %s1174_s3 = scalar_lea.vmem %s1173_s4, 512 }
  0xba   : > { %422 = vmatpush1.bf16.msra.mxu0 %v396_v29  ;;  %v411_v43 = vand.u32 %v884_v37, %v394_v14  ;;  %v408_v46 = vand.u32 %v883_v41, %v394_v14  ;;  %v657_v23 = vunpack.c.l.bf16 %v645_v9  ;;  %v643_v37 = vld [vmem:[%s1701_s27 + $0x10] sm:$0xff]  ;;  %v659_v41 = vunpack.c.l.bf16 %v646_v28  ;;  %p1175_p3 = scmp.lt.s32.totalorder %s1752_s7, %s1173_s4  ;;  %p1176_p10 = scmp.lt.s32.totalorder %s1174_s3, %s1168_s9 }
  0xbb   : > { %465 = vmatpush1.bf16.msra.mxu1 %v402_v31  ;;  %505 = vmatprep.subr.bf16.mxu0 %v876_v32  ;;  %v417_v45 = vand.u32 %v886_v39, %v394_v14  ;;  %v414_v47 = vand.u32 %v885_v44, %v394_v14  ;;  %v642_v14 = vld [vmem:[%s1701_s27 + $0x8] sm:$0xff]  ;;  %v658_v32 = vunpack.c.h.bf16 %v645_v9  ;;  %s1750_s30 = scalar_lea.hbm %s1894_s28, %s899_s17  ;;  %p1170_p4 = pnand %p1169_p13, %p1895_p2 }
  0xbc   : > { %548 = vmatprep.subr.bf16.mxu1 %v878_v36  ;;  %v651_v27 = vunpack.c.l.bf16 %v642_v14  ;;  %v652_v36 = vunpack.c.h.bf16 %v642_v14  ;;  %p1177_p0 = por %p1176_p10, %p1175_p3 }
  0xbd   : > { %887 = vmatmul.mubr.msk.bf16.vlgmr.msra.gmra.mrb[0].mxu0 %vm387_vm3, %v298_v38  ;;  %p1171_p6 = pneg %p1170_p4 }
  0xbe   : > { %506 = vmatpush1.bf16.msra.mxu0 %v875_v40  ;;  %888 = vmatmul.mubr.msk.bf16.vlgmr.msra.gmra.mrb[0].mxu1 %vm387_vm3, %v298_v38 }
  0xbf   : > { %549 = vmatpush1.bf16.msra.mxu1 %v877_v42  ;;  %507 = vmatprep.subr.bf16.mxu0 %v411_v43  ;;  %p1178_p7 = pnand %p1177_p0, %p1171_p6 }
  0xc0   : > { %550 = vmatprep.subr.bf16.mxu1 %v417_v45  ;;  %537 = vmatprep.mubr.bf16.mxu0 %v1334_v17 }
  0xc1   : > { %580 = vmatprep.mubr.bf16.mxu1 %v1334_v17 }
  0xc2   : > { %508 = vmatpush1.bf16.msra.mxu0 %v408_v46  ;;  %v647_v46 = vld [vmem:[%s1701_s27 + $0x30] sm:$0xff] }
  0xc3   : > { %551 = vmatpush1.bf16.msra.mxu1 %v414_v47 }
  0xc5   : > { %889 = vmatmul.mubr.msk.bf16.vlgmr.msra.gmra.mrb[4].mxu0 %vm387_vm3, %v298_v38 }
  0xc6   : > { %890 = vmatmul.mubr.msk.bf16.vlgmr.msra.gmra.mrb[4].mxu1 %vm387_vm3, %v298_v38 }
 0x190   : > { %v453_v48 = vpop.f32.mrb[0].mxu0 }
 0x191   : > { %v591_v49 = vmax.f32 %v453_v48, 1e-30  ;;  %v455_v50 = vpop.f32.mrb[1].mxu0  ;;  %v496_v51 = vpop.f32.mrb[0].mxu1 }
 0x192   : > { %v592_v52 = vmax.f32 %v455_v50, 1e-30  ;;  %v457_v53 = vpop.f32.mrb[2].mxu0  ;;  %v593_v54 = vmax.f32 %v496_v51, 1e-30  ;;  %v498_v55 = vpop.f32.mrb[1].mxu1  ;;  %v660_v50 = vunpack.c.h.bf16 %v646_v28  ;;  %v653_v51 = vunpack.c.l.bf16 %v643_v37 }
 0x193   : > { %1046 = vlog2.f32 %v591_v49  ;;  %v599_v56 = vmax.f32 %v457_v53, 1e-30  ;;  %v459_v57 = vpop.f32.mrb[3].mxu0  ;;  %v500_v58 = vpop.f32.mrb[2].mxu1  ;;  %v594_v60 = vmax.f32 %v498_v55, 1e-30 }
 0x194   : > { %1048 = vlog2.f32 %v592_v52  ;;  %v600_v59 = vmax.f32 %v459_v57, 1e-30  ;;  %v502_v61 = vpop.f32.mrb[3].mxu1  ;;  %v601_v62 = vmax.f32 %v500_v58, 1e-30  ;;  %v644_v52 = vld [vmem:[%s1701_s27 + $0x18] sm:$0xff]  ;;  %v654_v57 = vunpack.c.h.bf16 %v643_v37 }
 0x195   : > { %1050 = vlog2.f32 %v599_v56  ;;  %v602_v63 = vmax.f32 %v502_v61, 1e-30 }
 0x196   : > { %1052 = vlog2.f32 %v593_v54 }
 0x197   : > { %1054 = vlog2.f32 %v600_v59 }
 0x198   : > { %1056 = vlog2.f32 %v594_v60  ;;  %v539_v0 = vpop.f32.mrb[4].mxu0 }
 0x199   : > { %1058 = vlog2.f32 %v601_v62  ;;  %v595_v2 = vmax.f32 %v539_v0, 1e-30  ;;  %v541_v3 = vpop.f32.mrb[5].mxu0  ;;  %v582_v4 = vpop.f32.mrb[4].mxu1  ;;  %v661_v62 = vunpack.c.l.bf16 %v647_v46 }
 0x19a   : > { %1060 = vlog2.f32 %v602_v63  ;;  %v596_v5 = vmax.f32 %v541_v3, 1e-30  ;;  %v543_v6 = vpop.f32.mrb[6].mxu0  ;;  %v597_v7 = vmax.f32 %v582_v4, 1e-30  ;;  %v584_v8 = vpop.f32.mrb[5].mxu1  ;;  %v662_v3 = vunpack.c.h.bf16 %v647_v46 }
 0x19b   : > { %1062 = vlog2.f32 %v595_v2  ;;  %v603_v10 = vmax.f32 %v543_v6, 1e-30  ;;  %v545_v11 = vpop.f32.mrb[7].mxu0  ;;  %v586_v12 = vpop.f32.mrb[6].mxu1  ;;  %v598_v16 = vmax.f32 %v584_v8, 1e-30  ;;  %v655_v4 = vunpack.c.l.bf16 %v644_v52 }
 0x19c   : > { %1064 = vlog2.f32 %v596_v5  ;;  %v604_v15 = vmax.f32 %v545_v11, 1e-30  ;;  %v588_v17 = vpop.f32.mrb[7].mxu1  ;;  %v605_v20 = vmax.f32 %v586_v12, 1e-30  ;;  %v648_v63 = vld [vmem:[%s1701_s27 + $0x38] sm:$0xff] }
 0x19d   : > { %v1047_v18 = vpop.eup %1046  ;;  %1066 = vlog2.f32 %v603_v10  ;;  %v606_v24 = vmax.f32 %v588_v17, 1e-30  ;;  %v663_v14 = vunpack.c.l.bf16 %v648_v63 }
 0x19e   : > { %v1049_v21 = vpop.eup %1048  ;;  %v608_v22 = vmul.f32 0.6931472, %v1047_v18  ;;  %1068 = vlog2.f32 %v597_v7 }
 0x19f   : > { %v1051_v25 = vpop.eup %1050  ;;  %v610_v26 = vmul.f32 0.6931472, %v1049_v21  ;;  %1070 = vlog2.f32 %v604_v15 }
 0x1a0   : > { %v1053_v29 = vpop.eup %1052  ;;  %v665_v30 = vmul.f32 %v649_v13, %v608_v22  ;;  %v624_v31 = vmul.f32 0.6931472, %v1051_v25  ;;  %1072 = vlog2.f32 %v598_v16  ;;  %v656_v13 = vunpack.c.h.bf16 %v644_v52 }
 0x1a1   : > { %v1055_v33 = vpop.eup %1054  ;;  %v666_v34 = vmul.f32 %v650_v19, %v610_v26  ;;  %v612_v35 = vmul.f32 0.6931472, %v1053_v29  ;;  %1074 = vlog2.f32 %v605_v20 }
 0x1a2   : > { %v1057_v38 = vpop.eup %1056  ;;  %v673_v39 = vmul.f32 %v657_v23, %v624_v31  ;;  %v626_v40 = vmul.f32 0.6931472, %v1055_v33  ;;  %1076 = vlog2.f32 %v606_v24  ;;  %v664_v23 = vunpack.c.h.bf16 %v648_v63 }
 0x1a3   : > { %v1059_v42 = vpop.eup %1058  ;;  %v681_v43 = vadd.f32 %v666_v34, %v665_v30  ;;  %v667_v44 = vmul.f32 %v651_v27, %v612_v35  ;;  %v614_v45 = vmul.f32 0.6931472, %v1057_v38  ;;  %v639_v38 = vld [vmem:[%s1707_s6] sm:$0xff] }
 0x1a4   : > { %v1061_v47 = vpop.eup %1060  ;;  %v674_v48 = vmul.f32 %v658_v32, %v626_v40  ;;  %v628_v49 = vmul.f32 0.6931472, %v1059_v42  ;;  %v640_v42 = vld [vmem:[%s1707_s6 + $0x8] sm:$0xff] }
 0x1a5   : > { %v1063_v53 = vpop.eup %1062  ;;  %v682_v54 = vadd.f32 %v681_v43, %v667_v44  ;;  %v668_v55 = vmul.f32 %v652_v36, %v614_v45  ;;  %v630_v56 = vmul.f32 0.6931472, %v1061_v47 }
 0x1a6   : > { %v1065_v58 = vpop.eup %1064  ;;  %v690_v59 = vadd.f32 %v674_v48, %v673_v39  ;;  %v675_v60 = vmul.f32 %v659_v41, %v628_v49  ;;  %v616_v61 = vmul.f32 0.6931472, %v1063_v53 }
 0x1a7   : > { %v1067_v0 = vpop.eup %1066  ;;  %v683_v1 = vadd.f32 %v682_v54, %v668_v55  ;;  %v618_v2 = vmul.f32 0.6931472, %v1065_v58  ;;  %v676_v7 = vmul.f32 %v660_v50, %v630_v56 }
 0x1a8   : > { %v1069_v5 = vpop.eup %1068  ;;  %v691_v6 = vadd.f32 %v690_v59, %v675_v60  ;;  %v669_v8 = vmul.f32 %v653_v51, %v616_v61  ;;  %v632_v9 = vmul.f32 0.6931472, %v1067_v0 }
 0x1a9   : > { %v1071_v10 = vpop.eup %1070  ;;  %v670_v11 = vmul.f32 %v654_v57, %v618_v2  ;;  %v620_v12 = vmul.f32 0.6931472, %v1069_v5 }
 0x1aa   : > { %v1073_v15 = vpop.eup %1072  ;;  %v692_v16 = vadd.f32 %v691_v6, %v676_v7  ;;  %v677_v17 = vmul.f32 %v661_v62, %v632_v9  ;;  %v634_v18 = vmul.f32 0.6931472, %v1071_v10  ;;  %v684_v19 = vadd.f32 %v683_v1, %v669_v8 }
 0x1ab   : > { %v1075_v20 = vpop.eup %1074  ;;  %v622_v21 = vmul.f32 0.6931472, %v1073_v15  ;;  %v671_v22 = vmul.f32 %v655_v4, %v620_v12 }
 0x1ac   : > { %v1077_v24 = vpop.eup %1076  ;;  %v678_v25 = vmul.f32 %v662_v3, %v634_v18  ;;  %v636_v26 = vmul.f32 0.6931472, %v1075_v20  ;;  %v685_v27 = vadd.f32 %v684_v19, %v670_v11  ;;  %v693_v28 = vadd.f32 %v692_v16, %v677_v17 }
 0x1ad   : > { %v638_v29 = vmul.f32 0.6931472, %v1077_v24  ;;  %v672_v30 = vmul.f32 %v656_v13, %v622_v21 }
 0x1ae   : > { %v686_v31 = vadd.f32 %v685_v27, %v671_v22  ;;  %v679_v32 = vmul.f32 %v663_v14, %v636_v26  ;;  %v694_v33 = vadd.f32 %v693_v28, %v678_v25 }
 0x1af   : > { %v680_v35 = vmul.f32 %v664_v23, %v638_v29 }
 0x1b0   : > { %v687_v34 = vadd.f32 %v686_v31, %v672_v30  ;;  %v695_v36 = vadd.f32 %v694_v33, %v679_v32 }
 0x1b2   : > { %688 = vadd.xlane.f32.xlu0 %v687_v34  ;;  %v696_v37 = vadd.f32 %v695_v36, %v680_v35 }
 0x1b6   : > { %697 = vadd.xlane.f32.xlu0 %v696_v37 }
 0x23f   : > { %v689_v39 = vpop.xlane.xlu0 %688 }
 0x240   : > { %v699_v40 = vsub.f32 0.0, %v689_v39 }
 0x242   : > { %v701_v41 = vadd.f32 %v699_v40, %v639_v38 }
 0x243   : > { %v698_v43 = vpop.xlane.xlu0 %697 }
 0x244   : > { %704 = vst.msk [vmem:[%s1707_s6] sm:$0xff] %vm703_vm4, %v701_v41  ;;  %v700_v44 = vsub.f32 0.0, %v698_v43 }
 0x246   : > { %v702_v45 = vadd.f32 %v700_v44, %v640_v42 }
 0x248   : > { %705 = vst.msk [vmem:[%s1707_s6 + $0x8] sm:$0xff] %vm703_vm4, %v702_v45 }
 0x249   : > { %1181 = shalt.err (!%p1178_p7)
}
 0x24a   : > { %s1182_s21 = scalar_lea.hbm %s1750_s30, 256  ;;  %s1186_s0 = scalar_lea.hbm %s1894_s28, 512 }
 0x24b   : > { %p1183_p12 = scmp.ne.s32.totalorder %s1750_s30, %s1182_s21  ;;  %p1187_p9 = scmp.lt.u32.totalorder %s1750_s30, %s1894_s28 }
 0x24c   : > { %p1188_p8 = scmp.lt.u32.totalorder %s1186_s0, %s1182_s21  ;;  %p1190_p13 = scmp.lt.u32.totalorder %s1182_s21, %s1750_s30 }
 0x24d   : > { %p1184_p5 = pnand %p1183_p12, %p1895_p2 }
 0x24e   : > { %p1189_p1 = por %p1188_p8, %p1187_p9 }
 0x24f   : > { %p1185_p11 = pneg %p1184_p5 }
 0x250   : > { %p1191_p4 = por %p1190_p13, %p1189_p1 }
 0x252   : > { %p1192_p6 = pnand %p1191_p4, %p1185_p11 }
 0x254   : > { %1195 = shalt.err (!%p1192_p6)
}
 0x255   : > { %s1336_s11 = smov 128   ;;  %s1337_s8 = smov 8  }
 0x256   : > { %906 = dma.vmem_to_hbm [thread:$0]  (%p1895_p2), %s1752_s7, 256, %s1750_s30, %s707_s1, %s1336_s11, %s1336_s11, %s1337_s8  }
 0x257 PF: > { %p923_p3 = scmp.ge.s32.totalorder %s1322_s25, 2  ;;  %s735_s9 = sand.u32 1, %s1294_s18  }
 0x258   : > { %p1896_p10 = scmp.ne.s32.totalorder %s1875_s15, 0  ;;  %s736_s12 = scalar_lea.sflag [#allocation4], %s735_s9 }
 0x25a   : > { %p919_p0 = pnand %p923_p3, %p1896_p10 }
 0x25c   : > { %1265 = dma.done.wait (!%p919_p0), %s736_s12, 256  }
 0x25d   : > { %1267 = vsyncadd (!%p919_p0), %s736_s12, 4294967040  ;;  %s22_s25 = sadd.s32 1, %s1322_s25   ;;  %s1898_s29 = sld [smem:[#allocation13_spill]] }
 0x25e   : > { %p1784_p7 = scmp.ge.s32.totalorder %s22_s25, 6   ;;  %s1899_s17 = sld [smem:[#allocation17_spill]] }
 0x25f   : > { %s1900_s26 = sld [smem:[#allocation16_spill]]  ;;  %s1901_s7 = sld [smem:[#allocation18_spill]] }
 0x260   : > { %s1902_s12 = smov %s1274_s13  ;;  %s1903_s13 = smov %s1278_s14 }
 0x261   : > { %s1904_s14 = smov %s1620_s10  ;;  %s1905_s15 = smov %s1286_s16 }
 0x262   : > { %s1907_s18 = smov %s1298_s19  ;;  %s1908_s19 = smov %s1302_s20 }
 0x263   : > { %s1906_s16 = smov %s1898_s29  ;;  %s1909_s20 = smov %s1562_s5 }
 0x264   : > { %s1910_s21 = smov %s1314_s23  ;;  %s1911_s22 = smov %s1318_s24 }
 0x265   : > { %s1912_s23 = smov %s1900_s26  ;;  %s1913_s24 = smov %s1901_s7 }
 0x266   :  { %21 = sbr.rel (!%p1784_p7) target bundleno = 16 (0x10), region = 105 }
 0x26d   :  { %741 = vsyncpa [#allocation3], 1 }
 0x26e   :  { %743 = vsyncpa [#allocation3 + $0x1], 1 }
 0x26f   :  { %744 = vsyncpa [#allocation6], 1 }
 0x270   :  { %746 = vsyncpa [#allocation6 + $0x1], 1 }
 0x271   :  { %747 = vsyncpa [#allocation4], 1 }
 0x272   :  { %749 = vsyncpa [#allocation4 + $0x1], 1 }

</bundles_post_ra>
